<compile_context>
chip_gen: v5e
topology: v5e:2x2
jax: 0.10.0
libtpu: 0.0.40
codegen_flags: <defaults>
</compile_context>

<pallas_src>
import functools

import jax
import jax.numpy as jnp
from jax import lax
from jax.experimental import pallas as pl
from jax.experimental.pallas import tpu as pltpu

# Small, forward-consistent sizes.
T, B = 8, 4          # seq_len, batch (sentences)
D = 32               # words_dim (embedding dim)
H = 32               # word_num_hidden  (bi-GRU output dim = 2H)
VOCAB = 50           # vocab_size


def word_level_rnn_kernel(x_ref, wih_ref, whh_ref, b_rzn_ref, b_hn_ref,
                          wlin_ref, blin_ref, ctx_ref, out_ref,
                          gi_scr, h_scr):
    TB = x_ref.shape[0]        # T * BB
    BB = out_ref.shape[0]      # batch rows handled by this grid block
    Tn = TB // BB              # static sequence length
    H2 = h_scr.shape[1]        # 2H (fused [fwd|bwd] hidden width)
    Hh = H2 // 2               # H
    H4 = 2 * H2                # end of the r|z gate span (128 lanes when H=32)
    H6 = 3 * H2                # full gate width

    # ---- prologue: ONE fused input-projection matmul for every step --------
    # (T*BB, 2D) @ (2D, 3*2H) with r/z/n biases folded in, spilled to VMEM so
    # the unrolled recurrence only keeps a (BB, 3*2H) slice live per step.
    gi_scr[...] = (jnp.dot(x_ref[...], wih_ref[...],
                           preferred_element_type=jnp.float32)
                   + b_rzn_ref[...])

    whh = whh_ref[...]                                    # loop-invariant (2H, 3*2H)
    b_hn_b = jnp.broadcast_to(b_hn_ref[...], (BB, H2))    # hoisted broadcast

    # ---- fused bidirectional GRU recurrence, fully unrolled -----------------
    # Carried state h = [h_fwd(s) | h_bwd(Tn-1-s)]; a single h-dependent MXU op
    # per step sits on the serial critical path.
    # TODO(synk): stage `whh` in MXU weight registers once per block via
    # pltpu.matmul_push_rhs / matmul_acc_lhs / matmul_pop (RHS is identical
    # every step); kept as jnp.dot here for cross-generation portability.
    h = jnp.zeros((BB, H2), jnp.float32)
    for s in range(Tn):
        lo = s * BB
        gi = gi_scr[lo:lo + BB, :]                                   # (BB, 3*2H)
        gh = jnp.dot(h, whh, preferred_element_type=jnp.float32)     # (BB, 3*2H)
        rz = jax.nn.sigmoid(gi[:, 0:H4] + gh[:, 0:H4])               # r and z together
        r = rz[:, 0:H2]
        z = rz[:, H2:H4]
        n = jnp.tanh(gi[:, H4:H6] + r * (gh[:, H4:H6] + b_hn_b))
        h = (1.0 - z) * n + z * h
        h_scr[lo:lo + BB, :] = h                 # single full-width store / step

    # ---- epilogue: attention over the sequence axis (runs once) -------------
    h_all = h_scr[...]                           # row-block s = [hf(s) | hb(Tn-1-s)]
    blocks = []
    for t in range(Tn):                          # time-align the backward half
        hf_t = h_all[t * BB:(t + 1) * BB, 0:Hh]
        hb_t = h_all[(Tn - 1 - t) * BB:(Tn - t) * BB, Hh:H2]
        blocks.append(jnp.concatenate([hf_t, hb_t], axis=-1))
    h_time = jnp.concatenate(blocks, axis=0)                          # (T*BB, 2H)

    u = jnp.tanh(jnp.dot(h_time, wlin_ref[...],
                         preferred_element_type=jnp.float32) + blin_ref[...])
    scores = jnp.sum(u * ctx_ref[...], axis=-1, keepdims=True)        # (T*BB, 1)

    # softmax over the sequence axis (per batch row); chunks are BB-row tiles
    s_chunks = [scores[t * BB:(t + 1) * BB, :] for t in range(Tn)]
    m = s_chunks[0]
    for t in range(1, Tn):
        m = jnp.maximum(m, s_chunks[t])
    e_chunks = [jnp.exp(c - m) for c in s_chunks]
    denom = e_chunks[0]
    for t in range(1, Tn):
        denom = denom + e_chunks[t]

    acc = jnp.zeros((BB, H2), jnp.float32)
    for t in range(Tn):
        acc = acc + e_chunks[t] * h_time[t * BB:(t + 1) * BB, :]
    out_ref[...] = acc / denom


# ----------------------------- host-side helpers -----------------------------

def _gate_t(w, g, hh):
    """Gate slice of a PyTorch (3H, X) weight, transposed to (X, H)."""
    return jnp.transpose(w[g * hh:(g + 1) * hh, :])


def _bgate(b, g, hh):
    return b[g * hh:(g + 1) * hh]


def _block_diag(a, b):
    z1 = jnp.zeros((a.shape[0], b.shape[1]), a.dtype)
    z2 = jnp.zeros((b.shape[0], a.shape[1]), b.dtype)
    return jnp.concatenate(
        [jnp.concatenate([a, z1], axis=1), jnp.concatenate([z2, b], axis=1)],
        axis=0)


def init_params(key):
    ks = jax.random.split(key, 12)
    u = lambda k, shape, s=0.25: jax.random.uniform(k, shape, jnp.float32, -s, s)
    return dict(
        embed=u(ks[0], (VOCAB, D)),
        wih_f=u(ks[1], (3 * H, D)), whh_f=u(ks[2], (3 * H, H)),
        bih_f=u(ks[3], (3 * H,)),   bhh_f=u(ks[4], (3 * H,)),
        wih_b=u(ks[5], (3 * H, D)), whh_b=u(ks[6], (3 * H, H)),
        bih_b=u(ks[7], (3 * H,)),   bhh_b=u(ks[8], (3 * H,)),
        wlin=u(ks[9], (2 * H, 2 * H)), blin=u(ks[10], (2 * H,)),
        ctx=u(ks[11], (2 * H, 1)),
    )


def pack_params(p):
    """Call-invariant weight packing — do once, reuse across calls."""
    hh = p['whh_f'].shape[1]
    # Fused input / recurrent weights: columns are [r | z | n], each gate
    # block-diagonal [fwd | bwd] to match x_cat = [x(t) | x(T-1-t)] and
    # h = [h_fwd | h_bwd].
    wih = jnp.concatenate(
        [_block_diag(_gate_t(p['wih_f'], g, hh), _gate_t(p['wih_b'], g, hh))
         for g in range(3)], axis=1)                            # (2D, 3*2H)
    whh = jnp.concatenate(
        [_block_diag(_gate_t(p['whh_f'], g, hh), _gate_t(p['whh_b'], g, hh))
         for g in range(3)], axis=1)                            # (2H, 3*2H)
    # Fold bih+bhh for r/z; keep bhh_n separate (it is multiplied by r).
    b_rzn = jnp.concatenate([
        _bgate(p['bih_f'], 0, hh) + _bgate(p['bhh_f'], 0, hh),
        _bgate(p['bih_b'], 0, hh) + _bgate(p['bhh_b'], 0, hh),
        _bgate(p['bih_f'], 1, hh) + _bgate(p['bhh_f'], 1, hh),
        _bgate(p['bih_b'], 1, hh) + _bgate(p['bhh_b'], 1, hh),
        _bgate(p['bih_f'], 2, hh),
        _bgate(p['bih_b'], 2, hh)])[None, :]                    # (1, 3*2H)
    b_hn = jnp.concatenate([_bgate(p['bhh_f'], 2, hh),
                            _bgate(p['bhh_b'], 2, hh)])[None, :]  # (1, 2H)
    return dict(
        embed=p['embed'], wih=wih, whh=whh, b_rzn=b_rzn, b_hn=b_hn,
        wlin=jnp.transpose(p['wlin']),          # (2H, 2H)
        blin=p['blin'][None, :],                # (1, 2H)
        ctx=jnp.transpose(p['ctx']))            # (1, 2H)


@functools.partial(jax.jit, static_argnames=("block_b",))
def word_level_rnn(x_tokens, packed, *, block_b=8):
    assert block_b % 8 == 0, "batch block must be a multiple of the sublane width"
    t_len, b_sz = x_tokens.shape
    d_dim = packed['embed'].shape[1]
    hh = packed['whh'].shape[0] // 2
    b_pad = ((b_sz + block_b - 1) // block_b) * block_b
    nblk = b_pad // block_b

    # Embedding lookup (gather) is glue outside the kernel; padded batch rows
    # are zero and discarded at the end (every row is independent).
    # TODO(synk): move the (VOCAB, D) table into the kernel (VMEM + jnp.take)
    # once many sentences are batched per call, to collapse wrapper dispatch.
    x_emb = jnp.take(packed['embed'], x_tokens, axis=0)               # (T, B, D)
    x_emb = jnp.pad(x_emb, ((0, 0), (0, b_pad - b_sz), (0, 0)))       # (T, Bp, D)
    x_cat = jnp.concatenate([x_emb, x_emb[::-1]], axis=-1)            # (T, Bp, 2D)
    # One contiguous (T*BB, 2D) slab per batch block, time-major within a block.
    x_blk = (x_cat.reshape(t_len, nblk, block_b, 2 * d_dim)
                  .transpose(1, 0, 2, 3)
                  .reshape(nblk, t_len * block_b, 2 * d_dim))

    weights = (packed['wih'], packed['whh'], packed['b_rzn'], packed['b_hn'],
               packed['wlin'], packed['blin'], packed['ctx'])
    w_specs = [pl.BlockSpec(w.shape, lambda i: (0, 0)) for w in weights]

    out = pl.pallas_call(
        word_level_rnn_kernel,
        out_shape=jax.ShapeDtypeStruct((b_pad, 2 * hh), jnp.float32),
        grid=(nblk,),
        in_specs=[pl.BlockSpec((None, t_len * block_b, 2 * d_dim),
                               lambda i: (i, 0, 0))] + w_specs,
        out_specs=pl.BlockSpec((block_b, 2 * hh), lambda i: (i, 0)),
        scratch_shapes=[pltpu.VMEM((t_len * block_b, 6 * hh), jnp.float32),  # gi
                        pltpu.VMEM((t_len * block_b, 2 * hh), jnp.float32)], # h
        compiler_params=pltpu.CompilerParams(
            # Sentence blocks are independent -> shard across v7x's 2 TCs.
            dimension_semantics=("parallel",)),
    )(x_blk, *weights)
    return out[:b_sz][None]                        # (1, B, 2H)


def reference(x_tokens, p):
    """Pure-JAX reference mirroring the PyTorch forward."""
    x = jnp.take(p['embed'], x_tokens, axis=0)                       # (T, B, D)

    def run_dir(xseq, wih, whh, bih, bhh):
        hd = whh.shape[1]

        def step(h, x_t):
            gi = x_t @ wih.T + bih
            gh = h @ whh.T + bhh
            r = jax.nn.sigmoid(gi[:, :hd] + gh[:, :hd])
            z = jax.nn.sigmoid(gi[:, hd:2 * hd] + gh[:, hd:2 * hd])
            n = jnp.tanh(gi[:, 2 * hd:] + r * gh[:, 2 * hd:])
            h_new = (1.0 - z) * n + z * h
            return h_new, h_new

        h0 = jnp.zeros((xseq.shape[1], hd), jnp.float32)
        _, hs = lax.scan(step, h0, xseq)
        return hs

    hf = run_dir(x, p['wih_f'], p['whh_f'], p['bih_f'], p['bhh_f'])
    hb = run_dir(x[::-1], p['wih_b'], p['whh_b'], p['bih_b'], p['bhh_b'])[::-1]
    h = jnp.concatenate([hf, hb], axis=-1)                           # (T, B, 2H)
    u = jnp.tanh(h @ p['wlin'].T + p['blin'])
    scores = (u @ p['ctx'])[..., 0]                                  # (T, B)
    alpha = jax.nn.softmax(scores, axis=0)
    return jnp.sum(h * alpha[:, :, None], axis=0)[None]              # (1, B, 2H)


if __name__ == "__main__":
    # Keep the XLA reference matmuls in full f32 so the tolerance compares
    # like with like.
    jax.config.update('jax_default_matmul_precision', 'highest')

    key = jax.random.PRNGKey(0)
    kp, kx1, kx2 = jax.random.split(key, 3)
    params = init_params(kp)
    packed = pack_params(params)

    # --- small forward-consistent case (grid of 1 block of 8 padded rows) ---
    x_tokens = jax.random.randint(kx1, (T, B), 0, VOCAB, dtype=jnp.int32)
    out = jax.block_until_ready(word_level_rnn(x_tokens, packed, block_b=8))
    ref = reference(x_tokens, params)
    assert out.shape == (1, B, 2 * H), out.shape
    err = float(jnp.max(jnp.abs(out - ref)))
    assert jnp.allclose(out, ref, atol=1e-4, rtol=1e-4), err

    # --- larger batch exercising the parallel grid (2 blocks of 16 rows) ---
    B2 = 20
    x2 = jax.random.randint(kx2, (T, B2), 0, VOCAB, dtype=jnp.int32)
    out2 = jax.block_until_ready(word_level_rnn(x2, packed, block_b=16))
    ref2 = reference(x2, params)
    assert out2.shape == (1, B2, 2 * H), out2.shape
    err2 = float(jnp.max(jnp.abs(out2 - ref2)))
    assert jnp.allclose(out2, ref2, atol=1e-4, rtol=1e-4), err2

    print("KERNEL_OK")
</pallas_src>

<mosaic_0001>
module attributes {stable_mosaic.version = 11 : i64} {
  func.func @word_level_rnn_kernel(%arg0: i32, %arg1: memref<1x64x64xf32, #tpu.memory_space<vmem>>, %arg2: memref<64x192xf32, #tpu.memory_space<vmem>>, %arg3: memref<64x192xf32, #tpu.memory_space<vmem>>, %arg4: memref<1x192xf32, #tpu.memory_space<vmem>>, %arg5: memref<1x64xf32, #tpu.memory_space<vmem>>, %arg6: memref<64x64xf32, #tpu.memory_space<vmem>>, %arg7: memref<1x64xf32, #tpu.memory_space<vmem>>, %arg8: memref<1x64xf32, #tpu.memory_space<vmem>>, %arg9: memref<8x64xf32, #tpu.memory_space<vmem>>, %arg10: memref<64x192xf32, #tpu.memory_space<vmem>>, %arg11: memref<64x64xf32, #tpu.memory_space<vmem>>) attributes {dimension_semantics = [#tpu.dimension_semantics<parallel>], iteration_bounds = array<i64: 1>, scalar_prefetch = 0 : i64, scratch_operands = 2 : i64, tpu.core_type = #tpu.core_type<tc>, window_params = [{transform_indices = @transform_0, window_bounds = array<i64: 1, 64, 64>}, {pipeline_mode = #tpu.pipeline_mode<synchronous>, transform_indices = @transform_1, window_bounds = array<i64: 64, 192>}, {pipeline_mode = #tpu.pipeline_mode<synchronous>, transform_indices = @transform_2, window_bounds = array<i64: 64, 192>}, {pipeline_mode = #tpu.pipeline_mode<synchronous>, transform_indices = @transform_3, window_bounds = array<i64: 1, 192>}, {pipeline_mode = #tpu.pipeline_mode<synchronous>, transform_indices = @transform_4, window_bounds = array<i64: 1, 64>}, {pipeline_mode = #tpu.pipeline_mode<synchronous>, transform_indices = @transform_5, window_bounds = array<i64: 64, 64>}, {pipeline_mode = #tpu.pipeline_mode<synchronous>, transform_indices = @transform_6, window_bounds = array<i64: 1, 64>}, {pipeline_mode = #tpu.pipeline_mode<synchronous>, transform_indices = @transform_7, window_bounds = array<i64: 1, 64>}, {transform_indices = @transform_8, window_bounds = array<i64: 8, 64>}]} {
    %c0 = arith.constant 0 : index
    %c0_0 = arith.constant 0 : index
    %c0_1 = arith.constant 0 : index
    %0 = vector.load %arg1[%c0, %c0_0, %c0_1] : memref<1x64x64xf32, #tpu.memory_space<vmem>>, vector<1x64x64xf32>
    %1 = vector.shape_cast %0 : vector<1x64x64xf32> to vector<64x64xf32>
    %c0_2 = arith.constant 0 : index
    %c0_3 = arith.constant 0 : index
    %2 = vector.load %arg2[%c0_2, %c0_3] : memref<64x192xf32, #tpu.memory_space<vmem>>, vector<64x192xf32>
    %cst = arith.constant dense<0.000000e+00> : vector<64x192xf32>
    %3 = tpu.matmul %1, %2, %cst {dimension_numbers = #tpu.dot_dimension_numbers<[1], [0], [0], [1], [0, 0, 1, 1], [], []>, precision = #tpu.contract_precision<fp32>} : vector<64x64xf32>, vector<64x192xf32>, vector<64x192xf32> -> vector<64x192xf32>
    %c0_4 = arith.constant 0 : index
    %c0_5 = arith.constant 0 : index
    %4 = vector.load %arg4[%c0_4, %c0_5] : memref<1x192xf32, #tpu.memory_space<vmem>>, vector<1x192xf32>
    %5 = vector.broadcast %4 : vector<1x192xf32> to vector<64x192xf32>
    %6 = arith.addf %3, %5 : vector<64x192xf32>
    %c0_6 = arith.constant 0 : index
    %c0_7 = arith.constant 0 : index
    %7 = vector.load %arg10[%c0_6, %c0_7] : memref<64x192xf32, #tpu.memory_space<vmem>>, vector<64x192xf32>
    tpu.vector_store %arg10[%c0_6, %c0_7], %6 {strides = array<i32>} : memref<64x192xf32, #tpu.memory_space<vmem>>, vector<64x192xf32>,
    %c0_8 = arith.constant 0 : index
    %c0_9 = arith.constant 0 : index
    %8 = vector.load %arg3[%c0_8, %c0_9] : memref<64x192xf32, #tpu.memory_space<vmem>>, vector<64x192xf32>
    %c0_10 = arith.constant 0 : index
    %c0_11 = arith.constant 0 : index
    %9 = vector.load %arg5[%c0_10, %c0_11] : memref<1x64xf32, #tpu.memory_space<vmem>>, vector<1x64xf32>
    %10 = vector.shape_cast %9 : vector<1x64xf32> to vector<1x64xf32>
    %11 = vector.broadcast %10 : vector<1x64xf32> to vector<8x64xf32>
    %cst_12 = arith.constant 0.000000e+00 : f32
    %12 = vector.broadcast %cst_12 : f32 to vector<8x64xf32>
    %c0_13 = arith.constant 0 : index
    %c0_14 = arith.constant 0 : index
    %13 = vector.load %arg10[%c0_13, %c0_14] : memref<64x192xf32, #tpu.memory_space<vmem>>, vector<8x192xf32>
    %cst_15 = arith.constant dense<0.000000e+00> : vector<8x192xf32>
    %14 = tpu.matmul %12, %8, %cst_15 {dimension_numbers = #tpu.dot_dimension_numbers<[1], [0], [0], [1], [0, 0, 1, 1], [], []>, precision = #tpu.contract_precision<fp32>} : vector<8x64xf32>, vector<64x192xf32>, vector<8x192xf32> -> vector<8x192xf32>
    %15 = vector.extract_strided_slice %13 {offsets = [0, 0], sizes = [8, 128], strides = [1, 1]} : vector<8x192xf32> to vector<8x128xf32>
    %16 = vector.extract_strided_slice %14 {offsets = [0, 0], sizes = [8, 128], strides = [1, 1]} : vector<8x192xf32> to vector<8x128xf32>
    %17 = arith.addf %15, %16 : vector<8x128xf32>
    %18 = arith.negf %17 : vector<8x128xf32>
    %19 = math.exp %18 : vector<8x128xf32>
    %cst_16 = arith.constant 1.000000e+00 : f32
    %20 = vector.broadcast %cst_16 : f32 to vector<8x128xf32>
    %21 = arith.addf %20, %19 : vector<8x128xf32>
    %22 = arith.divf %20, %21 : vector<8x128xf32>
    %23 = vector.extract_strided_slice %22 {offsets = [0, 0], sizes = [8, 64], strides = [1, 1]} : vector<8x128xf32> to vector<8x64xf32>
    %24 = vector.extract_strided_slice %22 {offsets = [0, 64], sizes = [8, 64], strides = [1, 1]} : vector<8x128xf32> to vector<8x64xf32>
    %25 = vector.extract_strided_slice %13 {offsets = [0, 128], sizes = [8, 64], strides = [1, 1]} : vector<8x192xf32> to vector<8x64xf32>
    %26 = vector.extract_strided_slice %14 {offsets = [0, 128], sizes = [8, 64], strides = [1, 1]} : vector<8x192xf32> to vector<8x64xf32>
    %27 = arith.addf %26, %11 : vector<8x64xf32>
    %28 = arith.mulf %23, %27 : vector<8x64xf32>
    %29 = arith.addf %25, %28 : vector<8x64xf32>
    %30 = math.tanh %29 : vector<8x64xf32>
    %cst_17 = arith.constant 1.000000e+00 : f32
    %31 = vector.broadcast %cst_17 : f32 to vector<8x64xf32>
    %32 = arith.subf %31, %24 : vector<8x64xf32>
    %33 = arith.mulf %32, %30 : vector<8x64xf32>
    %34 = arith.mulf %24, %12 : vector<8x64xf32>
    %35 = arith.addf %33, %34 : vector<8x64xf32>
    %c0_18 = arith.constant 0 : index
    %c0_19 = arith.constant 0 : index
    %36 = vector.load %arg11[%c0_18, %c0_19] : memref<64x64xf32, #tpu.memory_space<vmem>>, vector<8x64xf32>
    tpu.vector_store %arg11[%c0_18, %c0_19], %35 {strides = array<i32>} : memref<64x64xf32, #tpu.memory_space<vmem>>, vector<8x64xf32>,
    %c8 = arith.constant 8 : index
    %c0_20 = arith.constant 0 : index
    %37 = vector.load %arg10[%c8, %c0_20] : memref<64x192xf32, #tpu.memory_space<vmem>>, vector<8x192xf32>
    %cst_21 = arith.constant dense<0.000000e+00> : vector<8x192xf32>
    %38 = tpu.matmul %35, %8, %cst_21 {dimension_numbers = #tpu.dot_dimension_numbers<[1], [0], [0], [1], [0, 0, 1, 1], [], []>, precision = #tpu.contract_precision<fp32>} : vector<8x64xf32>, vector<64x192xf32>, vector<8x192xf32> -> vector<8x192xf32>
    %39 = vector.extract_strided_slice %37 {offsets = [0, 0], sizes = [8, 128], strides = [1, 1]} : vector<8x192xf32> to vector<8x128xf32>
    %40 = vector.extract_strided_slice %38 {offsets = [0, 0], sizes = [8, 128], strides = [1, 1]} : vector<8x192xf32> to vector<8x128xf32>
    %41 = arith.addf %39, %40 : vector<8x128xf32>
    %42 = arith.negf %41 : vector<8x128xf32>
    %43 = math.exp %42 : vector<8x128xf32>
    %cst_22 = arith.constant 1.000000e+00 : f32
    %44 = vector.broadcast %cst_22 : f32 to vector<8x128xf32>
    %45 = arith.addf %44, %43 : vector<8x128xf32>
    %46 = arith.divf %44, %45 : vector<8x128xf32>
    %47 = vector.extract_strided_slice %46 {offsets = [0, 0], sizes = [8, 64], strides = [1, 1]} : vector<8x128xf32> to vector<8x64xf32>
    %48 = vector.extract_strided_slice %46 {offsets = [0, 64], sizes = [8, 64], strides = [1, 1]} : vector<8x128xf32> to vector<8x64xf32>
    %49 = vector.extract_strided_slice %37 {offsets = [0, 128], sizes = [8, 64], strides = [1, 1]} : vector<8x192xf32> to vector<8x64xf32>
    %50 = vector.extract_strided_slice %38 {offsets = [0, 128], sizes = [8, 64], strides = [1, 1]} : vector<8x192xf32> to vector<8x64xf32>
    %51 = arith.addf %50, %11 : vector<8x64xf32>
    %52 = arith.mulf %47, %51 : vector<8x64xf32>
    %53 = arith.addf %49, %52 : vector<8x64xf32>
    %54 = math.tanh %53 : vector<8x64xf32>
    %cst_23 = arith.constant 1.000000e+00 : f32
    %55 = vector.broadcast %cst_23 : f32 to vector<8x64xf32>
    %56 = arith.subf %55, %48 : vector<8x64xf32>
    %57 = arith.mulf %56, %54 : vector<8x64xf32>
    %58 = arith.mulf %48, %35 : vector<8x64xf32>
    %59 = arith.addf %57, %58 : vector<8x64xf32>
    %c8_24 = arith.constant 8 : index
    %c0_25 = arith.constant 0 : index
    %60 = vector.load %arg11[%c8_24, %c0_25] : memref<64x64xf32, #tpu.memory_space<vmem>>, vector<8x64xf32>
    tpu.vector_store %arg11[%c8_24, %c0_25], %59 {strides = array<i32>} : memref<64x64xf32, #tpu.memory_space<vmem>>, vector<8x64xf32>,
    %c16 = arith.constant 16 : index
    %c0_26 = arith.constant 0 : index
    %61 = vector.load %arg10[%c16, %c0_26] : memref<64x192xf32, #tpu.memory_space<vmem>>, vector<8x192xf32>
    %cst_27 = arith.constant dense<0.000000e+00> : vector<8x192xf32>
    %62 = tpu.matmul %59, %8, %cst_27 {dimension_numbers = #tpu.dot_dimension_numbers<[1], [0], [0], [1], [0, 0, 1, 1], [], []>, precision = #tpu.contract_precision<fp32>} : vector<8x64xf32>, vector<64x192xf32>, vector<8x192xf32> -> vector<8x192xf32>
    %63 = vector.extract_strided_slice %61 {offsets = [0, 0], sizes = [8, 128], strides = [1, 1]} : vector<8x192xf32> to vector<8x128xf32>
    %64 = vector.extract_strided_slice %62 {offsets = [0, 0], sizes = [8, 128], strides = [1, 1]} : vector<8x192xf32> to vector<8x128xf32>
    %65 = arith.addf %63, %64 : vector<8x128xf32>
    %66 = arith.negf %65 : vector<8x128xf32>
    %67 = math.exp %66 : vector<8x128xf32>
    %cst_28 = arith.constant 1.000000e+00 : f32
    %68 = vector.broadcast %cst_28 : f32 to vector<8x128xf32>
    %69 = arith.addf %68, %67 : vector<8x128xf32>
    %70 = arith.divf %68, %69 : vector<8x128xf32>
    %71 = vector.extract_strided_slice %70 {offsets = [0, 0], sizes = [8, 64], strides = [1, 1]} : vector<8x128xf32> to vector<8x64xf32>
    %72 = vector.extract_strided_slice %70 {offsets = [0, 64], sizes = [8, 64], strides = [1, 1]} : vector<8x128xf32> to vector<8x64xf32>
    %73 = vector.extract_strided_slice %61 {offsets = [0, 128], sizes = [8, 64], strides = [1, 1]} : vector<8x192xf32> to vector<8x64xf32>
    %74 = vector.extract_strided_slice %62 {offsets = [0, 128], sizes = [8, 64], strides = [1, 1]} : vector<8x192xf32> to vector<8x64xf32>
    %75 = arith.addf %74, %11 : vector<8x64xf32>
    %76 = arith.mulf %71, %75 : vector<8x64xf32>
    %77 = arith.addf %73, %76 : vector<8x64xf32>
    %78 = math.tanh %77 : vector<8x64xf32>
    %cst_29 = arith.constant 1.000000e+00 : f32
    %79 = vector.broadcast %cst_29 : f32 to vector<8x64xf32>
    %80 = arith.subf %79, %72 : vector<8x64xf32>
    %81 = arith.mulf %80, %78 : vector<8x64xf32>
    %82 = arith.mulf %72, %59 : vector<8x64xf32>
    %83 = arith.addf %81, %82 : vector<8x64xf32>
    %c16_30 = arith.constant 16 : index
    %c0_31 = arith.constant 0 : index
    %84 = vector.load %arg11[%c16_30, %c0_31] : memref<64x64xf32, #tpu.memory_space<vmem>>, vector<8x64xf32>
    tpu.vector_store %arg11[%c16_30, %c0_31], %83 {strides = array<i32>} : memref<64x64xf32, #tpu.memory_space<vmem>>, vector<8x64xf32>,
    %c24 = arith.constant 24 : index
    %c0_32 = arith.constant 0 : index
    %85 = vector.load %arg10[%c24, %c0_32] : memref<64x192xf32, #tpu.memory_space<vmem>>, vector<8x192xf32>
    %cst_33 = arith.constant dense<0.000000e+00> : vector<8x192xf32>
    %86 = tpu.matmul %83, %8, %cst_33 {dimension_numbers = #tpu.dot_dimension_numbers<[1], [0], [0], [1], [0, 0, 1, 1], [], []>, precision = #tpu.contract_precision<fp32>} : vector<8x64xf32>, vector<64x192xf32>, vector<8x192xf32> -> vector<8x192xf32>
    %87 = vector.extract_strided_slice %85 {offsets = [0, 0], sizes = [8, 128], strides = [1, 1]} : vector<8x192xf32> to vector<8x128xf32>
    %88 = vector.extract_strided_slice %86 {offsets = [0, 0], sizes = [8, 128], strides = [1, 1]} : vector<8x192xf32> to vector<8x128xf32>
    %89 = arith.addf %87, %88 : vector<8x128xf32>
    %90 = arith.negf %89 : vector<8x128xf32>
    %91 = math.exp %90 : vector<8x128xf32>
    %cst_34 = arith.constant 1.000000e+00 : f32
    %92 = vector.broadcast %cst_34 : f32 to vector<8x128xf32>
    %93 = arith.addf %92, %91 : vector<8x128xf32>
    %94 = arith.divf %92, %93 : vector<8x128xf32>
    %95 = vector.extract_strided_slice %94 {offsets = [0, 0], sizes = [8, 64], strides = [1, 1]} : vector<8x128xf32> to vector<8x64xf32>
    %96 = vector.extract_strided_slice %94 {offsets = [0, 64], sizes = [8, 64], strides = [1, 1]} : vector<8x128xf32> to vector<8x64xf32>
    %97 = vector.extract_strided_slice %85 {offsets = [0, 128], sizes = [8, 64], strides = [1, 1]} : vector<8x192xf32> to vector<8x64xf32>
    %98 = vector.extract_strided_slice %86 {offsets = [0, 128], sizes = [8, 64], strides = [1, 1]} : vector<8x192xf32> to vector<8x64xf32>
    %99 = arith.addf %98, %11 : vector<8x64xf32>
    %100 = arith.mulf %95, %99 : vector<8x64xf32>
    %101 = arith.addf %97, %100 : vector<8x64xf32>
    %102 = math.tanh %101 : vector<8x64xf32>
    %cst_35 = arith.constant 1.000000e+00 : f32
    %103 = vector.broadcast %cst_35 : f32 to vector<8x64xf32>
    %104 = arith.subf %103, %96 : vector<8x64xf32>
    %105 = arith.mulf %104, %102 : vector<8x64xf32>
    %106 = arith.mulf %96, %83 : vector<8x64xf32>
    %107 = arith.addf %105, %106 : vector<8x64xf32>
    %c24_36 = arith.constant 24 : index
    %c0_37 = arith.constant 0 : index
    %108 = vector.load %arg11[%c24_36, %c0_37] : memref<64x64xf32, #tpu.memory_space<vmem>>, vector<8x64xf32>
    tpu.vector_store %arg11[%c24_36, %c0_37], %107 {strides = array<i32>} : memref<64x64xf32, #tpu.memory_space<vmem>>, vector<8x64xf32>,
    %c32 = arith.constant 32 : index
    %c0_38 = arith.constant 0 : index
    %109 = vector.load %arg10[%c32, %c0_38] : memref<64x192xf32, #tpu.memory_space<vmem>>, vector<8x192xf32>
    %cst_39 = arith.constant dense<0.000000e+00> : vector<8x192xf32>
    %110 = tpu.matmul %107, %8, %cst_39 {dimension_numbers = #tpu.dot_dimension_numbers<[1], [0], [0], [1], [0, 0, 1, 1], [], []>, precision = #tpu.contract_precision<fp32>} : vector<8x64xf32>, vector<64x192xf32>, vector<8x192xf32> -> vector<8x192xf32>
    %111 = vector.extract_strided_slice %109 {offsets = [0, 0], sizes = [8, 128], strides = [1, 1]} : vector<8x192xf32> to vector<8x128xf32>
    %112 = vector.extract_strided_slice %110 {offsets = [0, 0], sizes = [8, 128], strides = [1, 1]} : vector<8x192xf32> to vector<8x128xf32>
    %113 = arith.addf %111, %112 : vector<8x128xf32>
    %114 = arith.negf %113 : vector<8x128xf32>
    %115 = math.exp %114 : vector<8x128xf32>
    %cst_40 = arith.constant 1.000000e+00 : f32
    %116 = vector.broadcast %cst_40 : f32 to vector<8x128xf32>
    %117 = arith.addf %116, %115 : vector<8x128xf32>
    %118 = arith.divf %116, %117 : vector<8x128xf32>
    %119 = vector.extract_strided_slice %118 {offsets = [0, 0], sizes = [8, 64], strides = [1, 1]} : vector<8x128xf32> to vector<8x64xf32>
    %120 = vector.extract_strided_slice %118 {offsets = [0, 64], sizes = [8, 64], strides = [1, 1]} : vector<8x128xf32> to vector<8x64xf32>
    %121 = vector.extract_strided_slice %109 {offsets = [0, 128], sizes = [8, 64], strides = [1, 1]} : vector<8x192xf32> to vector<8x64xf32>
    %122 = vector.extract_strided_slice %110 {offsets = [0, 128], sizes = [8, 64], strides = [1, 1]} : vector<8x192xf32> to vector<8x64xf32>
    %123 = arith.addf %122, %11 : vector<8x64xf32>
    %124 = arith.mulf %119, %123 : vector<8x64xf32>
    %125 = arith.addf %121, %124 : vector<8x64xf32>
    %126 = math.tanh %125 : vector<8x64xf32>
    %cst_41 = arith.constant 1.000000e+00 : f32
    %127 = vector.broadcast %cst_41 : f32 to vector<8x64xf32>
    %128 = arith.subf %127, %120 : vector<8x64xf32>
    %129 = arith.mulf %128, %126 : vector<8x64xf32>
    %130 = arith.mulf %120, %107 : vector<8x64xf32>
    %131 = arith.addf %129, %130 : vector<8x64xf32>
    %c32_42 = arith.constant 32 : index
    %c0_43 = arith.constant 0 : index
    %132 = vector.load %arg11[%c32_42, %c0_43] : memref<64x64xf32, #tpu.memory_space<vmem>>, vector<8x64xf32>
    tpu.vector_store %arg11[%c32_42, %c0_43], %131 {strides = array<i32>} : memref<64x64xf32, #tpu.memory_space<vmem>>, vector<8x64xf32>,
    %c40 = arith.constant 40 : index
    %c0_44 = arith.constant 0 : index
    %133 = vector.load %arg10[%c40, %c0_44] : memref<64x192xf32, #tpu.memory_space<vmem>>, vector<8x192xf32>
    %cst_45 = arith.constant dense<0.000000e+00> : vector<8x192xf32>
    %134 = tpu.matmul %131, %8, %cst_45 {dimension_numbers = #tpu.dot_dimension_numbers<[1], [0], [0], [1], [0, 0, 1, 1], [], []>, precision = #tpu.contract_precision<fp32>} : vector<8x64xf32>, vector<64x192xf32>, vector<8x192xf32> -> vector<8x192xf32>
    %135 = vector.extract_strided_slice %133 {offsets = [0, 0], sizes = [8, 128], strides = [1, 1]} : vector<8x192xf32> to vector<8x128xf32>
    %136 = vector.extract_strided_slice %134 {offsets = [0, 0], sizes = [8, 128], strides = [1, 1]} : vector<8x192xf32> to vector<8x128xf32>
    %137 = arith.addf %135, %136 : vector<8x128xf32>
    %138 = arith.negf %137 : vector<8x128xf32>
    %139 = math.exp %138 : vector<8x128xf32>
    %cst_46 = arith.constant 1.000000e+00 : f32
    %140 = vector.broadcast %cst_46 : f32 to vector<8x128xf32>
    %141 = arith.addf %140, %139 : vector<8x128xf32>
    %142 = arith.divf %140, %141 : vector<8x128xf32>
    %143 = vector.extract_strided_slice %142 {offsets = [0, 0], sizes = [8, 64], strides = [1, 1]} : vector<8x128xf32> to vector<8x64xf32>
    %144 = vector.extract_strided_slice %142 {offsets = [0, 64], sizes = [8, 64], strides = [1, 1]} : vector<8x128xf32> to vector<8x64xf32>
    %145 = vector.extract_strided_slice %133 {offsets = [0, 128], sizes = [8, 64], strides = [1, 1]} : vector<8x192xf32> to vector<8x64xf32>
    %146 = vector.extract_strided_slice %134 {offsets = [0, 128], sizes = [8, 64], strides = [1, 1]} : vector<8x192xf32> to vector<8x64xf32>
    %147 = arith.addf %146, %11 : vector<8x64xf32>
    %148 = arith.mulf %143, %147 : vector<8x64xf32>
    %149 = arith.addf %145, %148 : vector<8x64xf32>
    %150 = math.tanh %149 : vector<8x64xf32>
    %cst_47 = arith.constant 1.000000e+00 : f32
    %151 = vector.broadcast %cst_47 : f32 to vector<8x64xf32>
    %152 = arith.subf %151, %144 : vector<8x64xf32>
    %153 = arith.mulf %152, %150 : vector<8x64xf32>
    %154 = arith.mulf %144, %131 : vector<8x64xf32>
    %155 = arith.addf %153, %154 : vector<8x64xf32>
    %c40_48 = arith.constant 40 : index
    %c0_49 = arith.constant 0 : index
    %156 = vector.load %arg11[%c40_48, %c0_49] : memref<64x64xf32, #tpu.memory_space<vmem>>, vector<8x64xf32>
    tpu.vector_store %arg11[%c40_48, %c0_49], %155 {strides = array<i32>} : memref<64x64xf32, #tpu.memory_space<vmem>>, vector<8x64xf32>,
    %c48 = arith.constant 48 : index
    %c0_50 = arith.constant 0 : index
    %157 = vector.load %arg10[%c48, %c0_50] : memref<64x192xf32, #tpu.memory_space<vmem>>, vector<8x192xf32>
    %cst_51 = arith.constant dense<0.000000e+00> : vector<8x192xf32>
    %158 = tpu.matmul %155, %8, %cst_51 {dimension_numbers = #tpu.dot_dimension_numbers<[1], [0], [0], [1], [0, 0, 1, 1], [], []>, precision = #tpu.contract_precision<fp32>} : vector<8x64xf32>, vector<64x192xf32>, vector<8x192xf32> -> vector<8x192xf32>
    %159 = vector.extract_strided_slice %157 {offsets = [0, 0], sizes = [8, 128], strides = [1, 1]} : vector<8x192xf32> to vector<8x128xf32>
    %160 = vector.extract_strided_slice %158 {offsets = [0, 0], sizes = [8, 128], strides = [1, 1]} : vector<8x192xf32> to vector<8x128xf32>
    %161 = arith.addf %159, %160 : vector<8x128xf32>
    %162 = arith.negf %161 : vector<8x128xf32>
    %163 = math.exp %162 : vector<8x128xf32>
    %cst_52 = arith.constant 1.000000e+00 : f32
    %164 = vector.broadcast %cst_52 : f32 to vector<8x128xf32>
    %165 = arith.addf %164, %163 : vector<8x128xf32>
    %166 = arith.divf %164, %165 : vector<8x128xf32>
    %167 = vector.extract_strided_slice %166 {offsets = [0, 0], sizes = [8, 64], strides = [1, 1]} : vector<8x128xf32> to vector<8x64xf32>
    %168 = vector.extract_strided_slice %166 {offsets = [0, 64], sizes = [8, 64], strides = [1, 1]} : vector<8x128xf32> to vector<8x64xf32>
    %169 = vector.extract_strided_slice %157 {offsets = [0, 128], sizes = [8, 64], strides = [1, 1]} : vector<8x192xf32> to vector<8x64xf32>
    %170 = vector.extract_strided_slice %158 {offsets = [0, 128], sizes = [8, 64], strides = [1, 1]} : vector<8x192xf32> to vector<8x64xf32>
    %171 = arith.addf %170, %11 : vector<8x64xf32>
    %172 = arith.mulf %167, %171 : vector<8x64xf32>
    %173 = arith.addf %169, %172 : vector<8x64xf32>
    %174 = math.tanh %173 : vector<8x64xf32>
    %cst_53 = arith.constant 1.000000e+00 : f32
    %175 = vector.broadcast %cst_53 : f32 to vector<8x64xf32>
    %176 = arith.subf %175, %168 : vector<8x64xf32>
    %177 = arith.mulf %176, %174 : vector<8x64xf32>
    %178 = arith.mulf %168, %155 : vector<8x64xf32>
    %179 = arith.addf %177, %178 : vector<8x64xf32>
    %c48_54 = arith.constant 48 : index
    %c0_55 = arith.constant 0 : index
    %180 = vector.load %arg11[%c48_54, %c0_55] : memref<64x64xf32, #tpu.memory_space<vmem>>, vector<8x64xf32>
    tpu.vector_store %arg11[%c48_54, %c0_55], %179 {strides = array<i32>} : memref<64x64xf32, #tpu.memory_space<vmem>>, vector<8x64xf32>,
    %c56 = arith.constant 56 : index
    %c0_56 = arith.constant 0 : index
    %181 = vector.load %arg10[%c56, %c0_56] : memref<64x192xf32, #tpu.memory_space<vmem>>, vector<8x192xf32>
    %cst_57 = arith.constant dense<0.000000e+00> : vector<8x192xf32>
    %182 = tpu.matmul %179, %8, %cst_57 {dimension_numbers = #tpu.dot_dimension_numbers<[1], [0], [0], [1], [0, 0, 1, 1], [], []>, precision = #tpu.contract_precision<fp32>} : vector<8x64xf32>, vector<64x192xf32>, vector<8x192xf32> -> vector<8x192xf32>
    %183 = vector.extract_strided_slice %181 {offsets = [0, 0], sizes = [8, 128], strides = [1, 1]} : vector<8x192xf32> to vector<8x128xf32>
    %184 = vector.extract_strided_slice %182 {offsets = [0, 0], sizes = [8, 128], strides = [1, 1]} : vector<8x192xf32> to vector<8x128xf32>
    %185 = arith.addf %183, %184 : vector<8x128xf32>
    %186 = arith.negf %185 : vector<8x128xf32>
    %187 = math.exp %186 : vector<8x128xf32>
    %cst_58 = arith.constant 1.000000e+00 : f32
    %188 = vector.broadcast %cst_58 : f32 to vector<8x128xf32>
    %189 = arith.addf %188, %187 : vector<8x128xf32>
    %190 = arith.divf %188, %189 : vector<8x128xf32>
    %191 = vector.extract_strided_slice %190 {offsets = [0, 0], sizes = [8, 64], strides = [1, 1]} : vector<8x128xf32> to vector<8x64xf32>
    %192 = vector.extract_strided_slice %190 {offsets = [0, 64], sizes = [8, 64], strides = [1, 1]} : vector<8x128xf32> to vector<8x64xf32>
    %193 = vector.extract_strided_slice %181 {offsets = [0, 128], sizes = [8, 64], strides = [1, 1]} : vector<8x192xf32> to vector<8x64xf32>
    %194 = vector.extract_strided_slice %182 {offsets = [0, 128], sizes = [8, 64], strides = [1, 1]} : vector<8x192xf32> to vector<8x64xf32>
    %195 = arith.addf %194, %11 : vector<8x64xf32>
    %196 = arith.mulf %191, %195 : vector<8x64xf32>
    %197 = arith.addf %193, %196 : vector<8x64xf32>
    %198 = math.tanh %197 : vector<8x64xf32>
    %cst_59 = arith.constant 1.000000e+00 : f32
    %199 = vector.broadcast %cst_59 : f32 to vector<8x64xf32>
    %200 = arith.subf %199, %192 : vector<8x64xf32>
    %201 = arith.mulf %200, %198 : vector<8x64xf32>
    %202 = arith.mulf %192, %179 : vector<8x64xf32>
    %203 = arith.addf %201, %202 : vector<8x64xf32>
    %c56_60 = arith.constant 56 : index
    %c0_61 = arith.constant 0 : index
    %204 = vector.load %arg11[%c56_60, %c0_61] : memref<64x64xf32, #tpu.memory_space<vmem>>, vector<8x64xf32>
    tpu.vector_store %arg11[%c56_60, %c0_61], %203 {strides = array<i32>} : memref<64x64xf32, #tpu.memory_space<vmem>>, vector<8x64xf32>,
    %c0_62 = arith.constant 0 : index
    %c0_63 = arith.constant 0 : index
    %205 = vector.load %arg11[%c0_62, %c0_63] : memref<64x64xf32, #tpu.memory_space<vmem>>, vector<64x64xf32>
    %206 = vector.extract_strided_slice %205 {offsets = [0, 0], sizes = [8, 32], strides = [1, 1]} : vector<64x64xf32> to vector<8x32xf32>
    %207 = vector.extract_strided_slice %205 {offsets = [56, 32], sizes = [8, 32], strides = [1, 1]} : vector<64x64xf32> to vector<8x32xf32>
    %208 = tpu.concatenate %206, %207 in 1 : vector<8x32xf32>, vector<8x32xf32> -> vector<8x64xf32>
    %209 = vector.extract_strided_slice %205 {offsets = [8, 0], sizes = [8, 32], strides = [1, 1]} : vector<64x64xf32> to vector<8x32xf32>
    %210 = vector.extract_strided_slice %205 {offsets = [48, 32], sizes = [8, 32], strides = [1, 1]} : vector<64x64xf32> to vector<8x32xf32>
    %211 = tpu.concatenate %209, %210 in 1 : vector<8x32xf32>, vector<8x32xf32> -> vector<8x64xf32>
    %212 = vector.extract_strided_slice %205 {offsets = [16, 0], sizes = [8, 32], strides = [1, 1]} : vector<64x64xf32> to vector<8x32xf32>
    %213 = vector.extract_strided_slice %205 {offsets = [40, 32], sizes = [8, 32], strides = [1, 1]} : vector<64x64xf32> to vector<8x32xf32>
    %214 = tpu.concatenate %212, %213 in 1 : vector<8x32xf32>, vector<8x32xf32> -> vector<8x64xf32>
    %215 = vector.extract_strided_slice %205 {offsets = [24, 0], sizes = [8, 32], strides = [1, 1]} : vector<64x64xf32> to vector<8x32xf32>
    %216 = vector.extract_strided_slice %205 {offsets = [32, 32], sizes = [8, 32], strides = [1, 1]} : vector<64x64xf32> to vector<8x32xf32>
    %217 = tpu.concatenate %215, %216 in 1 : vector<8x32xf32>, vector<8x32xf32> -> vector<8x64xf32>
    %218 = vector.extract_strided_slice %205 {offsets = [32, 0], sizes = [8, 32], strides = [1, 1]} : vector<64x64xf32> to vector<8x32xf32>
    %219 = vector.extract_strided_slice %205 {offsets = [24, 32], sizes = [8, 32], strides = [1, 1]} : vector<64x64xf32> to vector<8x32xf32>
    %220 = tpu.concatenate %218, %219 in 1 : vector<8x32xf32>, vector<8x32xf32> -> vector<8x64xf32>
    %221 = vector.extract_strided_slice %205 {offsets = [40, 0], sizes = [8, 32], strides = [1, 1]} : vector<64x64xf32> to vector<8x32xf32>
    %222 = vector.extract_strided_slice %205 {offsets = [16, 32], sizes = [8, 32], strides = [1, 1]} : vector<64x64xf32> to vector<8x32xf32>
    %223 = tpu.concatenate %221, %222 in 1 : vector<8x32xf32>, vector<8x32xf32> -> vector<8x64xf32>
    %224 = vector.extract_strided_slice %205 {offsets = [48, 0], sizes = [8, 32], strides = [1, 1]} : vector<64x64xf32> to vector<8x32xf32>
    %225 = vector.extract_strided_slice %205 {offsets = [8, 32], sizes = [8, 32], strides = [1, 1]} : vector<64x64xf32> to vector<8x32xf32>
    %226 = tpu.concatenate %224, %225 in 1 : vector<8x32xf32>, vector<8x32xf32> -> vector<8x64xf32>
    %227 = vector.extract_strided_slice %205 {offsets = [56, 0], sizes = [8, 32], strides = [1, 1]} : vector<64x64xf32> to vector<8x32xf32>
    %228 = vector.extract_strided_slice %205 {offsets = [0, 32], sizes = [8, 32], strides = [1, 1]} : vector<64x64xf32> to vector<8x32xf32>
    %229 = tpu.concatenate %227, %228 in 1 : vector<8x32xf32>, vector<8x32xf32> -> vector<8x64xf32>
    %230 = tpu.concatenate %208, %211, %214, %217, %220, %223, %226, %229 in 0 : vector<8x64xf32>, vector<8x64xf32>, vector<8x64xf32>, vector<8x64xf32>, vector<8x64xf32>, vector<8x64xf32>, vector<8x64xf32>, vector<8x64xf32> -> vector<64x64xf32>
    %c0_64 = arith.constant 0 : index
    %c0_65 = arith.constant 0 : index
    %231 = vector.load %arg6[%c0_64, %c0_65] : memref<64x64xf32, #tpu.memory_space<vmem>>, vector<64x64xf32>
    %cst_66 = arith.constant dense<0.000000e+00> : vector<64x64xf32>
    %232 = tpu.matmul %230, %231, %cst_66 {dimension_numbers = #tpu.dot_dimension_numbers<[1], [0], [0], [1], [0, 0, 1, 1], [], []>, precision = #tpu.contract_precision<fp32>} : vector<64x64xf32>, vector<64x64xf32>, vector<64x64xf32> -> vector<64x64xf32>
    %c0_67 = arith.constant 0 : index
    %c0_68 = arith.constant 0 : index
    %233 = vector.load %arg7[%c0_67, %c0_68] : memref<1x64xf32, #tpu.memory_space<vmem>>, vector<1x64xf32>
    %234 = vector.broadcast %233 : vector<1x64xf32> to vector<64x64xf32>
    %235 = arith.addf %232, %234 : vector<64x64xf32>
    %236 = math.tanh %235 : vector<64x64xf32>
    %c0_69 = arith.constant 0 : index
    %c0_70 = arith.constant 0 : index
    %237 = vector.load %arg8[%c0_69, %c0_70] : memref<1x64xf32, #tpu.memory_space<vmem>>, vector<1x64xf32>
    %238 = vector.broadcast %237 : vector<1x64xf32> to vector<64x64xf32>
    %239 = arith.mulf %236, %238 : vector<64x64xf32>
    %cst_71 = arith.constant dense<0.000000e+00> : vector<64xf32>
    %240 = vector.multi_reduction <add>, %239, %cst_71 [1] : vector<64x64xf32> to vector<64xf32>
    %241 = vector.shape_cast %240 : vector<64xf32> to vector<64x1xf32>
    %242 = vector.extract_strided_slice %241 {offsets = [0, 0], sizes = [8, 1], strides = [1, 1]} : vector<64x1xf32> to vector<8x1xf32>
    %243 = vector.extract_strided_slice %241 {offsets = [8, 0], sizes = [8, 1], strides = [1, 1]} : vector<64x1xf32> to vector<8x1xf32>
    %244 = vector.extract_strided_slice %241 {offsets = [16, 0], sizes = [8, 1], strides = [1, 1]} : vector<64x1xf32> to vector<8x1xf32>
    %245 = vector.extract_strided_slice %241 {offsets = [24, 0], sizes = [8, 1], strides = [1, 1]} : vector<64x1xf32> to vector<8x1xf32>
    %246 = vector.extract_strided_slice %241 {offsets = [32, 0], sizes = [8, 1], strides = [1, 1]} : vector<64x1xf32> to vector<8x1xf32>
    %247 = vector.extract_strided_slice %241 {offsets = [40, 0], sizes = [8, 1], strides = [1, 1]} : vector<64x1xf32> to vector<8x1xf32>
    %248 = vector.extract_strided_slice %241 {offsets = [48, 0], sizes = [8, 1], strides = [1, 1]} : vector<64x1xf32> to vector<8x1xf32>
    %249 = vector.extract_strided_slice %241 {offsets = [56, 0], sizes = [8, 1], strides = [1, 1]} : vector<64x1xf32> to vector<8x1xf32>
    %250 = arith.maximumf %242, %243 : vector<8x1xf32>
    %251 = arith.maximumf %250, %244 : vector<8x1xf32>
    %252 = arith.maximumf %251, %245 : vector<8x1xf32>
    %253 = arith.maximumf %252, %246 : vector<8x1xf32>
    %254 = arith.maximumf %253, %247 : vector<8x1xf32>
    %255 = arith.maximumf %254, %248 : vector<8x1xf32>
    %256 = arith.maximumf %255, %249 : vector<8x1xf32>
    %257 = arith.subf %242, %256 : vector<8x1xf32>
    %258 = math.exp %257 : vector<8x1xf32>
    %259 = arith.subf %243, %256 : vector<8x1xf32>
    %260 = math.exp %259 : vector<8x1xf32>
    %261 = arith.subf %244, %256 : vector<8x1xf32>
    %262 = math.exp %261 : vector<8x1xf32>
    %263 = arith.subf %245, %256 : vector<8x1xf32>
    %264 = math.exp %263 : vector<8x1xf32>
    %265 = arith.subf %246, %256 : vector<8x1xf32>
    %266 = math.exp %265 : vector<8x1xf32>
    %267 = arith.subf %247, %256 : vector<8x1xf32>
    %268 = math.exp %267 : vector<8x1xf32>
    %269 = arith.subf %248, %256 : vector<8x1xf32>
    %270 = math.exp %269 : vector<8x1xf32>
    %271 = arith.subf %249, %256 : vector<8x1xf32>
    %272 = math.exp %271 : vector<8x1xf32>
    %273 = arith.addf %258, %260 : vector<8x1xf32>
    %274 = arith.addf %273, %262 : vector<8x1xf32>
    %275 = arith.addf %274, %264 : vector<8x1xf32>
    %276 = arith.addf %275, %266 : vector<8x1xf32>
    %277 = arith.addf %276, %268 : vector<8x1xf32>
    %278 = arith.addf %277, %270 : vector<8x1xf32>
    %279 = arith.addf %278, %272 : vector<8x1xf32>
    %cst_72 = arith.constant 0.000000e+00 : f32
    %280 = vector.broadcast %cst_72 : f32 to vector<8x64xf32>
    %281 = vector.extract_strided_slice %230 {offsets = [0, 0], sizes = [8, 64], strides = [1, 1]} : vector<64x64xf32> to vector<8x64xf32>
    %282 = vector.broadcast %258 : vector<8x1xf32> to vector<8x64xf32>
    %283 = arith.mulf %282, %281 : vector<8x64xf32>
    %284 = arith.addf %280, %283 : vector<8x64xf32>
    %285 = vector.extract_strided_slice %230 {offsets = [8, 0], sizes = [8, 64], strides = [1, 1]} : vector<64x64xf32> to vector<8x64xf32>
    %286 = vector.broadcast %260 : vector<8x1xf32> to vector<8x64xf32>
    %287 = arith.mulf %286, %285 : vector<8x64xf32>
    %288 = arith.addf %284, %287 : vector<8x64xf32>
    %289 = vector.extract_strided_slice %230 {offsets = [16, 0], sizes = [8, 64], strides = [1, 1]} : vector<64x64xf32> to vector<8x64xf32>
    %290 = vector.broadcast %262 : vector<8x1xf32> to vector<8x64xf32>
    %291 = arith.mulf %290, %289 : vector<8x64xf32>
    %292 = arith.addf %288, %291 : vector<8x64xf32>
    %293 = vector.extract_strided_slice %230 {offsets = [24, 0], sizes = [8, 64], strides = [1, 1]} : vector<64x64xf32> to vector<8x64xf32>
    %294 = vector.broadcast %264 : vector<8x1xf32> to vector<8x64xf32>
    %295 = arith.mulf %294, %293 : vector<8x64xf32>
    %296 = arith.addf %292, %295 : vector<8x64xf32>
    %297 = vector.extract_strided_slice %230 {offsets = [32, 0], sizes = [8, 64], strides = [1, 1]} : vector<64x64xf32> to vector<8x64xf32>
    %298 = vector.broadcast %266 : vector<8x1xf32> to vector<8x64xf32>
    %299 = arith.mulf %298, %297 : vector<8x64xf32>
    %300 = arith.addf %296, %299 : vector<8x64xf32>
    %301 = vector.extract_strided_slice %230 {offsets = [40, 0], sizes = [8, 64], strides = [1, 1]} : vector<64x64xf32> to vector<8x64xf32>
    %302 = vector.broadcast %268 : vector<8x1xf32> to vector<8x64xf32>
    %303 = arith.mulf %302, %301 : vector<8x64xf32>
    %304 = arith.addf %300, %303 : vector<8x64xf32>
    %305 = vector.extract_strided_slice %230 {offsets = [48, 0], sizes = [8, 64], strides = [1, 1]} : vector<64x64xf32> to vector<8x64xf32>
    %306 = vector.broadcast %270 : vector<8x1xf32> to vector<8x64xf32>
    %307 = arith.mulf %306, %305 : vector<8x64xf32>
    %308 = arith.addf %304, %307 : vector<8x64xf32>
    %309 = vector.extract_strided_slice %230 {offsets = [56, 0], sizes = [8, 64], strides = [1, 1]} : vector<64x64xf32> to vector<8x64xf32>
    %310 = vector.broadcast %272 : vector<8x1xf32> to vector<8x64xf32>
    %311 = arith.mulf %310, %309 : vector<8x64xf32>
    %312 = arith.addf %308, %311 : vector<8x64xf32>
    %313 = vector.broadcast %279 : vector<8x1xf32> to vector<8x64xf32>
    %314 = arith.divf %312, %313 : vector<8x64xf32>
    %c0_73 = arith.constant 0 : index
    %c0_74 = arith.constant 0 : index
    %315 = vector.load %arg9[%c0_73, %c0_74] : memref<8x64xf32, #tpu.memory_space<vmem>>, vector<8x64xf32>
    tpu.vector_store %arg9[%c0_73, %c0_74], %314 {strides = array<i32>} : memref<8x64xf32, #tpu.memory_space<vmem>>, vector<8x64xf32>,
    return
  }
  func.func @transform_0(%arg0: i32) -> (i32, i32, i32) {
    %c0_i32 = arith.constant 0 : i32
    %c0_i32_0 = arith.constant 0 : i32
    %c0_i32_1 = arith.constant 0 : i32
    return %arg0, %c0_i32, %c0_i32_0 : i32, i32, i32
  }
  func.func @transform_1(%arg0: i32) -> (i32, i32) {
    %c0_i32 = arith.constant 0 : i32
    %c0_i32_0 = arith.constant 0 : i32
    %c0_i32_1 = arith.constant 0 : i32
    return %c0_i32, %c0_i32_0 : i32, i32
  }
  func.func @transform_2(%arg0: i32) -> (i32, i32) {
    %c0_i32 = arith.constant 0 : i32
    %c0_i32_0 = arith.constant 0 : i32
    %c0_i32_1 = arith.constant 0 : i32
    return %c0_i32, %c0_i32_0 : i32, i32
  }
  func.func @transform_3(%arg0: i32) -> (i32, i32) {
    %c0_i32 = arith.constant 0 : i32
    %c0_i32_0 = arith.constant 0 : i32
    %c0_i32_1 = arith.constant 0 : i32
    return %c0_i32, %c0_i32_0 : i32, i32
  }
  func.func @transform_4(%arg0: i32) -> (i32, i32) {
    %c0_i32 = arith.constant 0 : i32
    %c0_i32_0 = arith.constant 0 : i32
    %c0_i32_1 = arith.constant 0 : i32
    return %c0_i32, %c0_i32_0 : i32, i32
  }
  func.func @transform_5(%arg0: i32) -> (i32, i32) {
    %c0_i32 = arith.constant 0 : i32
    %c0_i32_0 = arith.constant 0 : i32
    %c0_i32_1 = arith.constant 0 : i32
    return %c0_i32, %c0_i32_0 : i32, i32
  }
  func.func @transform_6(%arg0: i32) -> (i32, i32) {
    %c0_i32 = arith.constant 0 : i32
    %c0_i32_0 = arith.constant 0 : i32
    %c0_i32_1 = arith.constant 0 : i32
    return %c0_i32, %c0_i32_0 : i32, i32
  }
  func.func @transform_7(%arg0: i32) -> (i32, i32) {
    %c0_i32 = arith.constant 0 : i32
    %c0_i32_0 = arith.constant 0 : i32
    %c0_i32_1 = arith.constant 0 : i32
    return %c0_i32, %c0_i32_0 : i32, i32
  }
  func.func @transform_8(%arg0: i32) -> (i32, i32) {
    %c0_i32 = arith.constant 0 : i32
    %c0_i32_0 = arith.constant 0 : i32
    return %arg0, %c0_i32 : i32, i32
  }
}

</mosaic_0001>

<bundles_post_ra>
// kernel: word_level_rnn.1
= control target key start
LH: loop header
LB: loop body
LE: loop exit
PB: predicated region body
PF: predicated region fallthrough
CT: control target
= control target key end

     0   :  { %vm59_vm0 = vcmask 523264   ;;  %s5888_s16 = smov 64   ;;  %s7842_s1 = inlined_call_operand.vmem [shape: f32[64,192], index: 1, kind: input, shape index: {}]   ;;  %s7843_s0 = inlined_call_operand.vmem [shape: f32[1,64,64], index: 0, kind: input, shape index: {}]   ;;  %s7844_s2 = inlined_call_operand.vmem [shape: f32[64,192], index: 2, kind: input, shape index: {}]   ;;  %s7845_s3 = inlined_call_operand.vmem [shape: f32[1,192], index: 3, kind: input, shape index: {}]   ;;  %s7846_s4 = inlined_call_operand.vmem [shape: f32[1,64], index: 4, kind: input, shape index: {}]   ;;  %s7847_s5 = inlined_call_operand.vmem [shape: f32[64,64], index: 5, kind: input, shape index: {}]   ;;  %s7848_s6 = inlined_call_operand.vmem [shape: f32[1,64], index: 6, kind: input, shape index: {}]   ;;  %s7849_s7 = inlined_call_operand.vmem [shape: f32[1,64], index: 7, kind: input, shape index: {}]   ;;  %s7850_s8 = inlined_call_operand.vmem [shape: f32[8,64], index: 8, kind: output, shape index: {}]  }
   0x1   :  { %v51_v0 = vld [vmem:[%s7842_s1 + $0x70] sm:$0xff]  ;;  %v49_v1 = vld [vmem:[%s7842_s1 + $0x60] sm:$0xff]  ;;  %v34_v37 = vld [vmem:[%s7843_s0 + $0x28] sm:$0xff] }
   0x2   :  { %v47_v2 = vld [vmem:[%s7842_s1 + $0x50] sm:$0xff]  ;;  %v5943_v3 = vand.u32 4294901760, %v51_v0  ;;  %v5945_v4 = vand.u32 4294901760, %v49_v1  ;;  %v45_v6 = vld [vmem:[%s7842_s1 + $0x40] sm:$0xff]  ;;  %v30_v46 = vld [vmem:[%s7843_s0 + $0x8] sm:$0xff]  ;;  %v76_v49 = vsel %vm59_vm0, %v34_v37, 0 }
   0x3   :  { %v5947_v5 = vand.u32 4294901760, %v47_v2  ;;  %v43_v7 = vld [vmem:[%s7842_s1 + $0x30] sm:$0xff]  ;;  %v41_v8 = vld [vmem:[%s7842_s1 + $0x20] sm:$0xff]  ;;  %v5958_v9 = vand.u32 4294901760, %v45_v6  ;;  %v6060_v53 = vand.u32 4294901760, %v76_v49  ;;  %v64_v59 = vsel %vm59_vm0, %v30_v46, 0 }
   0x4   :  { %v5960_v10 = vand.u32 4294901760, %v43_v7  ;;  %v5962_v11 = vand.u32 4294901760, %v41_v8  ;;  %v39_v12 = vld [vmem:[%s7842_s1 + $0x10] sm:$0xff]  ;;  %v37_v13 = vld [vmem:[%s7842_s1] sm:$0xff]  ;;  %5782 = vmatpush.msra.mxu2 %v5943_v3  ;;  %v5975_v15 = vsub.f32 %v51_v0, %v5943_v3  ;;  %v5978_v16 = vsub.f32 %v49_v1, %v5945_v4  ;;  %93 = vmatpush.msra.mxu0 %v5943_v3  ;;  %v36_v0 = vld [vmem:[%s7843_s0 + $0x38] sm:$0xff] }
   0x5   :  { %v33_v14 = vld [vmem:[%s7843_s0 + $0x20] sm:$0xff]  ;;  %v5980_v17 = vand.u32 4294901760, %v39_v12  ;;  %v5983_v18 = vsub.f32 %v47_v2, %v5947_v5  ;;  %v5986_v19 = vand.u32 4294901760, %v37_v13  ;;  %v5989_v20 = vsub.f32 %v45_v6, %v5958_v9  ;;  %v35_v45 = vld [vmem:[%s7843_s0 + $0x30] sm:$0xff] }
   0x6   :  { %v73_v21 = vsel %vm59_vm0, %v33_v14, 0  ;;  %v5993_v22 = vsub.f32 %v43_v7, %v5960_v10  ;;  %5783 = vmatpush.msra.mxu2 %v5945_v4  ;;  %v183_v23 = vand.u32 4294901760, %v5975_v15  ;;  %v189_v24 = vand.u32 4294901760, %v5978_v16  ;;  %95 = vmatpush.msra.mxu0 %v5945_v4  ;;  %v29_v38 = vld [vmem:[%s7843_s0] sm:$0xff]  ;;  %v31_v55 = vld [vmem:[%s7843_s0 + $0x10] sm:$0xff] }
   0x7   :  { %v195_v25 = vand.u32 4294901760, %v5983_v18  ;;  %v5999_v26 = vand.u32 4294901760, %v73_v21  ;;  %v201_v27 = vand.u32 4294901760, %v5989_v20  ;;  %v6005_v29 = vsub.f32 %v41_v8, %v5962_v11 }
   0x8   :  { %v207_v28 = vand.u32 4294901760, %v5993_v22  ;;  %v6008_v30 = vsub.f32 %v39_v12, %v5980_v17  ;;  %5784 = vmatpush.msra.mxu2 %v5947_v5  ;;  %v184_v31 = vsub.f32 %v5975_v15, %v183_v23  ;;  %v190_v32 = vsub.f32 %v5978_v16, %v189_v24  ;;  %97 = vmatpush.msra.mxu0 %v5947_v5 }
   0x9   :  { %v196_v33 = vsub.f32 %v5983_v18, %v195_v25  ;;  %v6021_v34 = vsub.f32 %v73_v21, %v5999_v26  ;;  %v202_v35 = vsub.f32 %v5989_v20, %v201_v27  ;;  %v213_v36 = vand.u32 4294901760, %v6005_v29 }
   0xa   :  { %5785 = vmatpush.msra.mxu2 %v5958_v9  ;;  %v185_v39 = vand.u32 4294901760, %v184_v31  ;;  %v191_v40 = vand.u32 4294901760, %v190_v32  ;;  %v208_v43 = vsub.f32 %v5993_v22, %v207_v28  ;;  %v219_v44 = vand.u32 4294901760, %v6008_v30  ;;  %99 = vmatpush.msra.mxu0 %v5958_v9 }
   0xb   :  { %v6036_v41 = vand.u32 4294901760, %v6021_v34  ;;  %v197_v42 = vand.u32 4294901760, %v196_v33  ;;  %v6053_v48 = vsub.f32 %v37_v13, %v5986_v19  ;;  %v61_v50 = vsel %vm59_vm0, %v29_v38, 0  ;;  %v32_v38 = vld [vmem:[%s7843_s0 + $0x18] sm:$0xff] }
   0xc   :  { %5786 = vmatpush.msra.mxu2 %v5960_v10  ;;  %5790 = vmatpush.msra.mxu3 %v185_v39  ;;  %v203_v51 = vand.u32 4294901760, %v202_v35  ;;  %v214_v52 = vsub.f32 %v6005_v29, %v213_v36  ;;  %v6063_v54 = vand.u32 4294901760, %v61_v50  ;;  %v79_v58 = vsel %vm59_vm0, %v35_v45, 0 }
   0xd   :  { %v143_v47 = vsub.f32 %v6021_v34, %v6036_v41  ;;  %186 = vmatpush.msra.mxu1 %v185_v39  ;;  %101 = vmatpush.msra.mxu0 %v5960_v10  ;;  %v225_v57 = vand.u32 4294901760, %v6053_v48  ;;  %v6075_v60 = vsub.f32 %v76_v49, %v6060_v53  ;;  %v6081_v62 = vand.u32 4294901760, %v79_v58 }
   0xe   :  { %5787 = vmatpush.msra.mxu2 %v5962_v11  ;;  %5791 = vmatpush.msra.mxu3 %v191_v40  ;;  %v6079_v61 = vsub.f32 %v61_v50, %v6063_v54  ;;  %v6083_v63 = vand.u32 4294901760, %v64_v59  ;;  %v209_v1 = vand.u32 4294901760, %v208_v43  ;;  %v220_v2 = vsub.f32 %v6008_v30, %v219_v44 }
   0xf   :  { %v6069_v56 = vand.u32 4294901760, %v143_v47  ;;  %192 = vmatpush.msra.mxu1 %v191_v40  ;;  %103 = vmatpush.msra.mxu0 %v5962_v11  ;;  %v67_v6 = vsel %vm59_vm0, %v31_v55, 0  ;;  %v6094_v7 = vand.u32 4294901760, %v6075_v60  ;;  %v215_v13 = vand.u32 4294901760, %v214_v52 }
  0x10   :  { %5788 = vmatpush.msra.mxu2 %v5980_v17  ;;  %5792 = vmatpush.msra.mxu3 %v197_v42  ;;  %v6098_v8 = vand.u32 4294901760, %v6079_v61  ;;  %v6101_v12 = vsub.f32 %v64_v59, %v6083_v63  ;;  %v226_v14 = vsub.f32 %v6053_v48, %v225_v57  ;;  %v6108_v21 = vsub.f32 %v79_v58, %v6081_v62 }
  0x11   :  { %198 = vmatpush.msra.mxu1 %v197_v42  ;;  %105 = vmatpush.msra.mxu0 %v5980_v17  ;;  %v82_v31 = vsel %vm59_vm0, %v36_v0, 0  ;;  %v151_v32 = vsub.f32 %v6075_v60, %v6094_v7  ;;  %v6119_v37 = vand.u32 4294901760, %v67_v6  ;;  %v221_v39 = vand.u32 4294901760, %v220_v2  ;;  %v52_v42 = vld [vmem:[%s7842_s1 + $0x78] sm:$0xff] }
  0x12   :  { %5789 = vmatpush.msra.mxu2 %v5986_v19  ;;  %5793 = vmatpush.msra.mxu3 %v203_v51  ;;  %v111_v33 = vsub.f32 %v6079_v61, %v6098_v8  ;;  %v6117_v35 = vand.u32 4294901760, %v6101_v12  ;;  %v227_v43 = vand.u32 4294901760, %v226_v14  ;;  %v6132_v45 = vand.u32 4294901760, %v82_v31 }
  0x13   :  { %145 = vmatmul.f32.vlgmr.msra.gmra.mxu2 %v6069_v56  ;;  %204 = vmatpush.msra.mxu1 %v203_v51  ;;  %v70_v46 = vsel %vm59_vm0, %v32_v38, 0  ;;  %v6135_v47 = vand.u32 4294901760, %v151_v32  ;;  %v6139_v49 = vand.u32 4294901760, %v6108_v21  ;;  %v6144_v51 = vsub.f32 %v67_v6, %v6119_v37 }
  0x14   :  { %5794 = vmatpush.msra.mxu3 %v209_v1  ;;  %272 = vmatpush.msrb.mxu2 %v5975_v15  ;;  %v6126_v40 = vand.u32 4294901760, %v111_v33  ;;  %v119_v50 = vsub.f32 %v6101_v12, %v6117_v35  ;;  %v6147_v52 = vand.u32 4294901760, %v52_v42  ;;  %v6152_v55 = vand.u32 4294901760, %v70_v46 }
  0x15   :  { %210 = vmatpush.msra.mxu1 %v209_v1  ;;  %107 = vmatpush.msra.mxu0 %v5986_v19  ;;  %v159_v58 = vsub.f32 %v6108_v21, %v6139_v49  ;;  %v6161_v0 = vsub.f32 %v82_v31, %v6132_v45  ;;  %v6164_v15 = vand.u32 4294901760, %v6144_v51  ;;  %v50_v1 = vld [vmem:[%s7842_s1 + $0x68] sm:$0xff] }
  0x16   :  { %5795 = vmatpush.msra.mxu3 %v215_v13  ;;  %275 = vmatpush.msrb.mxu2 %v5978_v16  ;;  %v6158_v59 = vand.u32 4294901760, %v119_v50  ;;  %v6179_v2 = vsub.f32 %v70_v46, %v6152_v55  ;;  %v6190_v31 = vand.u32 4294901760, %v50_v1 }
  0x17   :  { %216 = vmatpush.msra.mxu1 %v215_v13  ;;  %113 = vmatmul.f32.vlgmr.msra.gmra.mxu0 %v6126_v40  ;;  %v6181_v6 = vand.u32 4294901760, %v159_v58  ;;  %v6185_v13 = vand.u32 4294901760, %v6161_v0  ;;  %v127_v14 = vsub.f32 %v6144_v51, %v6164_v15 }
  0x18   :  { %5796 = vmatpush.msra.mxu3 %v221_v39  ;;  %278 = vmatpush.msrb.mxu2 %v5983_v18  ;;  %v6210_v33 = vsub.f32 %v50_v1, %v6190_v31  ;;  %v48_v18 = vld [vmem:[%s7842_s1 + $0x58] sm:$0xff] }
  0x19   :  { %222 = vmatpush.msra.mxu1 %v221_v39  ;;  %419 = vmatpush.msrb.mxu0 %v183_v23  ;;  %v6168_v23 = vsub.f32 %v52_v42, %v6147_v52  ;;  %v6204_v32 = vand.u32 4294901760, %v127_v14 }
  0x1a   :  { %5797 = vmatpush.msra.mxu3 %v227_v43  ;;  %281 = vmatpush.msrb.mxu2 %v5989_v20 }
  0x1b   :  { %153 = vmatmul.f32.gmra.mxu2 %v6135_v47  ;;  %246 = vmatmul.f32.vlgmr.msra.gmra.mxu3 %v5999_v26  ;;  %v637_v16 = vand.u32 4294901760, %v6168_v23 }
  0x1c   :  { %344 = vmatpush.msrb.mxu3 %v5943_v3  ;;  %228 = vmatpush.msra.mxu1 %v227_v43  ;;  %v6235_v43 = vand.u32 4294901760, %v48_v18 }
  0x1d   :  { %230 = vmatmul.f32.vlgmr.msra.gmra.mxu1 %v6063_v54  ;;  %284 = vmatpush.msrb.mxu2 %v5993_v22 }
  0x1e   :  { %346 = vmatpush.msrb.mxu3 %v5945_v4  ;;  %423 = vmatpush.msrb.mxu0 %v189_v24  ;;  %v167_v24 = vsub.f32 %v6161_v0, %v6185_v13 }
  0x1f   :  { %121 = vmatmul.f32.gmra.mxu0 %v6158_v59  ;;  %287 = vmatpush.msrb.mxu2 %v6005_v29 }
  0x20   :  { %348 = vmatpush.msrb.mxu3 %v5947_v5  ;;  %490 = vmatpush.msrb.mxu1 %v5943_v3  ;;  %v6207_v3 = vand.u32 4294901760, %v6179_v2  ;;  %v6226_v38 = vand.u32 4294901760, %v167_v24 }
  0x21   :  { %290 = vmatpush.msrb.mxu2 %v6008_v30  ;;  %427 = vmatpush.msrb.mxu0 %v195_v25  ;;  %v643_v25 = vand.u32 4294901760, %v6210_v33  ;;  %v44_v30 = vld [vmem:[%s7842_s1 + $0x38] sm:$0xff] }
  0x22   :  { %350 = vmatpush.msrb.mxu3 %v5958_v9  ;;  %492 = vmatpush.msrb.mxu1 %v5945_v4  ;;  %v638_v4 = vsub.f32 %v6168_v23, %v637_v16  ;;  %v135_v39 = vsub.f32 %v6179_v2, %v6207_v3 }
  0x23   :  { %161 = vmatmul.f32.gmra.mxu2 %v6181_v6  ;;  %250 = vmatmul.f32.gmra.mxu3 %v6060_v53  ;;  %v644_v42 = vsub.f32 %v6210_v33, %v643_v25 }
  0x24   :  { %352 = vmatpush.msrb.mxu3 %v5960_v10  ;;  %293 = vmatpush.msrb.mxu2 %v6053_v48  ;;  %v639_v46 = vand.u32 4294901760, %v638_v4  ;;  %v6247_v20 = vand.u32 4294901760, %v135_v39  ;;  %v40_v4 = vld [vmem:[%s7842_s1 + $0x18] sm:$0xff] }
  0x25   :  { %234 = vmatmul.f32.gmra.mxu1 %v6083_v63  ;;  %431 = vmatpush.msrb.mxu0 %v201_v27  ;;  %v6250_v27 = vsub.f32 %v48_v18, %v6235_v43  ;;  %v558_v18 = vand.u32 4294901760, %v40_v4 }
  0x26   :  { %547 = vmatpush.msra.mxu2 %v6147_v52  ;;  %354 = vmatpush.msrb.mxu3 %v5962_v11 }
  0x27   :  { %129 = vmatmul.f32.gmra.mxu0 %v6204_v32  ;;  %494 = vmatpush.msrb.mxu1 %v5947_v5  ;;  %v645_v5 = vand.u32 4294901760, %v644_v42  ;;  %v649_v22 = vand.u32 4294901760, %v6250_v27 }
  0x28   :  { %356 = vmatpush.msrb.mxu3 %v5980_v17  ;;  %435 = vmatpush.msrb.mxu0 %v207_v28 }
  0x29   :  { %496 = vmatpush.msrb.mxu1 %v5958_v9  ;;  %549 = vmatpush.msra.mxu2 %v6190_v31  ;;  %v46_v9 = vld [vmem:[%s7842_s1 + $0x48] sm:$0xff] }
  0x2a   :  { %358 = vmatpush.msrb.mxu3 %v5986_v19  ;;  %439 = vmatpush.msrb.mxu0 %v213_v36  ;;  %v6260_v28 = vand.u32 4294901760, %v46_v9 }
  0x2b   :  { %169 = vmatmul.f32.gmra.mxu2 %v6226_v38  ;;  %254 = vmatmul.f32.gmra.mxu3 %v6081_v62 }
  0x2c   :  { %640 = vmatpush.msra.mxu3 %v639_v46  ;;  %498 = vmatpush.msrb.mxu1 %v5960_v10  ;;  %v650_v10 = vsub.f32 %v6250_v27, %v649_v22 }
  0x2d   :  { %238 = vmatmul.f32.gmra.mxu1 %v6119_v37  ;;  %443 = vmatpush.msrb.mxu0 %v219_v44 }
  0x2e   :  { %500 = vmatpush.msrb.mxu1 %v5962_v11  ;;  %646 = vmatpush.msra.mxu3 %v645_v5  ;;  %v651_v29 = vand.u32 4294901760, %v650_v10  ;;  %v6277_v11 = vsub.f32 %v46_v9, %v6260_v28  ;;  %v672_v5 = vsub.f32 %v40_v4, %v558_v18  ;;  %v38_v9 = vld [vmem:[%s7842_s1 + $0x8] sm:$0xff] }
  0x2f   :  { %137 = vmatmul.f32.gmra.mxu0 %v6247_v20  ;;  %551 = vmatpush.msra.mxu2 %v6235_v43  ;;  %v560_v10 = vand.u32 4294901760, %v38_v9 }
  0x30   :  { %447 = vmatpush.msrb.mxu0 %v225_v57  ;;  %502 = vmatpush.msrb.mxu1 %v5980_v17  ;;  %v6282_v17 = vand.u32 4294901760, %v44_v30  ;;  %v42_v57 = vld [vmem:[%s7842_s1 + $0x28] sm:$0xff] }
  0x31   :  { %553 = vmatpush.msra.mxu2 %v6260_v28  ;;  %652 = vmatpush.msra.mxu3 %v651_v29  ;;  %v6303_v50 = vand.u32 4294901760, %v42_v57  ;;  %v673_v29 = vand.u32 4294901760, %v672_v5 }
  0x32   :  { %726 = vmatpush.msra.mxu0 %v6168_v23  ;;  %504 = vmatpush.msrb.mxu1 %v5986_v19  ;;  %v655_v19 = vand.u32 4294901760, %v6277_v11  ;;  %v660_v48 = vsub.f32 %v44_v30, %v6282_v17 }
  0x33   :  { %258 = vmatmul.f32.gmra.mxu3 %v6132_v45  ;;  %296 = vmatmul.f32.vlgmr.msrb.gmra.mxu2 %v6079_v61  ;;  %v666_v24 = vsub.f32 %v42_v57, %v6303_v50  ;;  %v674_v30 = vsub.f32 %v672_v5, %v673_v29 }
  0x34   :  { %729 = vmatpush.msra.mxu0 %v6210_v33  ;;  %555 = vmatpush.msra.mxu2 %v6282_v17  ;;  %v656_v36 = vsub.f32 %v6277_v11, %v655_v19  ;;  %v661_v58 = vand.u32 4294901760, %v660_v48 }
  0x35   :  { %242 = vmatmul.f32.gmra.mxu1 %v6152_v55  ;;  %v667_v39 = vand.u32 4294901760, %v666_v24 }
  0x36   :  { %798 = vmatpush.msra.mxu1 %v6147_v52  ;;  %732 = vmatpush.msra.mxu0 %v6250_v27  ;;  %v657_v44 = vand.u32 4294901760, %v656_v36  ;;  %v662_v1 = vsub.f32 %v660_v48, %v661_v58  ;;  %v675_v36 = vand.u32 4294901760, %v674_v30 }
  0x37   :  { %449 = vmatmul.f32.vlgmr.msrb.gmra.mxu0 %v6063_v54  ;;  %557 = vmatpush.msra.mxu2 %v6303_v50  ;;  %v668_v42 = vsub.f32 %v666_v24, %v667_v39 }
  0x38   :  { %800 = vmatpush.msra.mxu1 %v6190_v31  ;;  %735 = vmatpush.msra.mxu0 %v6277_v11  ;;  %v663_v14 = vand.u32 4294901760, %v662_v1 }
  0x39   :  { %658 = vmatpush.msra.mxu3 %v657_v44  ;;  %559 = vmatpush.msra.mxu2 %v558_v18  ;;  %v669_v46 = vand.u32 4294901760, %v668_v42  ;;  %v678_v44 = vsub.f32 %v38_v9, %v560_v10 }
  0x3a   :  { %802 = vmatpush.msra.mxu1 %v6235_v43  ;;  %738 = vmatpush.msra.mxu0 %v660_v48 }
  0x3b   :  { %301 = vmatmul.f32.gmra.mxu2 %v6101_v12  ;;  %362 = vmatmul.f32.vlgmr.msrb.gmra.mxu3 %v6098_v8  ;;  %v679_v48 = vand.u32 4294901760, %v678_v44 }
  0x3c   :  { %804 = vmatpush.msra.mxu1 %v6260_v28  ;;  %664 = vmatpush.msra.mxu3 %v663_v14 }
  0x3d   :  { %506 = vmatmul.f32.vlgmr.msrb.gmra.mxu1 %v6063_v54  ;;  %741 = vmatpush.msra.mxu0 %v666_v24  ;;  %v680_v57 = vsub.f32 %v678_v44, %v679_v48 }
  0x3e   :  { %806 = vmatpush.msra.mxu1 %v6282_v17  ;;  %670 = vmatpush.msra.mxu3 %v669_v46 }
  0x3f   :  { %453 = vmatmul.f32.gmra.mxu0 %v6083_v63  ;;  %561 = vmatpush.msra.mxu2 %v560_v10  ;;  %v681_v23 = vand.u32 4294901760, %v680_v57 }
  0x40   :  { %808 = vmatpush.msra.mxu1 %v6303_v50  ;;  %744 = vmatpush.msra.mxu0 %v672_v5  ;;  %v1014_v5 = vld [vmem:[%s7844_s2 + $0x30] sm:$0xff] }
  0x41   :  { %873 = vmatpush.msrb.mxu2 %v637_v16  ;;  %676 = vmatpush.msra.mxu3 %v675_v36 }
  0x42   :  { %810 = vmatpush.msra.mxu1 %v558_v18  ;;  %747 = vmatpush.msra.mxu0 %v678_v44 }
  0x43   :  { %306 = vmatmul.f32.gmra.mxu2 %v6144_v51  ;;  %368 = vmatmul.f32.gmra.mxu3 %v6117_v35 }
  0x44   :  { %812 = vmatpush.msra.mxu1 %v560_v10  ;;  %877 = vmatpush.msrb.mxu2 %v643_v25 }
  0x45   :  { %510 = vmatmul.f32.gmra.mxu1 %v6083_v63  ;;  %682 = vmatpush.msra.mxu3 %v681_v23 }
  0x46   :  { %881 = vmatpush.msrb.mxu2 %v649_v22  ;;  %v6462_v22 = vld [vmem:[%s7845_s3] sm:$0x3] }
  0x47   :  { %457 = vmatmul.f32.gmra.mxu0 %v6119_v37  ;;  %944 = vmatpush.msrb.mxu3 %v6147_v52  ;;  %7946 = vst [vmem:[#allocation10_spill] sm:$0xff] %v6462_v22 }
  0x48   :  { %885 = vmatpush.msrb.mxu2 %v655_v19  ;;  %v1016_v19 = vld [vmem:[%s7844_s2 + $0x40] sm:$0xff] }
  0x49   :  { %946 = vmatpush.msrb.mxu3 %v6190_v31  ;;  %v6485_v1 = vand.u32 4294901760, %v1016_v19 }
  0x4a   :  { %889 = vmatpush.msrb.mxu2 %v661_v58 }
  0x4b   :  { %311 = vmatmul.f32.gmra.mxu2 %v6179_v2  ;;  %374 = vmatmul.f32.gmra.mxu3 %v6164_v15  ;;  %7948 = vst [vmem:[#allocation12_spill] sm:$0xff] %v6485_v1  ;;  %v6493_v24 = vsub.f32 %v1016_v19, %v6485_v1 }
  0x4c   :  { %893 = vmatpush.msrb.mxu2 %v667_v39  ;;  %948 = vmatpush.msrb.mxu3 %v6235_v43 }
  0x4d   :  { %514 = vmatmul.f32.gmra.mxu1 %v6119_v37  ;;  %7949 = vst [vmem:[#allocation13_spill] sm:$0xff] %v6493_v24  ;;  %v6502_v39 = vand.u32 4294901760, %v6493_v24 }
  0x4e   :  { %897 = vmatpush.msrb.mxu2 %v673_v29  ;;  %950 = vmatpush.msrb.mxu3 %v6260_v28 }
  0x4f   :  { %461 = vmatmul.f32.gmra.mxu0 %v6152_v55  ;;  %7950 = vst [vmem:[#allocation14_spill] sm:$0xff] %v6502_v39  ;;  %v1095_v46 = vsub.f32 %v6493_v24, %v6502_v39 }
  0x50   :  { %901 = vmatpush.msrb.mxu2 %v679_v48  ;;  %952 = vmatpush.msrb.mxu3 %v6282_v17  ;;  %v6476_v17 = vperm.slane %v6462_v22, 0 }
  0x51   :  { %v6510_v9 = vand.u32 4294901760, %v1095_v46 }
  0x52   :  { %954 = vmatpush.msrb.mxu3 %v6303_v50 }
  0x53   :  { %316 = vmatmul.f32.gmra.mxu2 %v6021_v34  ;;  %380 = vmatmul.f32.gmra.mxu3 %v6207_v3  ;;  %7951 = vst [vmem:[#allocation15_spill] sm:$0xff] %v6510_v9 }
  0x54   :  { %956 = vmatpush.msrb.mxu3 %v558_v18 }
  0x55   :  { %518 = vmatmul.f32.gmra.mxu1 %v6152_v55 }
  0x56   :  { %958 = vmatpush.msrb.mxu3 %v560_v10  ;;  %v6512_v10 = vand.u32 4294901760, %v1014_v5 }
  0x57   :  { %465 = vmatmul.f32.gmra.mxu0 %v5999_v26 }
  0x58   :  { %7952 = vst [vmem:[#allocation16_spill] sm:$0xff] %v6512_v10  ;;  %v6520_v44 = vsub.f32 %v1014_v5, %v6512_v10  ;;  %v1010_v5 = vld [vmem:[%s7844_s2 + $0x10] sm:$0xff] }
  0x5a   :  { %7953 = vst [vmem:[#allocation17_spill] sm:$0xff] %v6520_v44  ;;  %v6526_v23 = vand.u32 4294901760, %v6520_v44 }
  0x5b   :  { %321 = vmatmul.f32.gmra.mxu2 %v6075_v60  ;;  %386 = vmatmul.f32.gmra.mxu3 %v6036_v41 }
  0x5c   :  { %7954 = vst [vmem:[#allocation18_spill] sm:$0xff] %v6526_v23 }
  0x5d   :  { %522 = vmatmul.f32.gmra.mxu1 %v5999_v26 }
  0x5f   :  { %469 = vmatmul.f32.gmra.mxu0 %v6060_v53 }
  0x63   :  { %326 = vmatmul.f32.gmra.mxu2 %v6108_v21  ;;  %392 = vmatmul.f32.gmra.mxu3 %v6094_v7 }
  0x65   :  { %526 = vmatmul.f32.gmra.mxu1 %v6060_v53 }
  0x67   :  { %473 = vmatmul.f32.gmra.mxu0 %v6081_v62 }
  0x6b   :  { %331 = vmatmul.f32.gmra.mxu2 %v6161_v0  ;;  %398 = vmatmul.f32.gmra.mxu3 %v6139_v49 }
  0x6d   :  { %530 = vmatmul.f32.gmra.mxu1 %v6081_v62 }
  0x6f   :  { %477 = vmatmul.f32.gmra.mxu0 %v6132_v45 }
  0x73   :  { %404 = vmatmul.f32.gmra.mxu3 %v6185_v13  ;;  %567 = vmatmul.f32.vlgmr.msra.gmra.mxu2 %v6126_v40 }
  0x75   :  { %534 = vmatmul.f32.gmra.mxu1 %v6132_v45 }
  0x77   :  { %750 = vmatmul.f32.vlgmr.msra.gmra.mxu0 %v6079_v61 }
  0x7b   :  { %575 = vmatmul.f32.gmra.mxu2 %v6158_v59  ;;  %684 = vmatmul.f32.vlgmr.msra.gmra.mxu3 %v6063_v54 }
  0x7d   :  { %816 = vmatmul.f32.vlgmr.msra.gmra.mxu1 %v6098_v8 }
  0x7f   :  { %755 = vmatmul.f32.gmra.mxu0 %v6101_v12  ;;  %v1022_v12 = vld [vmem:[%s7844_s2 + $0x70] sm:$0xff] }
  0x80   :  { %v6385_v40 = vand.u32 4294901760, %v1022_v12 }
  0x82   :  { %1042 = vmatpush.msrb.mxu0 %v6385_v40  ;;  %1174 = vmatpush.msra.mxu3 %v6385_v40 }
  0x83   :  { %583 = vmatmul.f32.gmra.mxu2 %v6204_v32  ;;  %688 = vmatmul.f32.gmra.mxu3 %v6083_v63 }
  0x85   :  { %822 = vmatmul.f32.gmra.mxu1 %v6117_v35 }
  0x87   :  { %760 = vmatmul.f32.gmra.mxu0 %v6144_v51  ;;  %v6392_v51 = vsub.f32 %v1022_v12, %v6385_v40  ;;  %v1101_v12 = vsub.f32 %v6520_v44, %v6526_v23 }
  0x89   :  { %1137 = vmatpush.msra.mxu2 %v6392_v51 }
  0x8b   :  { %591 = vmatmul.f32.gmra.mxu2 %v6247_v20  ;;  %692 = vmatmul.f32.gmra.mxu3 %v6119_v37 }
  0x8d   :  { %828 = vmatmul.f32.gmra.mxu1 %v6164_v15  ;;  %v1020_v15 = vld [vmem:[%s7844_s2 + $0x60] sm:$0xff] }
  0x8e   :  { %v6415_v31 = vand.u32 4294901760, %v1020_v15 }
  0x8f   :  { %765 = vmatmul.f32.gmra.mxu0 %v6179_v2 }
  0x90   :  { %7941 = vst [vmem:[#allocation5_spill] sm:$0xff] %v6415_v31  ;;  %1044 = vmatpush.msrb.mxu0 %v6415_v31  ;;  %1176 = vmatpush.msra.mxu3 %v6415_v31 }
  0x93   :  { %599 = vmatmul.f32.gmra.mxu2 %v6069_v56  ;;  %696 = vmatmul.f32.gmra.mxu3 %v6152_v55 }
  0x94   :  { %v6374_v61 = vpop.f32.mrf.mxu0 }
  0x95   :  { %834 = vmatmul.f32.gmra.mxu1 %v6207_v3  ;;  %v115_v14 = vadd.f32 %v6374_v61, %v6476_v17 }
  0x96   :  { %v6377_v8 = vpop.f32.mrf.mxu2 }
  0x97   :  { %770 = vmatmul.f32.gmra.mxu0 %v6021_v34 }
  0x9a   :  { %v6383_v35 = vpop.f32.mrf.mxu1 }
  0x9b   :  { %607 = vmatmul.f32.gmra.mxu2 %v6135_v47  ;;  %700 = vmatmul.f32.gmra.mxu3 %v5999_v26  ;;  %v6403_v47 = vand.u32 4294901760, %v6392_v51  ;;  %v232_v42 = vadd.f32 %v6383_v35, %v115_v14 }
  0x9c   :  { %v6389_v56 = vpop.f32.mrf.mxu0 }
  0x9d   :  { %840 = vmatmul.f32.gmra.mxu1 %v6036_v41  ;;  %7940 = vst [vmem:[#allocation4_spill] sm:$0xff] %v6403_v47  ;;  %v1077_v59 = vsub.f32 %v6392_v51, %v6403_v47  ;;  %v123_v29 = vadd.f32 %v6389_v56, %v6476_v17  ;;  %v1012_v56 = vld [vmem:[%s7844_s2 + $0x20] sm:$0xff] }
  0x9e   :  { %v6397_v34 = vpop.f32.mrf.mxu2  ;;  %v6399_v52 = vpop.f32.mrf.mxu3 }
  0x9f   :  { %775 = vmatmul.f32.gmra.mxu0 %v6075_v60  ;;  %v6413_v41 = vand.u32 4294901760, %v1077_v59  ;;  %v6423_v60 = vsub.f32 %v1020_v15, %v6415_v31  ;;  %v6534_v15 = vand.u32 4294901760, %v1101_v12 }
  0xa1   :  { %1079 = vmatpush.msrb.mxu1 %v6413_v41  ;;  %7942 = vst [vmem:[#allocation6_spill] sm:$0xff] %v6423_v60  ;;  %1140 = vmatpush.msra.mxu2 %v6423_v60 }
  0xa2   :  { %v6411_v2 = vpop.f32.mrf.mxu1  ;;  %7955 = vst [vmem:[#allocation19_spill] sm:$0xff] %v6534_v15 }
  0xa3   :  { %615 = vmatmul.f32.gmra.mxu2 %v6181_v6  ;;  %704 = vmatmul.f32.gmra.mxu3 %v6060_v53  ;;  %v6434_v6 = vand.u32 4294901760, %v6423_v60  ;;  %v236_v61 = vadd.f32 %v6411_v2, %v123_v29  ;;  %v6560_v29 = vand.u32 4294901760, %v1010_v5 }
  0xa4   :  { %v6419_v16 = vpop.f32.mrf.mxu0 }
  0xa5   :  { %846 = vmatmul.f32.gmra.mxu1 %v6094_v7  ;;  %7943 = vst [vmem:[#allocation7_spill] sm:$0xff] %v6434_v6  ;;  %v1083_v33 = vsub.f32 %v6423_v60, %v6434_v6  ;;  %v1018_v7 = vld [vmem:[%s7844_s2 + $0x50] sm:$0xff] }
  0xa6   :  { %v6428_v32 = vpop.f32.mrf.mxu2  ;;  %v6430_v3 = vpop.f32.mrf.mxu3  ;;  %v6446_v20 = vand.u32 4294901760, %v1018_v7  ;;  %7960 = vst [vmem:[#allocation24_spill] sm:$0xff] %v6560_v29 }
  0xa7   :  { %780 = vmatmul.f32.gmra.mxu0 %v6108_v21  ;;  %v6444_v43 = vand.u32 4294901760, %v1083_v33  ;;  %v6536_v33 = vand.u32 4294901760, %v1012_v56 }
  0xa8   :  { %7944 = vst [vmem:[#allocation8_spill] sm:$0xff] %v6446_v20  ;;  %v6454_v21 = vsub.f32 %v1018_v7, %v6446_v20  ;;  %1046 = vmatpush.msrb.mxu0 %v6446_v20  ;;  %1178 = vmatpush.msra.mxu3 %v6446_v20  ;;  %v131_v7 = vadd.f32 %v6419_v16, %v6476_v17 }
  0xa9   :  { %1085 = vmatpush.msrb.mxu1 %v6444_v43  ;;  %7956 = vst [vmem:[#allocation20_spill] sm:$0xff] %v6536_v33  ;;  %v6546_v14 = vsub.f32 %v1012_v56, %v6536_v33 }
  0xaa   :  { %v6442_v25 = vpop.f32.mrf.mxu1  ;;  %7945 = vst [vmem:[#allocation9_spill] sm:$0xff] %v6454_v21  ;;  %1143 = vmatpush.msra.mxu2 %v6454_v21  ;;  %v6470_v11 = vand.u32 4294901760, %v6454_v21  ;;  %1048 = vmatpush.msrb.mxu0 %v6485_v1 }
  0xab   :  { %623 = vmatmul.f32.gmra.mxu2 %v6226_v38  ;;  %708 = vmatmul.f32.gmra.mxu3 %v6081_v62  ;;  %7958 = vst [vmem:[#allocation22_spill] sm:$0xff] %v6546_v14  ;;  %v6552_v16 = vand.u32 4294901760, %v6546_v14 }
  0xac   :  { %v6450_v27 = vpop.f32.mrf.mxu0  ;;  %7947 = vst [vmem:[#allocation11_spill] sm:$0xff] %v6470_v11  ;;  %1180 = vmatpush.msra.mxu3 %v6485_v1  ;;  %1146 = vmatpush.msra.mxu2 %v6493_v24 }
  0xad   :  { %852 = vmatmul.f32.gmra.mxu1 %v6139_v49  ;;  %v1089_v49 = vsub.f32 %v6454_v21, %v6470_v11  ;;  %1050 = vmatpush.msrb.mxu0 %v6512_v10  ;;  %7959 = vst [vmem:[#allocation23_spill] sm:$0xff] %v6552_v16  ;;  %v1107_v46 = vsub.f32 %v6546_v14, %v6552_v16 }
  0xae   :  { %v6464_v38 = vpop.f32.mrf.mxu2  ;;  %v6466_v28 = vpop.f32.mrf.mxu3  ;;  %1182 = vmatpush.msra.mxu3 %v6512_v10  ;;  %1149 = vmatpush.msra.mxu2 %v6520_v44 }
  0xaf   :  { %785 = vmatmul.f32.gmra.mxu0 %v6161_v0  ;;  %v6483_v58 = vand.u32 4294901760, %v1089_v49 }
  0xb0   :  { %1052 = vmatpush.msrb.mxu0 %v6536_v33  ;;  %1184 = vmatpush.msra.mxu3 %v6536_v33 }
  0xb1   :  { %1091 = vmatpush.msrb.mxu1 %v6483_v58  ;;  %1152 = vmatpush.msra.mxu2 %v6546_v14 }
  0xb2   :  { %v6481_v50 = vpop.f32.mrf.mxu1  ;;  %1054 = vmatpush.msrb.mxu0 %v6560_v29  ;;  %1186 = vmatpush.msra.mxu3 %v6560_v29 }
  0xb3   :  { %712 = vmatmul.f32.gmra.mxu3 %v6132_v45  ;;  %903 = vmatmul.f32.vlgmr.msrb.gmra.mxu2 %v6063_v54 }
  0xb4   :  { %v450_v0 = vpop.f32.mrf.mxu0  ;;  %1097 = vmatpush.msrb.mxu1 %v6510_v9 }
  0xb5   :  { %858 = vmatmul.f32.gmra.mxu1 %v6185_v13 }
  0xb6   :  { %v6498_v4 = vpop.f32.mrf.mxu3  ;;  %v297_v18 = vpop.f32.mrf.mxu2  ;;  %1103 = vmatpush.msrb.mxu1 %v6534_v15 }
  0xb7   :  { %v298_v30 = vadd.f32 %v297_v18, %v232_v42  ;;  %v240_v42 = vadd.f32 %v6442_v25, %v131_v7  ;;  %v1008_v25 = vld [vmem:[%s7844_s2] sm:$0xff] }
  0xba   :  { %v507_v13 = vpop.f32.mrf.mxu1 }
  0xbb   :  { %907 = vmatmul.f32.gmra.mxu2 %v6083_v63  ;;  %960 = vmatmul.f32.vlgmr.msrb.gmra.mxu3 %v6063_v54 }
  0xbc   :  { %v454_v36 = vpop.f32.mrf.mxu0 }
  0xbe   :  { %v302_v48 = vpop.f32.mrf.mxu2  ;;  %v363_v57 = vpop.f32.mrf.mxu3 }
  0xbf   :  { %v364_v54 = vadd.f32 %v363_v57, %v298_v30  ;;  %v303_v49 = vadd.f32 %v302_v48, %v236_v61  ;;  %v139_v30 = vadd.f32 %v6450_v27, %v6476_v17  ;;  %v6564_v57 = vand.u32 4294901760, %v1107_v46  ;;  %v1023_v61 = vld [vmem:[%s7844_s2 + $0x78] sm:$0xff] }
  0xc0   :  { %v6577_v27 = vand.u32 4294901760, %v1008_v25  ;;  %v6592_v7 = vand.u32 4294901760, %v1023_v61 }
  0xc1   :  { %v451_v35 = vadd.f32 %v450_v0, %v364_v54  ;;  %7961 = vst [vmem:[#allocation25_spill] sm:$0xff] %v6564_v57  ;;  %1109 = vmatpush.msrb.mxu1 %v6564_v57 }
  0xc2   :  { %v511_v59 = vpop.f32.mrf.mxu1  ;;  %7963 = vst [vmem:[#allocation27_spill] sm:$0xff] %v6577_v27  ;;  %1056 = vmatpush.msrb.mxu0 %v6577_v27  ;;  %1188 = vmatpush.msra.mxu3 %v6577_v27 }
  0xc3   :  { %v6540_v19 = vadd.f32 %v507_v13, %v451_v35  ;;  %911 = vmatmul.f32.gmra.mxu2 %v6119_v37  ;;  %964 = vmatmul.f32.gmra.mxu3 %v6083_v63  ;;  %v1021_v35 = vld [vmem:[%s7844_s2 + $0x68] sm:$0xff] }
  0xc4   :  { %v458_v2 = vpop.f32.mrf.mxu0  ;;  %1207 = vmatpush.msra.mxu0 %v6403_v47 }
  0xc5   :  { %7957 = vst [vmem:[#allocation21_spill] sm:$0xff] %v6540_v19 }
  0xc6   :  { %v307_v0 = vpop.f32.mrf.mxu2  ;;  %v369_v18 = vpop.f32.mrf.mxu3  ;;  %1211 = vmatpush.msra.mxu0 %v6434_v6 }
  0xc7   :  { %v370_v63 = vadd.f32 %v369_v18, %v303_v49  ;;  %v308_v54 = vadd.f32 %v307_v0, %v240_v42  ;;  %v1019_v18 = vld [vmem:[%s7844_s2 + $0x58] sm:$0xff]  ;;  %v244_v42 = vadd.f32 %v6481_v50, %v139_v30  ;;  %v1017_v30 = vld [vmem:[%s7844_s2 + $0x48] sm:$0xff] }
  0xc8   :  { %1215 = vmatpush.msra.mxu0 %v6470_v11 }
  0xc9   :  { %v455_v13 = vadd.f32 %v454_v36, %v370_v63  ;;  %v6575_v36 = vsub.f32 %v1010_v5, %v6560_v29 }
  0xca   :  { %v515_v48 = vpop.f32.mrf.mxu1  ;;  %1219 = vmatpush.msra.mxu0 %v6502_v39 }
  0xcb   :  { %v512_v12 = vadd.f32 %v511_v59, %v455_v13  ;;  %915 = vmatmul.f32.gmra.mxu2 %v6152_v55  ;;  %968 = vmatmul.f32.gmra.mxu3 %v6119_v37  ;;  %7962 = vst [vmem:[#allocation26_spill] sm:$0xff] %v6575_v36  ;;  %v6587_v37 = vand.u32 4294901760, %v6575_v36  ;;  %v6590_v59 = vsub.f32 %v1008_v25, %v6577_v27  ;;  %v6606_v13 = vand.u32 4294901760, %v1021_v35 }
  0xcc   :  { %v462_v56 = vpop.f32.mrf.mxu0  ;;  %1155 = vmatpush.msra.mxu2 %v6575_v36  ;;  %1223 = vmatpush.msra.mxu0 %v6526_v23 }
  0xcd   :  { %994 = vst [vmem:[#allocation2 + $0x10] sm:$0xff] %v512_v12  ;;  %v1113_v46 = vsub.f32 %v6575_v36, %v6587_v37  ;;  %v6604_v5 = vand.u32 4294901760, %v6590_v59 }
  0xce   :  { %7964 = vst [vmem:[#allocation28_spill] sm:$0xff] %v6587_v37  ;;  %v312_v49 = vpop.f32.mrf.mxu2  ;;  %v375_v0 = vpop.f32.mrf.mxu3  ;;  %1158 = vmatpush.msra.mxu2 %v6590_v59  ;;  %1227 = vmatpush.msra.mxu0 %v6552_v16 }
  0xcf   :  { %7965 = vst [vmem:[#allocation29_spill] sm:$0xff] %v6590_v59  ;;  %v376_v63 = vadd.f32 %v375_v0, %v308_v54  ;;  %v6610_v12 = vand.u32 4294901760, %v1113_v46  ;;  %v1119_v50 = vsub.f32 %v6590_v59, %v6604_v5  ;;  %v6617_v54 = vand.u32 4294901760, %v1019_v18  ;;  %v1015_v46 = vld [vmem:[%s7844_s2 + $0x38] sm:$0xff] }
  0xd0   :  { %7966 = vst [vmem:[#allocation30_spill] sm:$0xff] %v6604_v5  ;;  %1279 = vmatpush.msrb.mxu2 %v6592_v7  ;;  %v313_v19 = vadd.f32 %v312_v49, %v244_v42  ;;  %v6633_v59 = vand.u32 4294901760, %v1017_v30  ;;  %v1013_v49 = vld [vmem:[%s7844_s2 + $0x28] sm:$0xff]  ;;  %1231 = vmatpush.msra.mxu0 %v6587_v37 }
  0xd1   :  { %v459_v25 = vadd.f32 %v458_v2, %v376_v63  ;;  %7967 = vst [vmem:[#allocation31_spill] sm:$0xff] %v6610_v12  ;;  %v6623_v2 = vand.u32 4294901760, %v1119_v50  ;;  %v6626_v63 = vsub.f32 %v1023_v61, %v6592_v7  ;;  %1115 = vmatpush.msrb.mxu1 %v6610_v12  ;;  %v147_v61 = vadd.f32 %v6377_v8, %v6476_v17 }
  0xd2   :  { %v519_v0 = vpop.f32.mrf.mxu1  ;;  %1281 = vmatpush.msrb.mxu2 %v6606_v13  ;;  %v6661_v39 = vsub.f32 %v1019_v18, %v6617_v54  ;;  %v1009_v18 = vld [vmem:[%s7844_s2 + $0x8] sm:$0xff]  ;;  %1235 = vmatpush.msra.mxu0 %v6604_v5 }
  0xd3   :  { %v516_v22 = vadd.f32 %v515_v48, %v459_v25  ;;  %919 = vmatmul.f32.gmra.mxu2 %v5999_v26  ;;  %972 = vmatmul.f32.gmra.mxu3 %v6152_v55  ;;  %7968 = vst [vmem:[#allocation32_spill] sm:$0xff] %v6623_v2  ;;  %v6636_v48 = vand.u32 4294901760, %v6626_v63  ;;  %v6640_v55 = vsub.f32 %v1021_v35, %v6606_v13  ;;  %v7864_v35 = vmov 0.0  }
  0xd4   :  { %1283 = vmatpush.msrb.mxu2 %v6617_v54  ;;  %1121 = vmatpush.msrb.mxu1 %v6623_v2  ;;  %v466_v11 = vpop.f32.mrf.mxu0  ;;  %v248_v23 = vadd.f32 %v6399_v52, %v147_v61 }
  0xd5   :  { %996 = vst [vmem:[#allocation2 + $0x20] sm:$0xff] %v516_v22  ;;  %v6649_v22 = vand.u32 4294901760, %v1015_v46  ;;  %1062 = vmatmul.f32.vlgmr.msrb.gmra.mxu0 %v7864_v35  ;;  %v1314_v8 = vsub.f32 %v6626_v63, %v6636_v48  ;;  %1123 = vmatmul.f32.vlgmr.msrb.gmra.mxu1 %v7864_v35  ;;  %v6658_v36 = vand.u32 4294901760, %v6640_v55  ;;  %v6673_v35 = vsub.f32 %v1017_v30, %v6633_v59 }
  0xd6   :  { %v317_v42 = vpop.f32.mrf.mxu2  ;;  %v381_v25 = vpop.f32.mrf.mxu3  ;;  %1250 = vmatpush.msra.mxu1 %v6385_v40  ;;  %1285 = vmatpush.msrb.mxu2 %v6633_v59 }
  0xd7   :  { %v382_v50 = vadd.f32 %v381_v25, %v313_v19  ;;  %v1011_v19 = vld [vmem:[%s7844_s2 + $0x18] sm:$0xff]  ;;  %v6666_v25 = vand.u32 4294901760, %v1013_v49  ;;  %v6669_v14 = vand.u32 4294901760, %v1314_v8  ;;  %v1320_v44 = vsub.f32 %v6640_v55, %v6658_v36  ;;  %1374 = vmatpush.msrb.mxu0 %v6626_v63 }
  0xd8   :  { %1252 = vmatpush.msra.mxu1 %v6415_v31  ;;  %v6688_v52 = vand.u32 4294901760, %v6673_v35  ;;  %v6691_v30 = vsub.f32 %v1015_v46, %v6649_v22  ;;  %v6693_v61 = vand.u32 4294901760, %v1011_v19  ;;  %v318_v8 = vadd.f32 %v317_v42, %v248_v23  ;;  %1287 = vmatpush.msrb.mxu2 %v6649_v22 }
  0xd9   :  { %v463_v6 = vadd.f32 %v462_v56, %v382_v50  ;;  %7969 = vst [vmem:[#allocation33_spill] sm:$0xff] %v6669_v14  ;;  %v6683_v56 = vand.u32 4294901760, %v6661_v39  ;;  %1316 = vmatpush.msrb.mxu3 %v6669_v14  ;;  %v6697_v16 = vand.u32 4294901760, %v1320_v44  ;;  %v6711_v46 = vsub.f32 %v1013_v49, %v6666_v25  ;;  %1377 = vmatpush.msrb.mxu0 %v6640_v55 }
  0xda   :  { %v523_v47 = vpop.f32.mrf.mxu1  ;;  %1254 = vmatpush.msra.mxu1 %v6446_v20  ;;  %v6708_v23 = vand.u32 4294901760, %v6691_v30  ;;  %v155_v14 = vadd.f32 %v6397_v34, %v6476_v17  ;;  %1289 = vmatpush.msrb.mxu2 %v6666_v25 }
  0xdb   :  { %v520_v50 = vadd.f32 %v519_v0, %v463_v6  ;;  %923 = vmatmul.f32.gmra.mxu2 %v6060_v53  ;;  %976 = vmatmul.f32.gmra.mxu3 %v5999_v26  ;;  %7970 = vst [vmem:[#allocation34_spill] sm:$0xff] %v6697_v16  ;;  %v1326_v6 = vsub.f32 %v6661_v39, %v6683_v56  ;;  %v6701_v0 = vand.u32 4294901760, %v1009_v18 }
  0xdc   :  { %v1332_v26 = vsub.f32 %v6673_v35, %v6688_v52  ;;  %1256 = vmatpush.msra.mxu1 %v6485_v1  ;;  %1322 = vmatpush.msrb.mxu3 %v6697_v16  ;;  %v1338_v49 = vsub.f32 %v6691_v30, %v6708_v23  ;;  %v6731_v16 = vsub.f32 %v1011_v19, %v6693_v61 }
  0xdd   :  { %998 = vst [vmem:[#allocation2 + $0x30] sm:$0xff] %v520_v50  ;;  %v6715_v50 = vand.u32 4294901760, %v1326_v6  ;;  %v6728_v6 = vand.u32 4294901760, %v6711_v46  ;;  %1291 = vmatpush.msrb.mxu2 %v6693_v61  ;;  %v6738_v5 = vsub.f32 %v1009_v18, %v6701_v0  ;;  %1380 = vmatpush.msrb.mxu0 %v6661_v39 }
  0xde   :  { %v322_v44 = vpop.f32.mrf.mxu2  ;;  %v387_v42 = vpop.f32.mrf.mxu3  ;;  %v6719_v2 = vand.u32 4294901760, %v1332_v26  ;;  %1258 = vmatpush.msra.mxu1 %v6512_v10  ;;  %v7973_v26 = vmov 0.0   ;;  %v6745_v19 = vand.u32 4294901760, %v6731_v16 }
  0xdf   :  { %7971 = vst [vmem:[#allocation35_spill] sm:$0xff] %v6715_v50  ;;  %v388_v37 = vadd.f32 %v387_v42, %v318_v8  ;;  %1328 = vmatpush.msrb.mxu3 %v6715_v50  ;;  %v470_v8 = vpop.f32.mrf.mxu0  ;;  %1237 = vmatmul.f32.vlgmr.msra.gmra.mxu0 %v7973_v26  ;;  %v6734_v42 = vand.u32 4294901760, %v1338_v49  ;;  %v1344_v50 = vsub.f32 %v6711_v46, %v6728_v6  ;;  %v6751_v18 = vand.u32 4294901760, %v6738_v5 }
  0xe0   :  { %7972 = vst [vmem:[#allocation36_spill] sm:$0xff] %v6719_v2  ;;  %1260 = vmatpush.msra.mxu1 %v6536_v33  ;;  %v1350_v24 = vsub.f32 %v6731_v16, %v6745_v19  ;;  %1293 = vmatpush.msrb.mxu2 %v6701_v0 }
  0xe1   :  { %v467_v34 = vadd.f32 %v466_v11, %v388_v37  ;;  %7974 = vst [vmem:[#allocation37_spill] sm:$0xff] %v6734_v42  ;;  %1334 = vmatpush.msrb.mxu3 %v6719_v2  ;;  %v252_v11 = vadd.f32 %v6430_v3, %v155_v14  ;;  %v6755_v2 = vand.u32 4294901760, %v1344_v50  ;;  %v163_v50 = vadd.f32 %v6428_v32, %v6476_v17 }
  0xe2   :  { %v527_v49 = vpop.f32.mrf.mxu1  ;;  %1262 = vmatpush.msra.mxu1 %v6560_v29  ;;  %v6765_v14 = vand.u32 4294901760, %v1350_v24  ;;  %1383 = vmatpush.msrb.mxu0 %v6673_v35 }
  0xe3   :  { %v524_v37 = vadd.f32 %v523_v47, %v467_v34  ;;  %927 = vmatmul.f32.gmra.mxu2 %v6081_v62  ;;  %980 = vmatmul.f32.gmra.mxu3 %v6060_v53  ;;  %7975 = vst [vmem:[#allocation38_spill] sm:$0xff] %v6755_v2  ;;  %v323_v12 = vadd.f32 %v322_v44, %v252_v11 }
  0xe4   :  { %1340 = vmatpush.msrb.mxu3 %v6734_v42  ;;  %v1356_v53 = vsub.f32 %v6738_v5, %v6751_v18  ;;  %1264 = vmatpush.msra.mxu1 %v6577_v27  ;;  %7976 = vst [vmem:[#allocation39_spill] sm:$0xff] %v6765_v14  ;;  %v256_v32 = vadd.f32 %v6466_v28, %v163_v50 }
  0xe5   :  { %1000 = vst [vmem:[#allocation2 + $0x40] sm:$0xff] %v524_v37  ;;  %1266 = vmatmul.f32.vlgmr.msra.gmra.mxu1 %v7973_v26  ;;  %1386 = vmatpush.msrb.mxu0 %v6691_v30  ;;  %v171_v28 = vadd.f32 %v6464_v38, %v6476_v17 }
  0xe6   :  { %v327_v47 = vpop.f32.mrf.mxu2  ;;  %v393_v3 = vpop.f32.mrf.mxu3  ;;  %1346 = vmatpush.msrb.mxu3 %v6755_v2  ;;  %v6770_v34 = vand.u32 4294901760, %v1356_v53  ;;  %1411 = vmatpush.msrb.mxu1 %v6592_v7 }
  0xe7   :  { %v394_v44 = vadd.f32 %v393_v3, %v323_v12  ;;  %v474_v12 = vpop.f32.mrf.mxu0  ;;  %v328_v37 = vadd.f32 %v327_v47, %v256_v32  ;;  %1389 = vmatpush.msrb.mxu0 %v6711_v46  ;;  %v260_v47 = vadd.f32 %v6498_v4, %v171_v28  ;;  %v7979_v28 = vld [vmem:[#allocation13_spill] sm:$0xff] }
  0xe8   :  { %7977 = vst [vmem:[#allocation40_spill] sm:$0xff] %v6770_v34  ;;  %1352 = vmatpush.msrb.mxu3 %v6765_v14  ;;  %1413 = vmatpush.msrb.mxu1 %v6606_v13 }
  0xe9   :  { %v471_v11 = vadd.f32 %v470_v8, %v394_v44  ;;  %1392 = vmatpush.msrb.mxu0 %v6731_v16 }
  0xea   :  { %1358 = vmatpush.msrb.mxu3 %v6770_v34  ;;  %1415 = vmatpush.msrb.mxu1 %v6617_v54  ;;  %v531_v8 = vpop.f32.mrf.mxu1 }
  0xeb   :  { %v528_v24 = vadd.f32 %v527_v49, %v471_v11  ;;  %931 = vmatmul.f32.gmra.mxu2 %v6132_v45  ;;  %984 = vmatmul.f32.gmra.mxu3 %v6081_v62 }
  0xec   :  { %1417 = vmatpush.msrb.mxu1 %v6633_v59  ;;  %1395 = vmatpush.msrb.mxu0 %v6738_v5 }
  0xed   :  { %1002 = vst [vmem:[#allocation2 + $0x50] sm:$0xff] %v528_v24  ;;  %1398 = vmatmul.f32.vlgmr.msrb.gmra.mxu0 %v7973_v26 }
  0xee   :  { %v332_v53 = vpop.f32.mrf.mxu2  ;;  %v399_v3 = vpop.f32.mrf.mxu3  ;;  %1419 = vmatpush.msrb.mxu1 %v6649_v22  ;;  %1557 = vmatpush.msra.mxu0 %v6385_v40 }
  0xef   :  { %v400_v49 = vadd.f32 %v399_v3, %v328_v37  ;;  %v333_v38 = vadd.f32 %v332_v53, %v260_v47  ;;  %v478_v17 = vpop.f32.mrf.mxu0  ;;  %v7978_v3 = vld [vmem:[#allocation31_spill] sm:$0xff]  ;;  %v7982_v47 = vld [vmem:[#allocation4_spill] sm:$0xff] }
  0xf0   :  { %1421 = vmatpush.msrb.mxu1 %v6666_v25  ;;  %1559 = vmatpush.msra.mxu0 %v6415_v31 }
  0xf1   :  { %v475_v62 = vadd.f32 %v474_v12, %v400_v49  ;;  %v7980_v49 = vld [vmem:[#allocation32_spill] sm:$0xff] }
  0xf2   :  { %1423 = vmatpush.msrb.mxu1 %v6693_v61  ;;  %v535_v4 = vpop.f32.mrf.mxu1  ;;  %1561 = vmatpush.msra.mxu0 %v6446_v20 }
  0xf3   :  { %v532_v50 = vadd.f32 %v531_v8, %v475_v62  ;;  %988 = vmatmul.f32.gmra.mxu3 %v6132_v45  ;;  %1161 = vmatmul.f32.vlgmr.msra.gmra.mxu2 %v7973_v26  ;;  %v7981_v62 = vld [vmem:[#allocation17_spill] sm:$0xff] }
  0xf4   :  { %1444 = vmatpush.msra.mxu2 %v6636_v48  ;;  %1425 = vmatpush.msrb.mxu1 %v6701_v0 }
  0xf5   :  { %1004 = vst [vmem:[#allocation2 + $0x60] sm:$0xff] %v532_v50  ;;  %1429 = vmatmul.f32.vlgmr.msrb.gmra.mxu1 %v7973_v26  ;;  %1563 = vmatpush.msra.mxu0 %v6485_v1 }
  0xf6   :  { %v405_v44 = vpop.f32.mrf.mxu3  ;;  %v6798_v11 = vpop.f32.mrf.mxu2  ;;  %1448 = vmatpush.msra.mxu2 %v6658_v36  ;;  %1594 = vmatpush.msra.mxu1 %v6413_v41 }
  0xf7   :  { %v406_v45 = vadd.f32 %v405_v44, %v333_v38  ;;  %1565 = vmatpush.msra.mxu0 %v6512_v10  ;;  %v7985_v44 = vld [vmem:[#allocation26_spill] sm:$0xff] }
  0xf8   :  { %1452 = vmatpush.msra.mxu2 %v6683_v56  ;;  %1600 = vmatpush.msra.mxu1 %v6444_v43 }
  0xf9   :  { %v479_v32 = vadd.f32 %v478_v17, %v406_v45  ;;  %1567 = vmatpush.msra.mxu0 %v6536_v33  ;;  %v7983_v17 = vld [vmem:[#allocation22_spill] sm:$0xff]  ;;  %v7986_v45 = vld [vmem:[#allocation11_spill] sm:$0xff] }
  0xfa   :  { %1456 = vmatpush.msra.mxu2 %v6688_v52  ;;  %1606 = vmatpush.msra.mxu1 %v6483_v58 }
  0xfb   :  { %v536_v24 = vadd.f32 %v535_v4, %v479_v32  ;;  %1192 = vmatmul.f32.vlgmr.msra.gmra.mxu3 %v7973_v26  ;;  %1299 = vmatmul.f32.vlgmr.msrb.gmra.mxu2 %v7973_v26  ;;  %v7987_v4 = vld [vmem:[#allocation29_spill] sm:$0xff]  ;;  %v7988_v32 = vld [vmem:[#allocation14_spill] sm:$0xff] }
  0xfc   :  { %1487 = vmatpush.msra.mxu3 %v6592_v7  ;;  %1460 = vmatpush.msra.mxu2 %v6708_v23 }
  0xfd   :  { %1006 = vst [vmem:[#allocation2 + $0x70] sm:$0xff] %v536_v24  ;;  %1612 = vmatpush.msra.mxu1 %v6510_v9  ;;  %1569 = vmatpush.msra.mxu0 %v6560_v29 }
  0xfe   :  { %v6814_v12 = vpop.f32.mrf.mxu2  ;;  %v6816_v37 = vpop.f32.mrf.mxu3  ;;  %1489 = vmatpush.msra.mxu3 %v6606_v13  ;;  %1464 = vmatpush.msra.mxu2 %v6728_v6 }
  0xff   :  { %1618 = vmatpush.msra.mxu1 %v6534_v15  ;;  %1571 = vmatpush.msra.mxu0 %v6577_v27 }
 0x100   :  { %1491 = vmatpush.msra.mxu3 %v6617_v54  ;;  %1468 = vmatpush.msra.mxu2 %v6745_v19 }
 0x101   :  { %1624 = vmatpush.msra.mxu1 %v6564_v57  ;;  %1722 = vmatpush.msrb.mxu0 %v7982_v47  ;;  %v7990_v47 = vld [vmem:[#allocation23_spill] sm:$0xff] }
 0x102   :  { %1493 = vmatpush.msra.mxu3 %v6633_v59  ;;  %1472 = vmatpush.msra.mxu2 %v6751_v18 }
 0x103   :  { %1360 = vmatmul.f32.vlgmr.msrb.gmra.mxu3 %v7973_v26  ;;  %1474 = vmatmul.f32.vlgmr.msra.gmra.mxu2 %v7973_v26 }
 0x104   :  { %1495 = vmatpush.msra.mxu3 %v6649_v22  ;;  %1652 = vmatpush.msrb.mxu2 %v6392_v51 }
 0x105   :  { %1630 = vmatpush.msra.mxu1 %v7978_v3 }
 0x106   :  { %v6834_v8 = vpop.f32.mrf.mxu2  ;;  %v6836_v53 = vpop.f32.mrf.mxu3  ;;  %1497 = vmatpush.msra.mxu3 %v6666_v25  ;;  %1655 = vmatpush.msrb.mxu2 %v6423_v60 }
 0x107   :  { %1636 = vmatpush.msra.mxu1 %v7980_v49 }
 0x108   :  { %1499 = vmatpush.msra.mxu3 %v6693_v61  ;;  %1658 = vmatpush.msrb.mxu2 %v6454_v21 }
 0x109   :  { %1765 = vmatpush.msrb.mxu1 %v6385_v40 }
 0x10a   :  { %1501 = vmatpush.msra.mxu3 %v6701_v0  ;;  %1661 = vmatpush.msrb.mxu2 %v7979_v28 }
 0x10b   :  { %1503 = vmatmul.f32.vlgmr.msra.gmra.mxu3 %v7973_v26  ;;  %1767 = vmatpush.msrb.mxu1 %v6415_v31  ;;  %v7984_v26 = vld [vmem:[#allocation7_spill] sm:$0xff] }
 0x10c   :  { %1689 = vmatpush.msrb.mxu3 %v6385_v40  ;;  %1664 = vmatpush.msrb.mxu2 %v7981_v62 }
 0x10d   :  { %1726 = vmatpush.msrb.mxu0 %v7984_v26  ;;  %1769 = vmatpush.msrb.mxu1 %v6446_v20 }
 0x10e   :  { %v6854_v50 = vpop.f32.mrf.mxu2  ;;  %v6856_v38 = vpop.f32.mrf.mxu3  ;;  %1691 = vmatpush.msrb.mxu3 %v6415_v31  ;;  %1667 = vmatpush.msrb.mxu2 %v7983_v17 }
 0x10f   :  { %1730 = vmatpush.msrb.mxu0 %v7986_v45  ;;  %1771 = vmatpush.msrb.mxu1 %v6485_v1  ;;  %v7989_v45 = vld [vmem:[#allocation18_spill] sm:$0xff] }
 0x110   :  { %1693 = vmatpush.msrb.mxu3 %v6446_v20  ;;  %1670 = vmatpush.msrb.mxu2 %v7985_v44  ;;  %v7994_v44 = vld [vmem:[#allocation34_spill] sm:$0xff] }
 0x111   :  { %1734 = vmatpush.msrb.mxu0 %v7988_v32  ;;  %1773 = vmatpush.msrb.mxu1 %v6512_v10  ;;  %v7991_v32 = vld [vmem:[#allocation28_spill] sm:$0xff] }
 0x112   :  { %1695 = vmatpush.msrb.mxu3 %v6485_v1  ;;  %1673 = vmatpush.msrb.mxu2 %v7987_v4  ;;  %v7992_v4 = vld [vmem:[#allocation33_spill] sm:$0xff] }
 0x113   :  { %1738 = vmatpush.msrb.mxu0 %v7989_v45  ;;  %1775 = vmatpush.msrb.mxu1 %v6536_v33  ;;  %v7993_v45 = vld [vmem:[#allocation30_spill] sm:$0xff] }
 0x114   :  { %1794 = vmatpush.msra.mxu2 %v6592_v7  ;;  %1697 = vmatpush.msrb.mxu3 %v6512_v10 }
 0x115   :  { %1742 = vmatpush.msrb.mxu0 %v7990_v47  ;;  %1777 = vmatpush.msrb.mxu1 %v6560_v29 }
 0x116   :  { %1796 = vmatpush.msra.mxu2 %v6606_v13  ;;  %v6874_v24 = vpop.f32.mrf.mxu2  ;;  %v6876_v26 = vpop.f32.mrf.mxu3  ;;  %1699 = vmatpush.msrb.mxu3 %v6536_v33 }
 0x117   :  { %1746 = vmatpush.msrb.mxu0 %v7991_v32  ;;  %1779 = vmatpush.msrb.mxu1 %v6577_v27  ;;  %v7996_v32 = vld [vmem:[#allocation36_spill] sm:$0xff] }
 0x118   :  { %1798 = vmatpush.msra.mxu2 %v6617_v54  ;;  %1701 = vmatpush.msrb.mxu3 %v6560_v29  ;;  %v7995_v29 = vld [vmem:[#allocation35_spill] sm:$0xff] }
 0x119   :  { %1750 = vmatpush.msrb.mxu0 %v7993_v45 }
 0x11a   :  { %1800 = vmatpush.msra.mxu2 %v6633_v59  ;;  %1703 = vmatpush.msrb.mxu3 %v6577_v27  ;;  %v817_v27 = vpop.f32.mrf.mxu1 }
 0x11c   :  { %1831 = vmatpush.msra.mxu3 %v7992_v4  ;;  %1802 = vmatpush.msra.mxu2 %v6649_v22  ;;  %v751_v4 = vpop.f32.mrf.mxu0 }
 0x11e   :  { %1837 = vmatpush.msra.mxu3 %v7994_v44  ;;  %1804 = vmatpush.msra.mxu2 %v6666_v25  ;;  %v6894_v47 = vpop.f32.mrf.mxu2  ;;  %v701_v49 = vpop.f32.mrf.mxu3 }
 0x120   :  { %1843 = vmatpush.msra.mxu3 %v7995_v29  ;;  %1806 = vmatpush.msra.mxu2 %v6693_v61  ;;  %v7997_v29 = vld [vmem:[#allocation10_spill] sm:$0xff] }
 0x121   :  { %v6907_v33 = vperm.slane %v7997_v29, 1 }
 0x122   :  { %1849 = vmatpush.msra.mxu3 %v7996_v32  ;;  %1808 = vmatpush.msra.mxu2 %v6701_v0 }
 0x124   :  { %1855 = vmatpush.msra.mxu3 %v6734_v42  ;;  %v569_v42 = vadd.f32 %v6798_v11, %v6907_v33  ;;  %v756_v3 = vpop.f32.mrf.mxu0  ;;  %v585_v11 = vadd.f32 %v6834_v8, %v6907_v33 }
 0x126   :  { %1861 = vmatpush.msra.mxu3 %v6755_v2  ;;  %v6902_v45 = vpop.f32.mrf.mxu2  ;;  %v705_v44 = vpop.f32.mrf.mxu3  ;;  %v686_v10 = vadd.f32 %v6816_v37, %v569_v42  ;;  %v694_v60 = vadd.f32 %v6856_v38, %v585_v11 }
 0x127   :  { %v823_v2 = vpop.f32.mrf.mxu1 }
 0x128   :  { %1867 = vmatpush.msra.mxu3 %v6765_v14  ;;  %v752_v14 = vadd.f32 %v751_v4, %v686_v10 }
 0x12a   :  { %1873 = vmatpush.msra.mxu3 %v6770_v34  ;;  %v577_v34 = vadd.f32 %v6814_v12, %v6907_v33  ;;  %v818_v1 = vadd.f32 %v817_v27, %v752_v14 }
 0x12c   :  { %v761_v29 = vpop.f32.mrf.mxu0  ;;  %v690_v28 = vadd.f32 %v6836_v53, %v577_v34 }
 0x12e   :  { %v6909_v17 = vpop.f32.mrf.mxu2  ;;  %v6911_v32 = vpop.f32.mrf.mxu3  ;;  %v757_v31 = vadd.f32 %v756_v3, %v690_v28  ;;  %v601_v3 = vadd.f32 %v6874_v24, %v6907_v33 }
 0x12f   :  { %v829_v15 = vpop.f32.mrf.mxu1 }
 0x130   :  { %v824_v37 = vadd.f32 %v823_v2, %v757_v31 }
 0x134   :  { %v766_v12 = vpop.f32.mrf.mxu0 }
 0x136   :  { %v6916_v62 = vpop.f32.mrf.mxu3  ;;  %v904_v57 = vpop.f32.mrf.mxu2 }
 0x137   :  { %v905_v20 = vadd.f32 %v904_v57, %v818_v1  ;;  %v835_v10 = vpop.f32.mrf.mxu1  ;;  %v593_v1 = vadd.f32 %v6854_v50, %v6907_v33  ;;  %v762_v57 = vadd.f32 %v761_v29, %v694_v60  ;;  %v702_v60 = vadd.f32 %v701_v49, %v601_v3 }
 0x138   :  { %v617_v49 = vadd.f32 %v6902_v45, %v6907_v33 }
 0x139   :  { %v830_v8 = vadd.f32 %v829_v15, %v762_v57  ;;  %v609_v15 = vadd.f32 %v6894_v47, %v6907_v33 }
 0x13e   :  { %v908_v21 = vpop.f32.mrf.mxu2  ;;  %v961_v9 = vpop.f32.mrf.mxu3 }
 0x13f   :  { %v962_v42 = vadd.f32 %v961_v9, %v905_v20  ;;  %v909_v4 = vadd.f32 %v908_v21, %v824_v37  ;;  %v698_v20 = vadd.f32 %v6876_v26, %v593_v1  ;;  %v771_v9 = vpop.f32.mrf.mxu0  ;;  %v841_v38 = vpop.f32.mrf.mxu1 }
 0x140   :  { %v772_v26 = vadd.f32 %v771_v9, %v702_v60 }
 0x141   :  { %993 = vst.msk [vmem:[#allocation2 + $0x8] sm:$0xff] %vm59_vm0, %v962_v42  ;;  %v767_v21 = vadd.f32 %v766_v12, %v698_v20  ;;  %v706_v12 = vadd.f32 %v705_v44, %v609_v15  ;;  %v710_v20 = vadd.f32 %v6911_v32, %v617_v49  ;;  %v625_v44 = vadd.f32 %v6909_v17, %v6907_v33 }
 0x142   :  { %v842_v24 = vadd.f32 %v841_v38, %v772_v26 }
 0x143   :  { %v836_v50 = vadd.f32 %v835_v10, %v767_v21 }
 0x146   :  { %v912_v27 = vpop.f32.mrf.mxu2  ;;  %v965_v14 = vpop.f32.mrf.mxu3 }
 0x147   :  { %v966_v34 = vadd.f32 %v965_v14, %v909_v4  ;;  %v913_v53 = vadd.f32 %v912_v27, %v830_v8  ;;  %v776_v4 = vpop.f32.mrf.mxu0  ;;  %v847_v27 = vpop.f32.mrf.mxu1 }
 0x148   :  { %v777_v10 = vadd.f32 %v776_v4, %v706_v12 }
 0x149   :  { %995 = vst.msk [vmem:[#allocation2 + $0x18] sm:$0xff] %vm59_vm0, %v966_v34 }
 0x14a   :  { %v848_v47 = vadd.f32 %v847_v27, %v777_v10 }
 0x14e   :  { %v916_v31 = vpop.f32.mrf.mxu2  ;;  %v969_v2 = vpop.f32.mrf.mxu3 }
 0x14f   :  { %v970_v28 = vadd.f32 %v969_v2, %v913_v53  ;;  %v917_v29 = vadd.f32 %v916_v31, %v836_v50  ;;  %v781_v8 = vpop.f32.mrf.mxu0  ;;  %v853_v9 = vpop.f32.mrf.mxu1 }
 0x150   :  { %v782_v2 = vadd.f32 %v781_v8, %v710_v20 }
 0x151   :  { %997 = vst.msk [vmem:[#allocation2 + $0x28] sm:$0xff] %vm59_vm0, %v970_v28  ;;  %v714_v28 = vadd.f32 %v6916_v62, %v625_v44 }
 0x152   :  { %v854_v45 = vadd.f32 %v853_v9, %v782_v2 }
 0x156   :  { %v920_v11 = vpop.f32.mrf.mxu2  ;;  %v973_v42 = vpop.f32.mrf.mxu3 }
 0x157   :  { %v974_v37 = vadd.f32 %v973_v42, %v917_v29  ;;  %v921_v14 = vadd.f32 %v920_v11, %v842_v24  ;;  %v786_v38 = vpop.f32.mrf.mxu0  ;;  %v859_v60 = vpop.f32.mrf.mxu1 }
 0x158   :  { %v787_v11 = vadd.f32 %v786_v38, %v714_v28 }
 0x159   :  { %999 = vst.msk [vmem:[#allocation2 + $0x38] sm:$0xff] %vm59_vm0, %v974_v37 }
 0x15a   :  { %v860_v15 = vadd.f32 %v859_v60, %v787_v11 }
 0x15e   :  { %v924_v1 = vpop.f32.mrf.mxu2  ;;  %v977_v57 = vpop.f32.mrf.mxu3 }
 0x15f   :  { %v978_v34 = vadd.f32 %v977_v57, %v921_v14  ;;  %v925_v53 = vadd.f32 %v924_v1, %v848_v47  ;;  %v1063_v26 = vpop.f32.mrf.mxu0  ;;  %v1124_v37 = vpop.f32.mrf.mxu1 }
 0x160   :  { %v1125_v27 = vadd.f32 %v1124_v37, %v1063_v26 }
 0x161   :  { %1001 = vst.msk [vmem:[#allocation2 + $0x48] sm:$0xff] %vm59_vm0, %v978_v34  ;;  %v7998_v34 = vld [vmem:[#allocation21_spill] sm:$0xff] }
 0x166   :  { %v981_v31 = vpop.f32.mrf.mxu3  ;;  %v928_v21 = vpop.f32.mrf.mxu2 }
 0x167   :  { %v982_v3 = vadd.f32 %v981_v31, %v925_v53  ;;  %v929_v50 = vadd.f32 %v928_v21, %v854_v45  ;;  %v1238_v14 = vpop.f32.mrf.mxu0  ;;  %v1267_v57 = vpop.f32.mrf.mxu1 }
 0x169   :  { %1003 = vst.msk [vmem:[#allocation2 + $0x58] sm:$0xff] %vm59_vm0, %v982_v3 }
 0x16e   :  { %v985_v29 = vpop.f32.mrf.mxu3  ;;  %v932_v42 = vpop.f32.mrf.mxu2 }
 0x16f   :  { %v986_v32 = vadd.f32 %v985_v29, %v929_v50  ;;  %v933_v33 = vadd.f32 %v932_v42, %v860_v15  ;;  %v1399_v31 = vpop.f32.mrf.mxu0  ;;  %v6949_v42 = vld [vmem:[%s7846_s4] ss:$0 sm:$0xff] }
 0x171   :  { %1005 = vst.msk [vmem:[#allocation2 + $0x68] sm:$0xff] %vm59_vm0, %v986_v32 }
 0x172   :  { %v1430_v21 = vpop.f32.mrf.mxu1 }
 0x176   :  { %v989_v17 = vpop.f32.mrf.mxu3  ;;  %v1162_v24 = vpop.f32.mrf.mxu2 }
 0x177   :  { %v990_v4 = vadd.f32 %v989_v17, %v933_v33  ;;  %v1163_v62 = vadd.f32 %v1162_v24, %v1125_v27 }
 0x179   :  { %1007 = vst.msk [vmem:[#allocation2 + $0x78] sm:$0xff] %vm59_vm0, %v990_v4 }
 0x17e   :  { %v1193_v12 = vpop.f32.mrf.mxu3  ;;  %v1300_v9 = vpop.f32.mrf.mxu2 }
 0x17f   :  { %v1194_v1 = vadd.f32 %v1193_v12, %v1163_v62  ;;  %v1029_v12 = vld [vmem:[#allocation2 + $0x8] sm:$0xff] }
 0x181   :  { %v1239_v49 = vadd.f32 %v1238_v14, %v1194_v1 }
 0x183   :  { %v1268_v10 = vadd.f32 %v1267_v57, %v1239_v49 }
 0x185   :  { %v1507_v8 = vadd.f32 %v1268_v10, %v7998_v34 }
 0x186   :  { %v1361_v20 = vpop.f32.mrf.mxu3  ;;  %v1475_v28 = vpop.f32.mrf.mxu2 }
 0x187   :  { %v5774_v47 = vmul.f32 -1.442695, %v1507_v8  ;;  %v1362_v53 = vadd.f32 %v1361_v20, %v1300_v9 }
 0x189   :  { %5803 = vpow2.f32 %v5774_v47  ;;  %v1400_v3 = vadd.f32 %v1399_v31, %v1362_v53 }
 0x18b   :  { %v1431_v45 = vadd.f32 %v1430_v21, %v1400_v3  ;;  %v7999_v3 = vld [vmem:[#allocation6_spill] sm:$0xff]  ;;  %v8000_v21 = vld [vmem:[#allocation5_spill] sm:$0xff] }
 0x18d   :  { %v1476_v60 = vadd.f32 %v1475_v28, %v1431_v45  ;;  %v8001_v45 = vld [vmem:[#allocation15_spill] sm:$0xff]  ;;  %v8002_v28 = vld [vmem:[#allocation9_spill] sm:$0xff] }
 0x18e   :  { %v1504_v29 = vpop.f32.mrf.mxu3 }
 0x18f   :  { %v5804_v44 = vpop.eup %5803  ;;  %v1505_v15 = vadd.f32 %v1504_v29, %v1476_v60  ;;  %v8005_v60 = vld [vmem:[#allocation13_spill] sm:$0xff]  ;;  %v8006_v29 = vld [vmem:[#allocation12_spill] sm:$0xff] }
 0x190   :  { %v1511_v2 = vadd.f32 1.0, %v5804_v44 }
 0x191   :  { %v1527_v27 = vadd.f32 %v6949_v42, %v1505_v15  ;;  %v8009_v15 = vld [vmem:[#allocation16_spill] sm:$0xff] }
 0x192   :  { %5805 = vrcp.f32 %v1511_v2  ;;  %v1523_v32 = vand.u32 2147483648, %v1511_v2  ;;  %v1521_v33 = vand.u32 2147483647, %v1511_v2  ;;  %vm1517_vm2 = vweird.f32 %v1511_v2 }
 0x194   :  { %v1524_v37 = vor.u32 1.1754944e-38, %v1523_v32  ;;  %vm1522_vm4 = vcmp.eq.f32.partialorder %v1521_v33, 8.507059e+37  ;;  %v8008_v32 = vld [vmem:[#allocation17_spill] sm:$0xff]  ;;  %v8011_v33 = vld [vmem:[#allocation22_spill] sm:$0xff] }
 0x198   :  { %v5806_v38 = vpop.eup %5805 }
 0x199   :  { %v1513_v50 = vmul.f32 %v5806_v38, %v1511_v2  ;;  %vm1518_vm1 = vweird.f32 %v5806_v38 }
 0x19a   :  { %vm1519_vm3 = vmor %vm1517_vm2, %vm1518_vm1 }
 0x19b   :  { %v1514_v11 = vsub.f32 1.0, %v1513_v50  ;;  %v8004_v50 = vld [vmem:[#allocation19_spill] sm:$0xff] }
 0x19d   :  { %v1515_v26 = vmul.f32 %v5806_v38, %v1514_v11  ;;  %v8007_v11 = vld [vmem:[#allocation25_spill] sm:$0xff] }
 0x19f   :  { %v1516_v17 = vadd.f32 %v5806_v38, %v1515_v26  ;;  %v8010_v26 = vld [vmem:[#allocation31_spill] sm:$0xff] }
 0x1a1   :  { %v1520_v4 = vsel %vm1519_vm3, %v5806_v38, %v1516_v17  ;;  %v8003_v38 = vld [vmem:[#allocation8_spill] sm:$0xff] }
 0x1a2   :  { %v1525_v24 = vsel %vm1522_vm4, %v1524_v37, %v1520_v4  ;;  %v8012_v17 = vld [vmem:[#allocation20_spill] sm:$0xff]  ;;  %v8014_v4 = vld [vmem:[#allocation26_spill] sm:$0xff] }
 0x1a3   :  { %v1528_v62 = vmul.f32 %v1527_v27, %v1525_v24  ;;  %v1531_v57 = vsub.f32 1.0, %v1525_v24  ;;  %v1537_v10 = vmul.f32 0.0, %v1525_v24  ;;  %v8013_v37 = vld [vmem:[#allocation32_spill] sm:$0xff]  ;;  %v8016_v24 = vld [vmem:[#allocation29_spill] sm:$0xff] }
 0x1a4   :  { %v8015_v27 = vld [vmem:[#allocation24_spill] sm:$0xff] }
 0x1a5   :  { %v1529_v14 = vadd.f32 %v1528_v62, %v1029_v12  ;;  %v8017_v62 = vld [vmem:[#allocation27_spill] sm:$0xff]  ;;  %v8018_v12 = vld [vmem:[#allocation33_spill] sm:$0xff] }
 0x1a7   :  { %5807 = vtanh.f32 %v1529_v14  ;;  %v8019_v14 = vld [vmem:[#allocation34_spill] sm:$0xff] }
 0x1ad   :  { %v5808_v1 = vpop.eup %5807 }
 0x1ae   :  { %1533 = vrot.lane.b32.xlu0 %v5808_v1, %s5888_s16  ;;  %v8020_v1 = vld [vmem:[#allocation4_spill] sm:$0xff] }
 0x220   :  { %v1534_v49 = vpop.permute.xlu0 %1533 }
 0x221   :  { %v1536_v34 = vmul.f32 %v1534_v49, %v1531_v57  ;;  %v8021_v57 = vld [vmem:[#allocation35_spill] sm:$0xff] }
 0x222   :  { %v8022_v49 = vld [vmem:[#allocation7_spill] sm:$0xff] }
 0x223   :  { %v6953_v8 = vadd.f32 %v1537_v10, %v1536_v34  ;;  %v8023_v10 = vld [vmem:[#allocation36_spill] sm:$0xff]  ;;  %v8024_v34 = vld [vmem:[#allocation11_spill] sm:$0xff] }
 0x225   :  { %1540 = vrot.lane.b32.xlu0 %v6953_v8, %s5888_s16 }
 0x297   :  { %v1541_v47 = vpop.permute.xlu0 %1540 }
 0x298   :  { %1543 = vst.msk [vmem:[#allocation3] sm:$0xff] %vm59_vm0, %v1541_v47  ;;  %v1546_v20 = vsel %vm59_vm0, %v1541_v47, 0  ;;  %v8025_v47 = vld [vmem:[#allocation37_spill] sm:$0xff] }
 0x299   :  { %v1572_v9 = vand.u32 4294901760, %v1546_v20 }
 0x29b   :  { %v1573_v53 = vsub.f32 %v1546_v20, %v1572_v9  ;;  %1638 = vmatmul.f32.vlgmr.msra.gmra.mxu1 %v1572_v9  ;;  %v8026_v20 = vld [vmem:[#allocation14_spill] sm:$0xff] }
 0x29c   :  { %1926 = vmatpush.msra.mxu1 %v6592_v7 }
 0x29d   :  { %v1574_v31 = vand.u32 4294901760, %v1573_v53  ;;  %1676 = vmatmul.f32.vlgmr.msrb.gmra.mxu2 %v1573_v53 }
 0x29e   :  { %1928 = vmatpush.msra.mxu1 %v6606_v13  ;;  %1959 = vmatpush.msrb.mxu2 %v6636_v48 }
 0x29f   :  { %1707 = vmatmul.f32.vlgmr.msrb.gmra.mxu3 %v1574_v31  ;;  %v1575_v44 = vsub.f32 %v1573_v53, %v1574_v31 }
 0x2a0   :  { %1930 = vmatpush.msra.mxu1 %v6617_v54  ;;  %1963 = vmatpush.msrb.mxu2 %v6658_v36 }
 0x2a1   :  { %2002 = vmatpush.msrb.mxu3 %v6592_v7  ;;  %v1576_v2 = vand.u32 4294901760, %v1575_v44  ;;  %v8030_v44 = vld [vmem:[#allocation23_spill] sm:$0xff] }
 0x2a2   :  { %1932 = vmatpush.msra.mxu1 %v6633_v59  ;;  %1967 = vmatpush.msrb.mxu2 %v6683_v56 }
 0x2a3   :  { %2004 = vmatpush.msrb.mxu3 %v6606_v13  ;;  %1577 = vmatmul.f32.vlgmr.msra.gmra.mxu0 %v1576_v2 }
 0x2a4   :  { %1781 = vmatmul.f32.vlgmr.msrb.gmra.mxu1 %v1572_v9  ;;  %1889 = vmatpush.msra.mxu0 %v6626_v63 }
 0x2a5   :  { %1934 = vmatpush.msra.mxu1 %v6649_v22  ;;  %1971 = vmatpush.msrb.mxu2 %v6688_v52 }
 0x2a6   :  { %2006 = vmatpush.msrb.mxu3 %v6617_v54  ;;  %1814 = vmatmul.f32.vlgmr.msra.gmra.mxu2 %v1576_v2  ;;  %v8031_v2 = vld [vmem:[#allocation40_spill] sm:$0xff] }
 0x2a7   :  { %1892 = vmatpush.msra.mxu0 %v6640_v55  ;;  %1936 = vmatpush.msra.mxu1 %v6666_v25 }
 0x2a8   :  { %1975 = vmatpush.msrb.mxu2 %v6708_v23  ;;  %2008 = vmatpush.msrb.mxu3 %v6633_v59 }
 0x2a9   :  { %1875 = vmatmul.f32.vlgmr.msra.gmra.mxu3 %v1572_v9  ;;  %1895 = vmatpush.msra.mxu0 %v6661_v39 }
 0x2aa   :  { %1938 = vmatpush.msra.mxu1 %v6693_v61  ;;  %1979 = vmatpush.msrb.mxu2 %v6728_v6 }
 0x2ab   :  { %2010 = vmatpush.msrb.mxu3 %v6649_v22  ;;  %1898 = vmatpush.msra.mxu0 %v6673_v35 }
 0x2ac   :  { %1940 = vmatpush.msra.mxu1 %v6701_v0  ;;  %1983 = vmatpush.msrb.mxu2 %v6745_v19 }
 0x2ad   :  { %2012 = vmatpush.msrb.mxu3 %v6666_v25  ;;  %1752 = vmatmul.f32.vlgmr.msrb.gmra.mxu0 %v1572_v9 }
 0x2ae   :  { %1944 = vmatmul.f32.vlgmr.msra.gmra.mxu1 %v1574_v31  ;;  %1901 = vmatpush.msra.mxu0 %v6691_v30  ;;  %v8029_v31 = vld [vmem:[#allocation39_spill] sm:$0xff] }
 0x2af   :  { %1987 = vmatpush.msrb.mxu2 %v6751_v18  ;;  %2014 = vmatpush.msrb.mxu3 %v6693_v61 }
 0x2b0   :  { %1989 = vmatmul.f32.vlgmr.msrb.gmra.mxu2 %v1572_v9  ;;  %1904 = vmatpush.msra.mxu0 %v6711_v46 }
 0x2b1   :  { %2016 = vmatpush.msrb.mxu3 %v6701_v0  ;;  %2109 = vmatpush.msrb.mxu1 %v6413_v41 }
 0x2b2   :  { %2018 = vmatmul.f32.vlgmr.msrb.gmra.mxu3 %v1572_v9  ;;  %1907 = vmatpush.msra.mxu0 %v6731_v16  ;;  %v8027_v9 = vld [vmem:[#allocation38_spill] sm:$0xff] }
 0x2b3   :  { %2115 = vmatpush.msrb.mxu1 %v6444_v43  ;;  %2167 = vmatpush.msra.mxu2 %v6392_v51 }
 0x2b4   :  { %1910 = vmatpush.msra.mxu0 %v6738_v5  ;;  %2204 = vmatpush.msra.mxu3 %v6385_v40 }
 0x2b5   :  { %1913 = vmatmul.f32.vlgmr.msra.gmra.mxu0 %v1573_v53  ;;  %2121 = vmatpush.msrb.mxu1 %v6483_v58  ;;  %v8028_v53 = vld [vmem:[#allocation18_spill] sm:$0xff] }
 0x2b6   :  { %2170 = vmatpush.msra.mxu2 %v7999_v3  ;;  %2206 = vmatpush.msra.mxu3 %v8000_v21 }
 0x2b7   :  { %2127 = vmatpush.msrb.mxu1 %v8001_v45  ;;  %2072 = vmatpush.msrb.mxu0 %v6385_v40 }
 0x2b8   :  { %2173 = vmatpush.msra.mxu2 %v8002_v28  ;;  %2208 = vmatpush.msra.mxu3 %v8003_v38 }
 0x2b9   :  { %2133 = vmatpush.msrb.mxu1 %v8004_v50  ;;  %2074 = vmatpush.msrb.mxu0 %v8000_v21 }
 0x2ba   :  { %2176 = vmatpush.msra.mxu2 %v8005_v60  ;;  %2210 = vmatpush.msra.mxu3 %v8006_v29 }
 0x2bb   :  { %2139 = vmatpush.msrb.mxu1 %v8007_v11  ;;  %2076 = vmatpush.msrb.mxu0 %v8003_v38 }
 0x2bc   :  { %2179 = vmatpush.msra.mxu2 %v8008_v32  ;;  %2212 = vmatpush.msra.mxu3 %v8009_v15 }
 0x2bd   :  { %2145 = vmatpush.msrb.mxu1 %v8010_v26  ;;  %2078 = vmatpush.msrb.mxu0 %v8006_v29 }
 0x2be   :  { %2182 = vmatpush.msra.mxu2 %v8011_v33  ;;  %2214 = vmatpush.msra.mxu3 %v8012_v17 }
 0x2bf   :  { %2151 = vmatpush.msrb.mxu1 %v8013_v37  ;;  %2080 = vmatpush.msrb.mxu0 %v8009_v15 }
 0x2c0   :  { %2185 = vmatpush.msra.mxu2 %v8014_v4  ;;  %2216 = vmatpush.msra.mxu3 %v8015_v27 }
 0x2c1   :  { %2280 = vmatpush.msra.mxu1 %v6385_v40  ;;  %2082 = vmatpush.msrb.mxu0 %v8012_v17 }
 0x2c2   :  { %2188 = vmatpush.msra.mxu2 %v8016_v24  ;;  %2218 = vmatpush.msra.mxu3 %v8017_v62 }
 0x2c3   :  { %2282 = vmatpush.msra.mxu1 %v8000_v21  ;;  %2084 = vmatpush.msrb.mxu0 %v8015_v27 }
 0x2c4   :  { %2309 = vmatpush.msrb.mxu2 %v6592_v7  ;;  %2346 = vmatpush.msrb.mxu3 %v8018_v12 }
 0x2c5   :  { %2284 = vmatpush.msra.mxu1 %v8003_v38  ;;  %2086 = vmatpush.msrb.mxu0 %v8017_v62 }
 0x2c6   :  { %2311 = vmatpush.msrb.mxu2 %v6606_v13  ;;  %2352 = vmatpush.msrb.mxu3 %v8019_v14 }
 0x2c7   :  { %2286 = vmatpush.msra.mxu1 %v8006_v29  ;;  %2237 = vmatpush.msra.mxu0 %v8020_v1 }
 0x2c8   :  { %2313 = vmatpush.msrb.mxu2 %v6617_v54  ;;  %2358 = vmatpush.msrb.mxu3 %v8021_v57 }
 0x2c9   :  { %2288 = vmatpush.msra.mxu1 %v8009_v15  ;;  %2241 = vmatpush.msra.mxu0 %v8022_v49 }
 0x2ca   :  { %2315 = vmatpush.msrb.mxu2 %v6633_v59  ;;  %2364 = vmatpush.msrb.mxu3 %v8023_v10 }
 0x2cb   :  { %2290 = vmatpush.msra.mxu1 %v8012_v17  ;;  %2245 = vmatpush.msra.mxu0 %v8024_v34  ;;  %v8032_v34 = vld [vmem:[#allocation28_spill] sm:$0xff] }
 0x2cc   :  { %2317 = vmatpush.msrb.mxu2 %v6649_v22  ;;  %2370 = vmatpush.msrb.mxu3 %v8025_v47  ;;  %v8033_v47 = vld [vmem:[#allocation30_spill] sm:$0xff] }
 0x2cd   :  { %2292 = vmatpush.msra.mxu1 %v8015_v27  ;;  %2249 = vmatpush.msra.mxu0 %v8026_v20 }
 0x2ce   :  { %2319 = vmatpush.msrb.mxu2 %v6666_v25  ;;  %2376 = vmatpush.msrb.mxu3 %v8027_v9 }
 0x2cf   :  { %2294 = vmatpush.msra.mxu1 %v8017_v62  ;;  %2253 = vmatpush.msra.mxu0 %v8028_v53 }
 0x2d0   :  { %2321 = vmatpush.msrb.mxu2 %v6693_v61  ;;  %2382 = vmatpush.msrb.mxu3 %v8029_v31  ;;  %v1544_v31 = vld [vmem:[#allocation2 + $0x10] sm:$0xff] }
 0x2d1   :  { %2257 = vmatpush.msra.mxu0 %v8030_v44 }
 0x2d2   :  { %2323 = vmatpush.msrb.mxu2 %v6701_v0  ;;  %2388 = vmatpush.msrb.mxu3 %v8031_v2 }
 0x2d3   :  { %2261 = vmatpush.msra.mxu0 %v8032_v34 }
 0x2d5   :  { %2265 = vmatpush.msra.mxu0 %v8033_v47 }
 0x318   :  { %v1639_v20 = vpop.f32.mrf.mxu1 }
 0x320   :  { %v1578_v10 = vpop.f32.mrf.mxu0  ;;  %v1677_v57 = vpop.f32.mrf.mxu2 }
 0x321   :  { %v1640_v49 = vadd.f32 %v1639_v20, %v1578_v10  ;;  %v1782_v62 = vpop.f32.mrf.mxu1 }
 0x322   :  { %v1708_v9 = vpop.f32.mrf.mxu3 }
 0x323   :  { %v1678_v1 = vadd.f32 %v1677_v57, %v1640_v49 }
 0x325   :  { %v1709_v14 = vadd.f32 %v1708_v9, %v1678_v1 }
 0x329   :  { %v1815_v4 = vpop.f32.mrf.mxu2 }
 0x32a   :  { %v1753_v53 = vpop.f32.mrf.mxu0 }
 0x32b   :  { %v1754_v12 = vadd.f32 %v1753_v53, %v1709_v14  ;;  %v1945_v10 = vpop.f32.mrf.mxu1 }
 0x32c   :  { %v1876_v2 = vpop.f32.mrf.mxu3 }
 0x32d   :  { %v1783_v24 = vadd.f32 %v1782_v62, %v1754_v12  ;;  %v1877_v47 = vadd.f32 %v1876_v2, %v1815_v4 }
 0x32f   :  { %v2022_v27 = vadd.f32 %v1783_v24, %v1544_v31 }
 0x331   :  { %v5775_v44 = vmul.f32 -1.442695, %v2022_v27 }
 0x332   :  { %v1914_v34 = vpop.f32.mrf.mxu0 }
 0x333   :  { %5809 = vpow2.f32 %v5775_v44  ;;  %v1915_v33 = vadd.f32 %v1914_v34, %v1877_v47  ;;  %v1990_v1 = vpop.f32.mrf.mxu2  ;;  %v1545_v44 = vld [vmem:[#allocation2 + $0x18] sm:$0xff] }
 0x335   :  { %v1946_v57 = vadd.f32 %v1945_v10, %v1915_v33  ;;  %v2019_v62 = vpop.f32.mrf.mxu3 }
 0x337   :  { %v1991_v20 = vadd.f32 %v1990_v1, %v1946_v57 }
 0x339   :  { %v5810_v37 = vpop.eup %5809  ;;  %v2020_v24 = vadd.f32 %v2019_v62, %v1991_v20 }
 0x33a   :  { %v2026_v17 = vadd.f32 1.0, %v5810_v37 }
 0x33b   :  { %v2042_v34 = vadd.f32 %v6949_v42, %v2020_v24 }
 0x33c   :  { %5811 = vrcp.f32 %v2026_v17  ;;  %v2038_v12 = vand.u32 2147483648, %v2026_v17  ;;  %v2036_v53 = vand.u32 2147483647, %v2026_v17  ;;  %vm2032_vm6 = vweird.f32 %v2026_v17 }
 0x33e   :  { %v2039_v4 = vor.u32 1.1754944e-38, %v2038_v12  ;;  %vm2037_vm8 = vcmp.eq.f32.partialorder %v2036_v53, 8.507059e+37  ;;  %v8034_v53 = vld [vmem:[#allocation22_spill] sm:$0xff] }
 0x342   :  { %v5812_v49 = vpop.eup %5811 }
 0x343   :  { %v2028_v14 = vmul.f32 %v5812_v49, %v2026_v17  ;;  %vm2033_vm5 = vweird.f32 %v5812_v49 }
 0x344   :  { %vm2034_vm7 = vmor %vm2032_vm6, %vm2033_vm5 }
 0x345   :  { %v2029_v9 = vsub.f32 1.0, %v2028_v14 }
 0x347   :  { %v2030_v27 = vmul.f32 %v5812_v49, %v2029_v9 }
 0x349   :  { %v2031_v31 = vadd.f32 %v5812_v49, %v2030_v27 }
 0x34b   :  { %v2035_v37 = vsel %vm2034_vm7, %v5812_v49, %v2031_v31  ;;  %v8035_v31 = vld [vmem:[#allocation20_spill] sm:$0xff] }
 0x34c   :  { %v2040_v33 = vsel %vm2037_vm8, %v2039_v4, %v2035_v37  ;;  %v8036_v4 = vld [vmem:[#allocation32_spill] sm:$0xff]  ;;  %v8037_v37 = vld [vmem:[#allocation26_spill] sm:$0xff] }
 0x34d   :  { %v2043_v47 = vmul.f32 %v2042_v34, %v2040_v33  ;;  %v2046_v57 = vsub.f32 1.0, %v2040_v33  ;;  %v2052_v20 = vmul.f32 %v2040_v33, %v6953_v8  ;;  %v8038_v34 = vld [vmem:[#allocation24_spill] sm:$0xff]  ;;  %v8039_v33 = vld [vmem:[#allocation29_spill] sm:$0xff] }
 0x34f   :  { %v2044_v2 = vadd.f32 %v2043_v47, %v1545_v44  ;;  %v8040_v47 = vld [vmem:[#allocation27_spill] sm:$0xff]  ;;  %v8041_v44 = vld [vmem:[#allocation33_spill] sm:$0xff] }
 0x351   :  { %5813 = vtanh.f32 %v2044_v2  ;;  %v8042_v2 = vld [vmem:[#allocation34_spill] sm:$0xff] }
 0x357   :  { %v5814_v10 = vpop.eup %5813 }
 0x358   :  { %2048 = vrot.lane.b32.xlu1 %v5814_v10, %s5888_s16  ;;  %v8043_v10 = vld [vmem:[#allocation4_spill] sm:$0xff] }
 0x3ca   :  { %v2049_v1 = vpop.permute.xlu1 %2048 }
 0x3cb   :  { %v2051_v14 = vmul.f32 %v2049_v1, %v2046_v57  ;;  %v8044_v57 = vld [vmem:[#allocation35_spill] sm:$0xff] }
 0x3cc   :  { %v8045_v1 = vld [vmem:[#allocation7_spill] sm:$0xff] }
 0x3cd   :  { %v7058_v17 = vadd.f32 %v2052_v20, %v2051_v14  ;;  %v8046_v20 = vld [vmem:[#allocation36_spill] sm:$0xff]  ;;  %v8047_v14 = vld [vmem:[#allocation11_spill] sm:$0xff] }
 0x3cf   :  { %2055 = vrot.lane.b32.xlu1 %v7058_v17, %s5888_s16 }
 0x441   :  { %v2056_v49 = vpop.permute.xlu1 %2055 }
 0x442   :  { %2058 = vst.msk [vmem:[#allocation3 + $0x8] sm:$0xff] %vm59_vm0, %v2056_v49  ;;  %v2061_v9 = vsel %vm59_vm0, %v2056_v49, 0  ;;  %v8048_v49 = vld [vmem:[#allocation37_spill] sm:$0xff] }
 0x443   :  { %v2087_v62 = vand.u32 4294901760, %v2061_v9 }
 0x445   :  { %v2088_v12 = vsub.f32 %v2061_v9, %v2087_v62  ;;  %2153 = vmatmul.f32.vlgmr.msrb.gmra.mxu1 %v2087_v62  ;;  %v8049_v9 = vld [vmem:[#allocation14_spill] sm:$0xff] }
 0x446   :  { %2441 = vmatpush.msrb.mxu1 %v6592_v7 }
 0x447   :  { %v2089_v24 = vand.u32 4294901760, %v2088_v12  ;;  %2191 = vmatmul.f32.vlgmr.msra.gmra.mxu2 %v2088_v12 }
 0x448   :  { %2443 = vmatpush.msrb.mxu1 %v6606_v13  ;;  %2474 = vmatpush.msra.mxu2 %v6636_v48 }
 0x449   :  { %v2090_v8 = vsub.f32 %v2088_v12, %v2089_v24  ;;  %2222 = vmatmul.f32.vlgmr.msra.gmra.mxu3 %v2089_v24 }
 0x44a   :  { %2445 = vmatpush.msrb.mxu1 %v6617_v54  ;;  %2478 = vmatpush.msra.mxu2 %v6658_v36 }
 0x44b   :  { %v2091_v27 = vand.u32 4294901760, %v2090_v8  ;;  %2517 = vmatpush.msra.mxu3 %v6592_v7  ;;  %v8053_v8 = vld [vmem:[#allocation23_spill] sm:$0xff] }
 0x44c   :  { %2447 = vmatpush.msrb.mxu1 %v6633_v59  ;;  %2482 = vmatpush.msra.mxu2 %v6683_v56 }
 0x44d   :  { %2519 = vmatpush.msra.mxu3 %v6606_v13  ;;  %2092 = vmatmul.f32.vlgmr.msrb.gmra.mxu0 %v2091_v27 }
 0x44e   :  { %2296 = vmatmul.f32.vlgmr.msra.gmra.mxu1 %v2087_v62  ;;  %2404 = vmatpush.msrb.mxu0 %v6626_v63 }
 0x44f   :  { %2449 = vmatpush.msrb.mxu1 %v6649_v22  ;;  %2486 = vmatpush.msra.mxu2 %v6688_v52 }
 0x450   :  { %2521 = vmatpush.msra.mxu3 %v6617_v54  ;;  %2329 = vmatmul.f32.vlgmr.msrb.gmra.mxu2 %v2091_v27  ;;  %v8054_v27 = vld [vmem:[#allocation40_spill] sm:$0xff] }
 0x451   :  { %2407 = vmatpush.msrb.mxu0 %v6640_v55  ;;  %2451 = vmatpush.msrb.mxu1 %v6666_v25 }
 0x452   :  { %2490 = vmatpush.msra.mxu2 %v6708_v23  ;;  %2523 = vmatpush.msra.mxu3 %v6633_v59 }
 0x453   :  { %2390 = vmatmul.f32.vlgmr.msrb.gmra.mxu3 %v2087_v62  ;;  %2410 = vmatpush.msrb.mxu0 %v6661_v39 }
 0x454   :  { %2453 = vmatpush.msrb.mxu1 %v6693_v61  ;;  %2494 = vmatpush.msra.mxu2 %v6728_v6 }
 0x455   :  { %2525 = vmatpush.msra.mxu3 %v6649_v22  ;;  %2413 = vmatpush.msrb.mxu0 %v6673_v35 }
 0x456   :  { %2455 = vmatpush.msrb.mxu1 %v6701_v0  ;;  %2498 = vmatpush.msra.mxu2 %v6745_v19 }
 0x457   :  { %2527 = vmatpush.msra.mxu3 %v6666_v25  ;;  %2267 = vmatmul.f32.vlgmr.msra.gmra.mxu0 %v2087_v62 }
 0x458   :  { %2459 = vmatmul.f32.vlgmr.msrb.gmra.mxu1 %v2089_v24  ;;  %2416 = vmatpush.msrb.mxu0 %v6691_v30  ;;  %v8052_v24 = vld [vmem:[#allocation39_spill] sm:$0xff] }
 0x459   :  { %2502 = vmatpush.msra.mxu2 %v6751_v18  ;;  %2529 = vmatpush.msra.mxu3 %v6693_v61 }
 0x45a   :  { %2504 = vmatmul.f32.vlgmr.msra.gmra.mxu2 %v2087_v62  ;;  %2419 = vmatpush.msrb.mxu0 %v6711_v46 }
 0x45b   :  { %2531 = vmatpush.msra.mxu3 %v6701_v0  ;;  %2624 = vmatpush.msra.mxu1 %v6413_v41 }
 0x45c   :  { %2533 = vmatmul.f32.vlgmr.msra.gmra.mxu3 %v2087_v62  ;;  %2422 = vmatpush.msrb.mxu0 %v6731_v16  ;;  %v8050_v62 = vld [vmem:[#allocation38_spill] sm:$0xff] }
 0x45d   :  { %2630 = vmatpush.msra.mxu1 %v6444_v43  ;;  %2682 = vmatpush.msrb.mxu2 %v6392_v51 }
 0x45e   :  { %2425 = vmatpush.msrb.mxu0 %v6738_v5  ;;  %2719 = vmatpush.msrb.mxu3 %v6385_v40 }
 0x45f   :  { %2428 = vmatmul.f32.vlgmr.msrb.gmra.mxu0 %v2088_v12  ;;  %2636 = vmatpush.msra.mxu1 %v6483_v58  ;;  %v8051_v12 = vld [vmem:[#allocation18_spill] sm:$0xff] }
 0x460   :  { %2685 = vmatpush.msrb.mxu2 %v7999_v3  ;;  %2721 = vmatpush.msrb.mxu3 %v8000_v21 }
 0x461   :  { %2642 = vmatpush.msra.mxu1 %v8001_v45  ;;  %2587 = vmatpush.msra.mxu0 %v6385_v40 }
 0x462   :  { %2688 = vmatpush.msrb.mxu2 %v8002_v28  ;;  %2723 = vmatpush.msrb.mxu3 %v8003_v38 }
 0x463   :  { %2648 = vmatpush.msra.mxu1 %v8004_v50  ;;  %2589 = vmatpush.msra.mxu0 %v8000_v21 }
 0x464   :  { %2691 = vmatpush.msrb.mxu2 %v8005_v60  ;;  %2725 = vmatpush.msrb.mxu3 %v8006_v29 }
 0x465   :  { %2654 = vmatpush.msra.mxu1 %v8007_v11  ;;  %2591 = vmatpush.msra.mxu0 %v8003_v38 }
 0x466   :  { %2694 = vmatpush.msrb.mxu2 %v8008_v32  ;;  %2727 = vmatpush.msrb.mxu3 %v8009_v15 }
 0x467   :  { %2660 = vmatpush.msra.mxu1 %v8010_v26  ;;  %2593 = vmatpush.msra.mxu0 %v8006_v29 }
 0x468   :  { %2697 = vmatpush.msrb.mxu2 %v8034_v53  ;;  %2729 = vmatpush.msrb.mxu3 %v8035_v31 }
 0x469   :  { %2666 = vmatpush.msra.mxu1 %v8036_v4  ;;  %2595 = vmatpush.msra.mxu0 %v8009_v15 }
 0x46a   :  { %2700 = vmatpush.msrb.mxu2 %v8037_v37  ;;  %2731 = vmatpush.msrb.mxu3 %v8038_v34 }
 0x46b   :  { %2795 = vmatpush.msrb.mxu1 %v6385_v40  ;;  %2597 = vmatpush.msra.mxu0 %v8035_v31 }
 0x46c   :  { %2703 = vmatpush.msrb.mxu2 %v8039_v33  ;;  %2733 = vmatpush.msrb.mxu3 %v8040_v47 }
 0x46d   :  { %2797 = vmatpush.msrb.mxu1 %v8000_v21  ;;  %2599 = vmatpush.msra.mxu0 %v8038_v34 }
 0x46e   :  { %2824 = vmatpush.msra.mxu2 %v6592_v7  ;;  %2861 = vmatpush.msra.mxu3 %v8041_v44 }
 0x46f   :  { %2799 = vmatpush.msrb.mxu1 %v8003_v38  ;;  %2601 = vmatpush.msra.mxu0 %v8040_v47 }
 0x470   :  { %2826 = vmatpush.msra.mxu2 %v6606_v13  ;;  %2867 = vmatpush.msra.mxu3 %v8042_v2 }
 0x471   :  { %2801 = vmatpush.msrb.mxu1 %v8006_v29  ;;  %2752 = vmatpush.msrb.mxu0 %v8043_v10 }
 0x472   :  { %2828 = vmatpush.msra.mxu2 %v6617_v54  ;;  %2873 = vmatpush.msra.mxu3 %v8044_v57 }
 0x473   :  { %2803 = vmatpush.msrb.mxu1 %v8009_v15  ;;  %2756 = vmatpush.msrb.mxu0 %v8045_v1 }
 0x474   :  { %2830 = vmatpush.msra.mxu2 %v6633_v59  ;;  %2879 = vmatpush.msra.mxu3 %v8046_v20 }
 0x475   :  { %2805 = vmatpush.msrb.mxu1 %v8035_v31  ;;  %2760 = vmatpush.msrb.mxu0 %v8047_v14  ;;  %v8055_v14 = vld [vmem:[#allocation28_spill] sm:$0xff] }
 0x476   :  { %2832 = vmatpush.msra.mxu2 %v6649_v22  ;;  %2885 = vmatpush.msra.mxu3 %v8048_v49  ;;  %v8056_v49 = vld [vmem:[#allocation30_spill] sm:$0xff] }
 0x477   :  { %2807 = vmatpush.msrb.mxu1 %v8038_v34  ;;  %2764 = vmatpush.msrb.mxu0 %v8049_v9 }
 0x478   :  { %2834 = vmatpush.msra.mxu2 %v6666_v25  ;;  %2891 = vmatpush.msra.mxu3 %v8050_v62 }
 0x479   :  { %2809 = vmatpush.msrb.mxu1 %v8040_v47  ;;  %2768 = vmatpush.msrb.mxu0 %v8051_v12 }
 0x47a   :  { %2836 = vmatpush.msra.mxu2 %v6693_v61  ;;  %2897 = vmatpush.msra.mxu3 %v8052_v24  ;;  %v2059_v24 = vld [vmem:[#allocation2 + $0x20] sm:$0xff] }
 0x47b   :  { %2772 = vmatpush.msrb.mxu0 %v8053_v8 }
 0x47c   :  { %2838 = vmatpush.msra.mxu2 %v6701_v0  ;;  %2903 = vmatpush.msra.mxu3 %v8054_v27 }
 0x47d   :  { %2776 = vmatpush.msrb.mxu0 %v8055_v14 }
 0x47f   :  { %2780 = vmatpush.msrb.mxu0 %v8056_v49 }
 0x4c2   :  { %v2154_v9 = vpop.f32.mrf.mxu1 }
 0x4ca   :  { %v2093_v20 = vpop.f32.mrf.mxu0  ;;  %v2192_v57 = vpop.f32.mrf.mxu2 }
 0x4cb   :  { %v2155_v1 = vadd.f32 %v2154_v9, %v2093_v20  ;;  %v2297_v47 = vpop.f32.mrf.mxu1 }
 0x4cc   :  { %v2223_v62 = vpop.f32.mrf.mxu3 }
 0x4cd   :  { %v2193_v10 = vadd.f32 %v2192_v57, %v2155_v1 }
 0x4cf   :  { %v2224_v2 = vadd.f32 %v2223_v62, %v2193_v10 }
 0x4d3   :  { %v2330_v37 = vpop.f32.mrf.mxu2 }
 0x4d4   :  { %v2268_v12 = vpop.f32.mrf.mxu0 }
 0x4d5   :  { %v2269_v44 = vadd.f32 %v2268_v12, %v2224_v2  ;;  %v2460_v20 = vpop.f32.mrf.mxu1 }
 0x4d6   :  { %v2391_v27 = vpop.f32.mrf.mxu3 }
 0x4d7   :  { %v2298_v33 = vadd.f32 %v2297_v47, %v2269_v44  ;;  %v2392_v49 = vadd.f32 %v2391_v27, %v2330_v37 }
 0x4d9   :  { %v2537_v34 = vadd.f32 %v2298_v33, %v2059_v24 }
 0x4db   :  { %v5776_v8 = vmul.f32 -1.442695, %v2537_v34 }
 0x4dc   :  { %v2429_v14 = vpop.f32.mrf.mxu0 }
 0x4dd   :  { %5815 = vpow2.f32 %v5776_v8  ;;  %v2430_v53 = vadd.f32 %v2429_v14, %v2392_v49  ;;  %v2505_v10 = vpop.f32.mrf.mxu2  ;;  %v2060_v8 = vld [vmem:[#allocation2 + $0x28] sm:$0xff] }
 0x4df   :  { %v2461_v57 = vadd.f32 %v2460_v20, %v2430_v53  ;;  %v2534_v47 = vpop.f32.mrf.mxu3 }
 0x4e1   :  { %v2506_v9 = vadd.f32 %v2505_v10, %v2461_v57 }
 0x4e3   :  { %v5816_v4 = vpop.eup %5815  ;;  %v2535_v33 = vadd.f32 %v2534_v47, %v2506_v9 }
 0x4e4   :  { %v2541_v31 = vadd.f32 1.0, %v5816_v4 }
 0x4e5   :  { %v2557_v14 = vadd.f32 %v6949_v42, %v2535_v33 }
 0x4e6   :  { %5817 = vrcp.f32 %v2541_v31  ;;  %v2553_v44 = vand.u32 2147483648, %v2541_v31  ;;  %v2551_v12 = vand.u32 2147483647, %v2541_v31  ;;  %vm2547_vm10 = vweird.f32 %v2541_v31 }
 0x4e8   :  { %v2554_v37 = vor.u32 1.1754944e-38, %v2553_v44  ;;  %vm2552_vm12 = vcmp.eq.f32.partialorder %v2551_v12, 8.507059e+37  ;;  %v8058_v12 = vld [vmem:[#allocation20_spill] sm:$0xff] }
 0x4ec   :  { %v5818_v1 = vpop.eup %5817 }
 0x4ed   :  { %v2543_v2 = vmul.f32 %v5818_v1, %v2541_v31  ;;  %vm2548_vm9 = vweird.f32 %v5818_v1 }
 0x4ee   :  { %vm2549_vm11 = vmor %vm2547_vm10, %vm2548_vm9 }
 0x4ef   :  { %v2544_v62 = vsub.f32 1.0, %v2543_v2 }
 0x4f1   :  { %v2545_v34 = vmul.f32 %v5818_v1, %v2544_v62 }
 0x4f3   :  { %v2546_v24 = vadd.f32 %v5818_v1, %v2545_v34  ;;  %v8057_v34 = vld [vmem:[#allocation22_spill] sm:$0xff] }
 0x4f5   :  { %v2550_v4 = vsel %vm2549_vm11, %v5818_v1, %v2546_v24  ;;  %v8059_v24 = vld [vmem:[#allocation32_spill] sm:$0xff] }
 0x4f6   :  { %v2555_v53 = vsel %vm2552_vm12, %v2554_v37, %v2550_v4  ;;  %v8060_v37 = vld [vmem:[#allocation26_spill] sm:$0xff]  ;;  %v8061_v4 = vld [vmem:[#allocation24_spill] sm:$0xff] }
 0x4f7   :  { %v2558_v49 = vmul.f32 %v2557_v14, %v2555_v53  ;;  %v2561_v57 = vsub.f32 1.0, %v2555_v53  ;;  %v2567_v9 = vmul.f32 %v2555_v53, %v7058_v17  ;;  %v8062_v14 = vld [vmem:[#allocation29_spill] sm:$0xff]  ;;  %v8063_v53 = vld [vmem:[#allocation27_spill] sm:$0xff] }
 0x4f9   :  { %v2559_v27 = vadd.f32 %v2558_v49, %v2060_v8  ;;  %v8064_v49 = vld [vmem:[#allocation33_spill] sm:$0xff]  ;;  %v8065_v8 = vld [vmem:[#allocation34_spill] sm:$0xff] }
 0x4fb   :  { %5819 = vtanh.f32 %v2559_v27  ;;  %v8066_v27 = vld [vmem:[#allocation4_spill] sm:$0xff] }
 0x501   :  { %v5820_v20 = vpop.eup %5819 }
 0x502   :  { %2563 = vrot.lane.b32.xlu2 %v5820_v20, %s5888_s16  ;;  %v8067_v20 = vld [vmem:[#allocation35_spill] sm:$0xff] }
 0x55c   :  { %v2564_v10 = vpop.permute.xlu2 %2563 }
 0x55d   :  { %v2566_v2 = vmul.f32 %v2564_v10, %v2561_v57  ;;  %v8068_v57 = vld [vmem:[#allocation7_spill] sm:$0xff]  ;;  %v8069_v10 = vld [vmem:[#allocation36_spill] sm:$0xff] }
 0x55f   :  { %v7163_v31 = vadd.f32 %v2567_v9, %v2566_v2  ;;  %v8070_v9 = vld [vmem:[#allocation11_spill] sm:$0xff]  ;;  %v8071_v2 = vld [vmem:[#allocation37_spill] sm:$0xff] }
 0x561   :  { %2570 = vrot.lane.b32.xlu2 %v7163_v31, %s5888_s16 }
 0x5bb   :  { %v2571_v1 = vpop.permute.xlu2 %2570 }
 0x5bc   :  { %2573 = vst.msk [vmem:[#allocation3 + $0x10] sm:$0xff] %vm59_vm0, %v2571_v1  ;;  %v2576_v42 = vsel %vm59_vm0, %v2571_v1, 0  ;;  %v8072_v1 = vld [vmem:[#allocation14_spill] sm:$0xff] }
 0x5bd   :  { %v2602_v62 = vand.u32 4294901760, %v2576_v42 }
 0x5bf   :  { %v2603_v47 = vsub.f32 %v2576_v42, %v2602_v62  ;;  %2668 = vmatmul.f32.vlgmr.msra.gmra.mxu1 %v2602_v62  ;;  %v8073_v42 = vld [vmem:[#allocation38_spill] sm:$0xff] }
 0x5c0   :  { %2956 = vmatpush.msra.mxu1 %v6592_v7 }
 0x5c1   :  { %v2604_v44 = vand.u32 4294901760, %v2603_v47  ;;  %2706 = vmatmul.f32.vlgmr.msrb.gmra.mxu2 %v2603_v47 }
 0x5c2   :  { %2958 = vmatpush.msra.mxu1 %v6606_v13  ;;  %2989 = vmatpush.msrb.mxu2 %v6636_v48 }
 0x5c3   :  { %v2605_v17 = vsub.f32 %v2603_v47, %v2604_v44  ;;  %2737 = vmatmul.f32.vlgmr.msrb.gmra.mxu3 %v2604_v44 }
 0x5c4   :  { %2960 = vmatpush.msra.mxu1 %v6617_v54  ;;  %2993 = vmatpush.msrb.mxu2 %v6658_v36 }
 0x5c5   :  { %v2606_v33 = vand.u32 4294901760, %v2605_v17  ;;  %3032 = vmatpush.msrb.mxu3 %v6592_v7  ;;  %v8077_v17 = vld [vmem:[#allocation40_spill] sm:$0xff] }
 0x5c6   :  { %2962 = vmatpush.msra.mxu1 %v6633_v59  ;;  %2997 = vmatpush.msrb.mxu2 %v6683_v56 }
 0x5c7   :  { %3034 = vmatpush.msrb.mxu3 %v6606_v13  ;;  %2607 = vmatmul.f32.vlgmr.msra.gmra.mxu0 %v2606_v33 }
 0x5c8   :  { %2811 = vmatmul.f32.vlgmr.msrb.gmra.mxu1 %v2602_v62  ;;  %2919 = vmatpush.msra.mxu0 %v6626_v63 }
 0x5c9   :  { %2964 = vmatpush.msra.mxu1 %v6649_v22  ;;  %3001 = vmatpush.msrb.mxu2 %v6688_v52 }
 0x5ca   :  { %3036 = vmatpush.msrb.mxu3 %v6617_v54  ;;  %2844 = vmatmul.f32.vlgmr.msra.gmra.mxu2 %v2606_v33  ;;  %v8078_v33 = vld [vmem:[#allocation28_spill] sm:$0xff] }
 0x5cb   :  { %2922 = vmatpush.msra.mxu0 %v6640_v55  ;;  %2966 = vmatpush.msra.mxu1 %v6666_v25 }
 0x5cc   :  { %3005 = vmatpush.msrb.mxu2 %v6708_v23  ;;  %3038 = vmatpush.msrb.mxu3 %v6633_v59 }
 0x5cd   :  { %2905 = vmatmul.f32.vlgmr.msra.gmra.mxu3 %v2602_v62  ;;  %2925 = vmatpush.msra.mxu0 %v6661_v39 }
 0x5ce   :  { %2968 = vmatpush.msra.mxu1 %v6693_v61  ;;  %3009 = vmatpush.msrb.mxu2 %v6728_v6 }
 0x5cf   :  { %3040 = vmatpush.msrb.mxu3 %v6649_v22  ;;  %2928 = vmatpush.msra.mxu0 %v6673_v35 }
 0x5d0   :  { %2970 = vmatpush.msra.mxu1 %v6701_v0  ;;  %3013 = vmatpush.msrb.mxu2 %v6745_v19 }
 0x5d1   :  { %3042 = vmatpush.msrb.mxu3 %v6666_v25  ;;  %2782 = vmatmul.f32.vlgmr.msrb.gmra.mxu0 %v2602_v62 }
 0x5d2   :  { %2974 = vmatmul.f32.vlgmr.msra.gmra.mxu1 %v2604_v44  ;;  %2931 = vmatpush.msra.mxu0 %v6691_v30  ;;  %v8076_v44 = vld [vmem:[#allocation23_spill] sm:$0xff] }
 0x5d3   :  { %3017 = vmatpush.msrb.mxu2 %v6751_v18  ;;  %3044 = vmatpush.msrb.mxu3 %v6693_v61 }
 0x5d4   :  { %3019 = vmatmul.f32.vlgmr.msrb.gmra.mxu2 %v2602_v62  ;;  %2934 = vmatpush.msra.mxu0 %v6711_v46 }
 0x5d5   :  { %3046 = vmatpush.msrb.mxu3 %v6701_v0  ;;  %3139 = vmatpush.msrb.mxu1 %v6413_v41 }
 0x5d6   :  { %3048 = vmatmul.f32.vlgmr.msrb.gmra.mxu3 %v2602_v62  ;;  %2937 = vmatpush.msra.mxu0 %v6731_v16  ;;  %v8074_v62 = vld [vmem:[#allocation18_spill] sm:$0xff] }
 0x5d7   :  { %3145 = vmatpush.msrb.mxu1 %v6444_v43  ;;  %3197 = vmatpush.msra.mxu2 %v6392_v51 }
 0x5d8   :  { %2940 = vmatpush.msra.mxu0 %v6738_v5  ;;  %3234 = vmatpush.msra.mxu3 %v6385_v40 }
 0x5d9   :  { %2943 = vmatmul.f32.vlgmr.msra.gmra.mxu0 %v2603_v47  ;;  %3151 = vmatpush.msrb.mxu1 %v6483_v58  ;;  %v8075_v47 = vld [vmem:[#allocation39_spill] sm:$0xff] }
 0x5da   :  { %3200 = vmatpush.msra.mxu2 %v7999_v3  ;;  %3236 = vmatpush.msra.mxu3 %v8000_v21 }
 0x5db   :  { %3157 = vmatpush.msrb.mxu1 %v8001_v45  ;;  %3102 = vmatpush.msrb.mxu0 %v6385_v40 }
 0x5dc   :  { %3203 = vmatpush.msra.mxu2 %v8002_v28  ;;  %3238 = vmatpush.msra.mxu3 %v8003_v38 }
 0x5dd   :  { %3163 = vmatpush.msrb.mxu1 %v8004_v50  ;;  %3104 = vmatpush.msrb.mxu0 %v8000_v21 }
 0x5de   :  { %3206 = vmatpush.msra.mxu2 %v8005_v60  ;;  %3240 = vmatpush.msra.mxu3 %v8006_v29 }
 0x5df   :  { %3169 = vmatpush.msrb.mxu1 %v8007_v11  ;;  %3106 = vmatpush.msrb.mxu0 %v8003_v38 }
 0x5e0   :  { %3209 = vmatpush.msra.mxu2 %v8008_v32  ;;  %3242 = vmatpush.msra.mxu3 %v8009_v15 }
 0x5e1   :  { %3175 = vmatpush.msrb.mxu1 %v8010_v26  ;;  %3108 = vmatpush.msrb.mxu0 %v8006_v29 }
 0x5e2   :  { %3212 = vmatpush.msra.mxu2 %v8057_v34  ;;  %3244 = vmatpush.msra.mxu3 %v8058_v12 }
 0x5e3   :  { %3181 = vmatpush.msrb.mxu1 %v8059_v24  ;;  %3110 = vmatpush.msrb.mxu0 %v8009_v15 }
 0x5e4   :  { %3215 = vmatpush.msra.mxu2 %v8060_v37  ;;  %3246 = vmatpush.msra.mxu3 %v8061_v4 }
 0x5e5   :  { %3310 = vmatpush.msra.mxu1 %v6385_v40  ;;  %3112 = vmatpush.msrb.mxu0 %v8058_v12 }
 0x5e6   :  { %3218 = vmatpush.msra.mxu2 %v8062_v14  ;;  %3248 = vmatpush.msra.mxu3 %v8063_v53 }
 0x5e7   :  { %3312 = vmatpush.msra.mxu1 %v8000_v21  ;;  %3114 = vmatpush.msrb.mxu0 %v8061_v4 }
 0x5e8   :  { %3339 = vmatpush.msrb.mxu2 %v6592_v7  ;;  %3376 = vmatpush.msrb.mxu3 %v8064_v49 }
 0x5e9   :  { %3314 = vmatpush.msra.mxu1 %v8003_v38  ;;  %3116 = vmatpush.msrb.mxu0 %v8063_v53 }
 0x5ea   :  { %3341 = vmatpush.msrb.mxu2 %v6606_v13  ;;  %3382 = vmatpush.msrb.mxu3 %v8065_v8 }
 0x5eb   :  { %3316 = vmatpush.msra.mxu1 %v8006_v29  ;;  %3267 = vmatpush.msra.mxu0 %v8066_v27 }
 0x5ec   :  { %3343 = vmatpush.msrb.mxu2 %v6617_v54  ;;  %3388 = vmatpush.msrb.mxu3 %v8067_v20 }
 0x5ed   :  { %3318 = vmatpush.msra.mxu1 %v8009_v15  ;;  %3271 = vmatpush.msra.mxu0 %v8068_v57 }
 0x5ee   :  { %3345 = vmatpush.msrb.mxu2 %v6633_v59  ;;  %3394 = vmatpush.msrb.mxu3 %v8069_v10 }
 0x5ef   :  { %3320 = vmatpush.msra.mxu1 %v8058_v12  ;;  %3275 = vmatpush.msra.mxu0 %v8070_v9 }
 0x5f0   :  { %3347 = vmatpush.msrb.mxu2 %v6649_v22  ;;  %3400 = vmatpush.msrb.mxu3 %v8071_v2  ;;  %v8079_v2 = vld [vmem:[#allocation30_spill] sm:$0xff] }
 0x5f1   :  { %3322 = vmatpush.msra.mxu1 %v8061_v4  ;;  %3279 = vmatpush.msra.mxu0 %v8072_v1 }
 0x5f2   :  { %3349 = vmatpush.msrb.mxu2 %v6666_v25  ;;  %3406 = vmatpush.msrb.mxu3 %v8073_v42 }
 0x5f3   :  { %3324 = vmatpush.msra.mxu1 %v8063_v53  ;;  %3283 = vmatpush.msra.mxu0 %v8074_v62 }
 0x5f4   :  { %3351 = vmatpush.msrb.mxu2 %v6693_v61  ;;  %3412 = vmatpush.msrb.mxu3 %v8075_v47  ;;  %v2574_v47 = vld [vmem:[#allocation2 + $0x30] sm:$0xff] }
 0x5f5   :  { %3287 = vmatpush.msra.mxu0 %v8076_v44 }
 0x5f6   :  { %3353 = vmatpush.msrb.mxu2 %v6701_v0  ;;  %3418 = vmatpush.msrb.mxu3 %v8077_v17 }
 0x5f7   :  { %3291 = vmatpush.msra.mxu0 %v8078_v33 }
 0x5f9   :  { %3295 = vmatpush.msra.mxu0 %v8079_v2 }
 0x63c   :  { %v2669_v1 = vpop.f32.mrf.mxu1 }
 0x644   :  { %v2608_v9 = vpop.f32.mrf.mxu0  ;;  %v2707_v57 = vpop.f32.mrf.mxu2 }
 0x645   :  { %v2670_v10 = vadd.f32 %v2669_v1, %v2608_v9  ;;  %v2812_v49 = vpop.f32.mrf.mxu1 }
 0x646   :  { %v2738_v42 = vpop.f32.mrf.mxu3 }
 0x647   :  { %v2708_v20 = vadd.f32 %v2707_v57, %v2670_v10 }
 0x649   :  { %v2739_v27 = vadd.f32 %v2738_v42, %v2708_v20 }
 0x64d   :  { %v2845_v4 = vpop.f32.mrf.mxu2 }
 0x64e   :  { %v2783_v62 = vpop.f32.mrf.mxu0 }
 0x64f   :  { %v2784_v8 = vadd.f32 %v2783_v62, %v2739_v27  ;;  %v2975_v9 = vpop.f32.mrf.mxu1 }
 0x650   :  { %v2906_v17 = vpop.f32.mrf.mxu3 }
 0x651   :  { %v2813_v53 = vadd.f32 %v2812_v49, %v2784_v8  ;;  %v2907_v2 = vadd.f32 %v2906_v17, %v2845_v4 }
 0x653   :  { %v3052_v14 = vadd.f32 %v2813_v53, %v2574_v47 }
 0x655   :  { %v5777_v44 = vmul.f32 -1.442695, %v3052_v14 }
 0x656   :  { %v2944_v33 = vpop.f32.mrf.mxu0 }
 0x657   :  { %5821 = vpow2.f32 %v5777_v44  ;;  %v2945_v12 = vadd.f32 %v2944_v33, %v2907_v2  ;;  %v3020_v20 = vpop.f32.mrf.mxu2  ;;  %v2575_v33 = vld [vmem:[#allocation2 + $0x38] sm:$0xff] }
 0x659   :  { %v2976_v57 = vadd.f32 %v2975_v9, %v2945_v12  ;;  %v3049_v49 = vpop.f32.mrf.mxu3  ;;  %v7268_v12 = vld [vmem:[%s7846_s4] ss:$0 sm:$0xff] }
 0x65b   :  { %v3021_v1 = vadd.f32 %v3020_v20, %v2976_v57 }
 0x65d   :  { %v5822_v37 = vpop.eup %5821  ;;  %v3050_v53 = vadd.f32 %v3049_v49, %v3021_v1 }
 0x65e   :  { %v3056_v24 = vadd.f32 1.0, %v5822_v37 }
 0x65f   :  { %v3072_v2 = vadd.f32 %v7268_v12, %v3050_v53 }
 0x660   :  { %5823 = vrcp.f32 %v3056_v24  ;;  %v3068_v8 = vand.u32 2147483648, %v3056_v24  ;;  %v3066_v62 = vand.u32 2147483647, %v3056_v24  ;;  %vm3062_vm14 = vweird.f32 %v3056_v24 }
 0x662   :  { %v3069_v4 = vor.u32 1.1754944e-38, %v3068_v8  ;;  %vm3067_vm1 = vcmp.eq.f32.partialorder %v3066_v62, 8.507059e+37 }
 0x666   :  { %v5824_v10 = vpop.eup %5823 }
 0x667   :  { %v3058_v27 = vmul.f32 %v5824_v10, %v3056_v24  ;;  %vm3063_vm13 = vweird.f32 %v5824_v10 }
 0x668   :  { %vm3064_vm15 = vmor %vm3062_vm14, %vm3063_vm13 }
 0x669   :  { %v3059_v42 = vsub.f32 1.0, %v3058_v27 }
 0x66b   :  { %v3060_v14 = vmul.f32 %v5824_v10, %v3059_v42 }
 0x66d   :  { %v3061_v47 = vadd.f32 %v5824_v10, %v3060_v14 }
 0x66f   :  { %v3065_v37 = vsel %vm3064_vm15, %v5824_v10, %v3061_v47  ;;  %v8080_v47 = vld [vmem:[#allocation20_spill] sm:$0xff] }
 0x670   :  { %v3070_v44 = vsel %vm3067_vm1, %v3069_v4, %v3065_v37  ;;  %v8081_v4 = vld [vmem:[#allocation32_spill] sm:$0xff]  ;;  %v8082_v37 = vld [vmem:[#allocation26_spill] sm:$0xff] }
 0x671   :  { %v3073_v17 = vmul.f32 %v3072_v2, %v3070_v44  ;;  %v3076_v24 = vsub.f32 1.0, %v3070_v44  ;;  %v3082_v10 = vmul.f32 %v3070_v44, %v7163_v31  ;;  %v8083_v2 = vld [vmem:[#allocation24_spill] sm:$0xff]  ;;  %v8084_v44 = vld [vmem:[#allocation29_spill] sm:$0xff] }
 0x673   :  { %v3074_v9 = vadd.f32 %v3073_v17, %v2575_v33  ;;  %v8085_v17 = vld [vmem:[#allocation27_spill] sm:$0xff]  ;;  %v8086_v33 = vld [vmem:[#allocation33_spill] sm:$0xff] }
 0x675   :  { %5825 = vtanh.f32 %v3074_v9  ;;  %v8087_v9 = vld [vmem:[#allocation34_spill] sm:$0xff] }
 0x67b   :  { %v5826_v57 = vpop.eup %5825 }
 0x67c   :  { %3078 = vrot.lane.b32.xlu0 %v5826_v57, %s5888_s16  ;;  %v8088_v57 = vld [vmem:[#allocation4_spill] sm:$0xff] }
 0x6ee   :  { %v3079_v20 = vpop.permute.xlu0 %3078 }
 0x6ef   :  { %v3081_v1 = vmul.f32 %v3079_v20, %v3076_v24  ;;  %v8089_v24 = vld [vmem:[#allocation35_spill] sm:$0xff] }
 0x6f0   :  { %v8090_v20 = vld [vmem:[#allocation7_spill] sm:$0xff] }
 0x6f1   :  { %v7273_v27 = vadd.f32 %v3082_v10, %v3081_v1  ;;  %v8091_v10 = vld [vmem:[#allocation36_spill] sm:$0xff]  ;;  %v8092_v1 = vld [vmem:[#allocation11_spill] sm:$0xff] }
 0x6f3   :  { %3085 = vrot.lane.b32.xlu1 %v7273_v27, %s5888_s16 }
 0x765   :  { %v3086_v42 = vpop.permute.xlu1 %3085 }
 0x766   :  { %3088 = vst.msk [vmem:[#allocation3 + $0x18] sm:$0xff] %vm59_vm0, %v3086_v42  ;;  %v3091_v49 = vsel %vm59_vm0, %v3086_v42, 0  ;;  %v8093_v42 = vld [vmem:[#allocation37_spill] sm:$0xff] }
 0x767   :  { %v3117_v8 = vand.u32 4294901760, %v3091_v49 }
 0x769   :  { %v3118_v53 = vsub.f32 %v3091_v49, %v3117_v8  ;;  %3183 = vmatmul.f32.vlgmr.msrb.gmra.mxu1 %v3117_v8  ;;  %v8094_v49 = vld [vmem:[#allocation14_spill] sm:$0xff] }
 0x76a   :  { %3471 = vmatpush.msrb.mxu1 %v6592_v7 }
 0x76b   :  { %v3119_v14 = vand.u32 4294901760, %v3118_v53  ;;  %3221 = vmatmul.f32.vlgmr.msra.gmra.mxu2 %v3118_v53 }
 0x76c   :  { %3473 = vmatpush.msrb.mxu1 %v6606_v13  ;;  %3504 = vmatpush.msra.mxu2 %v6636_v48 }
 0x76d   :  { %v3120_v31 = vsub.f32 %v3118_v53, %v3119_v14  ;;  %3252 = vmatmul.f32.vlgmr.msra.gmra.mxu3 %v3119_v14 }
 0x76e   :  { %3475 = vmatpush.msrb.mxu1 %v6617_v54  ;;  %3508 = vmatpush.msra.mxu2 %v6658_v36 }
 0x76f   :  { %v3121_v62 = vand.u32 4294901760, %v3120_v31  ;;  %3547 = vmatpush.msra.mxu3 %v6592_v7  ;;  %v8098_v31 = vld [vmem:[#allocation23_spill] sm:$0xff] }
 0x770   :  { %3477 = vmatpush.msrb.mxu1 %v6633_v59  ;;  %3512 = vmatpush.msra.mxu2 %v6683_v56 }
 0x771   :  { %3549 = vmatpush.msra.mxu3 %v6606_v13  ;;  %3122 = vmatmul.f32.vlgmr.msrb.gmra.mxu0 %v3121_v62 }
 0x772   :  { %3326 = vmatmul.f32.vlgmr.msra.gmra.mxu1 %v3117_v8  ;;  %3434 = vmatpush.msrb.mxu0 %v6626_v63 }
 0x773   :  { %3479 = vmatpush.msrb.mxu1 %v6649_v22  ;;  %3516 = vmatpush.msra.mxu2 %v6688_v52 }
 0x774   :  { %3551 = vmatpush.msra.mxu3 %v6617_v54  ;;  %3359 = vmatmul.f32.vlgmr.msrb.gmra.mxu2 %v3121_v62  ;;  %v8099_v62 = vld [vmem:[#allocation40_spill] sm:$0xff] }
 0x775   :  { %3437 = vmatpush.msrb.mxu0 %v6640_v55  ;;  %3481 = vmatpush.msrb.mxu1 %v6666_v25 }
 0x776   :  { %3520 = vmatpush.msra.mxu2 %v6708_v23  ;;  %3553 = vmatpush.msra.mxu3 %v6633_v59 }
 0x777   :  { %3420 = vmatmul.f32.vlgmr.msrb.gmra.mxu3 %v3117_v8  ;;  %3440 = vmatpush.msrb.mxu0 %v6661_v39 }
 0x778   :  { %3483 = vmatpush.msrb.mxu1 %v6693_v61  ;;  %3524 = vmatpush.msra.mxu2 %v6728_v6 }
 0x779   :  { %3555 = vmatpush.msra.mxu3 %v6649_v22  ;;  %3443 = vmatpush.msrb.mxu0 %v6673_v35 }
 0x77a   :  { %3485 = vmatpush.msrb.mxu1 %v6701_v0  ;;  %3528 = vmatpush.msra.mxu2 %v6745_v19 }
 0x77b   :  { %3557 = vmatpush.msra.mxu3 %v6666_v25  ;;  %3297 = vmatmul.f32.vlgmr.msra.gmra.mxu0 %v3117_v8 }
 0x77c   :  { %3489 = vmatmul.f32.vlgmr.msrb.gmra.mxu1 %v3119_v14  ;;  %3446 = vmatpush.msrb.mxu0 %v6691_v30  ;;  %v8097_v14 = vld [vmem:[#allocation39_spill] sm:$0xff] }
 0x77d   :  { %3532 = vmatpush.msra.mxu2 %v6751_v18  ;;  %3559 = vmatpush.msra.mxu3 %v6693_v61 }
 0x77e   :  { %3534 = vmatmul.f32.vlgmr.msra.gmra.mxu2 %v3117_v8  ;;  %3449 = vmatpush.msrb.mxu0 %v6711_v46 }
 0x77f   :  { %3561 = vmatpush.msra.mxu3 %v6701_v0  ;;  %3654 = vmatpush.msra.mxu1 %v6413_v41 }
 0x780   :  { %3563 = vmatmul.f32.vlgmr.msra.gmra.mxu3 %v3117_v8  ;;  %3452 = vmatpush.msrb.mxu0 %v6731_v16  ;;  %v8095_v8 = vld [vmem:[#allocation38_spill] sm:$0xff] }
 0x781   :  { %3660 = vmatpush.msra.mxu1 %v6444_v43  ;;  %3712 = vmatpush.msrb.mxu2 %v6392_v51 }
 0x782   :  { %3455 = vmatpush.msrb.mxu0 %v6738_v5  ;;  %3749 = vmatpush.msrb.mxu3 %v6385_v40 }
 0x783   :  { %3458 = vmatmul.f32.vlgmr.msrb.gmra.mxu0 %v3118_v53  ;;  %3666 = vmatpush.msra.mxu1 %v6483_v58  ;;  %v8096_v53 = vld [vmem:[#allocation18_spill] sm:$0xff] }
 0x784   :  { %3715 = vmatpush.msrb.mxu2 %v7999_v3  ;;  %3751 = vmatpush.msrb.mxu3 %v8000_v21 }
 0x785   :  { %3672 = vmatpush.msra.mxu1 %v8001_v45  ;;  %3617 = vmatpush.msra.mxu0 %v6385_v40 }
 0x786   :  { %3718 = vmatpush.msrb.mxu2 %v8002_v28  ;;  %3753 = vmatpush.msrb.mxu3 %v8003_v38 }
 0x787   :  { %3678 = vmatpush.msra.mxu1 %v8004_v50  ;;  %3619 = vmatpush.msra.mxu0 %v8000_v21 }
 0x788   :  { %3721 = vmatpush.msrb.mxu2 %v8005_v60  ;;  %3755 = vmatpush.msrb.mxu3 %v8006_v29 }
 0x789   :  { %3684 = vmatpush.msra.mxu1 %v8007_v11  ;;  %3621 = vmatpush.msra.mxu0 %v8003_v38 }
 0x78a   :  { %3724 = vmatpush.msrb.mxu2 %v8008_v32  ;;  %3757 = vmatpush.msrb.mxu3 %v8009_v15 }
 0x78b   :  { %3690 = vmatpush.msra.mxu1 %v8010_v26  ;;  %3623 = vmatpush.msra.mxu0 %v8006_v29 }
 0x78c   :  { %3727 = vmatpush.msrb.mxu2 %v8057_v34  ;;  %3759 = vmatpush.msrb.mxu3 %v8080_v47 }
 0x78d   :  { %3696 = vmatpush.msra.mxu1 %v8081_v4  ;;  %3625 = vmatpush.msra.mxu0 %v8009_v15 }
 0x78e   :  { %3730 = vmatpush.msrb.mxu2 %v8082_v37  ;;  %3761 = vmatpush.msrb.mxu3 %v8083_v2 }
 0x78f   :  { %3825 = vmatpush.msrb.mxu1 %v6385_v40  ;;  %3627 = vmatpush.msra.mxu0 %v8080_v47 }
 0x790   :  { %3733 = vmatpush.msrb.mxu2 %v8084_v44  ;;  %3763 = vmatpush.msrb.mxu3 %v8085_v17 }
 0x791   :  { %3827 = vmatpush.msrb.mxu1 %v8000_v21  ;;  %3629 = vmatpush.msra.mxu0 %v8083_v2 }
 0x792   :  { %3854 = vmatpush.msra.mxu2 %v6592_v7  ;;  %3891 = vmatpush.msra.mxu3 %v8086_v33 }
 0x793   :  { %3829 = vmatpush.msrb.mxu1 %v8003_v38  ;;  %3631 = vmatpush.msra.mxu0 %v8085_v17 }
 0x794   :  { %3856 = vmatpush.msra.mxu2 %v6606_v13  ;;  %3897 = vmatpush.msra.mxu3 %v8087_v9 }
 0x795   :  { %3831 = vmatpush.msrb.mxu1 %v8006_v29  ;;  %3782 = vmatpush.msrb.mxu0 %v8088_v57 }
 0x796   :  { %3858 = vmatpush.msra.mxu2 %v6617_v54  ;;  %3903 = vmatpush.msra.mxu3 %v8089_v24 }
 0x797   :  { %3833 = vmatpush.msrb.mxu1 %v8009_v15  ;;  %3786 = vmatpush.msrb.mxu0 %v8090_v20 }
 0x798   :  { %3860 = vmatpush.msra.mxu2 %v6633_v59  ;;  %3909 = vmatpush.msra.mxu3 %v8091_v10 }
 0x799   :  { %3835 = vmatpush.msrb.mxu1 %v8080_v47  ;;  %3790 = vmatpush.msrb.mxu0 %v8092_v1  ;;  %v8100_v1 = vld [vmem:[#allocation28_spill] sm:$0xff] }
 0x79a   :  { %3862 = vmatpush.msra.mxu2 %v6649_v22  ;;  %3915 = vmatpush.msra.mxu3 %v8093_v42  ;;  %v8101_v42 = vld [vmem:[#allocation30_spill] sm:$0xff] }
 0x79b   :  { %3837 = vmatpush.msrb.mxu1 %v8083_v2  ;;  %3794 = vmatpush.msrb.mxu0 %v8094_v49 }
 0x79c   :  { %3864 = vmatpush.msra.mxu2 %v6666_v25  ;;  %3921 = vmatpush.msra.mxu3 %v8095_v8 }
 0x79d   :  { %3839 = vmatpush.msrb.mxu1 %v8085_v17  ;;  %3798 = vmatpush.msrb.mxu0 %v8096_v53 }
 0x79e   :  { %3866 = vmatpush.msra.mxu2 %v6693_v61  ;;  %3927 = vmatpush.msra.mxu3 %v8097_v14  ;;  %v3089_v14 = vld [vmem:[#allocation2 + $0x40] sm:$0xff] }
 0x79f   :  { %3802 = vmatpush.msrb.mxu0 %v8098_v31 }
 0x7a0   :  { %3868 = vmatpush.msra.mxu2 %v6701_v0  ;;  %3933 = vmatpush.msra.mxu3 %v8099_v62 }
 0x7a1   :  { %3806 = vmatpush.msrb.mxu0 %v8100_v1 }
 0x7a3   :  { %3810 = vmatpush.msrb.mxu0 %v8101_v42 }
 0x7e6   :  { %v3184_v49 = vpop.f32.mrf.mxu1 }
 0x7ee   :  { %v3123_v10 = vpop.f32.mrf.mxu0  ;;  %v3222_v24 = vpop.f32.mrf.mxu2 }
 0x7ef   :  { %v3185_v20 = vadd.f32 %v3184_v49, %v3123_v10  ;;  %v3327_v17 = vpop.f32.mrf.mxu1 }
 0x7f0   :  { %v3253_v8 = vpop.f32.mrf.mxu3 }
 0x7f1   :  { %v3223_v57 = vadd.f32 %v3222_v24, %v3185_v20 }
 0x7f3   :  { %v3254_v9 = vadd.f32 %v3253_v8, %v3223_v57 }
 0x7f7   :  { %v3360_v37 = vpop.f32.mrf.mxu2 }
 0x7f8   :  { %v3298_v53 = vpop.f32.mrf.mxu0 }
 0x7f9   :  { %v3299_v33 = vadd.f32 %v3298_v53, %v3254_v9  ;;  %v3490_v10 = vpop.f32.mrf.mxu1 }
 0x7fa   :  { %v3421_v62 = vpop.f32.mrf.mxu3 }
 0x7fb   :  { %v3328_v44 = vadd.f32 %v3327_v17, %v3299_v33  ;;  %v3422_v42 = vadd.f32 %v3421_v62, %v3360_v37 }
 0x7fd   :  { %v3567_v2 = vadd.f32 %v3328_v44, %v3089_v14 }
 0x7ff   :  { %v5778_v31 = vmul.f32 -1.442695, %v3567_v2 }
 0x800   :  { %v3459_v1 = vpop.f32.mrf.mxu0 }
 0x801   :  { %5827 = vpow2.f32 %v5778_v31  ;;  %v3460_v34 = vadd.f32 %v3459_v1, %v3422_v42  ;;  %v3535_v57 = vpop.f32.mrf.mxu2  ;;  %v3090_v31 = vld [vmem:[#allocation2 + $0x48] sm:$0xff] }
 0x803   :  { %v3491_v24 = vadd.f32 %v3490_v10, %v3460_v34  ;;  %v3564_v17 = vpop.f32.mrf.mxu3 }
 0x805   :  { %v3536_v49 = vadd.f32 %v3535_v57, %v3491_v24 }
 0x807   :  { %v5828_v4 = vpop.eup %5827  ;;  %v3565_v44 = vadd.f32 %v3564_v17, %v3536_v49 }
 0x808   :  { %v3571_v47 = vadd.f32 1.0, %v5828_v4 }
 0x809   :  { %v3587_v1 = vadd.f32 %v7268_v12, %v3565_v44 }
 0x80a   :  { %5829 = vrcp.f32 %v3571_v47  ;;  %v3583_v33 = vand.u32 2147483648, %v3571_v47  ;;  %v3581_v53 = vand.u32 2147483647, %v3571_v47  ;;  %vm3577_vm3 = vweird.f32 %v3571_v47 }
 0x80c   :  { %v3584_v37 = vor.u32 1.1754944e-38, %v3583_v33  ;;  %vm3582_vm5 = vcmp.eq.f32.partialorder %v3581_v53, 8.507059e+37  ;;  %v8102_v53 = vld [vmem:[#allocation22_spill] sm:$0xff] }
 0x810   :  { %v5830_v20 = vpop.eup %5829 }
 0x811   :  { %v3573_v9 = vmul.f32 %v5830_v20, %v3571_v47  ;;  %vm3578_vm2 = vweird.f32 %v5830_v20 }
 0x812   :  { %vm3579_vm4 = vmor %vm3577_vm3, %vm3578_vm2  ;;  %vm5157_vm3 = vcmask 261120  }
 0x813   :  { %v3574_v8 = vsub.f32 1.0, %v3573_v9 }
 0x815   :  { %v3575_v2 = vmul.f32 %v5830_v20, %v3574_v8 }
 0x817   :  { %v3576_v14 = vadd.f32 %v5830_v20, %v3575_v2 }
 0x819   :  { %v3580_v4 = vsel %vm3579_vm4, %v5830_v20, %v3576_v14  ;;  %v8103_v14 = vld [vmem:[#allocation20_spill] sm:$0xff] }
 0x81a   :  { %v3585_v34 = vsel %vm3582_vm5, %v3584_v37, %v3580_v4  ;;  %v8104_v37 = vld [vmem:[#allocation32_spill] sm:$0xff]  ;;  %v8105_v4 = vld [vmem:[#allocation26_spill] sm:$0xff] }
 0x81b   :  { %v3588_v42 = vmul.f32 %v3587_v1, %v3585_v34  ;;  %v3591_v24 = vsub.f32 1.0, %v3585_v34  ;;  %v3597_v49 = vmul.f32 %v3585_v34, %v7273_v27  ;;  %v8106_v1 = vld [vmem:[#allocation24_spill] sm:$0xff]  ;;  %v8107_v34 = vld [vmem:[#allocation29_spill] sm:$0xff] }
 0x81d   :  { %v3589_v62 = vadd.f32 %v3588_v42, %v3090_v31  ;;  %v8108_v42 = vld [vmem:[#allocation27_spill] sm:$0xff]  ;;  %v8109_v31 = vld [vmem:[#allocation33_spill] sm:$0xff] }
 0x81f   :  { %5831 = vtanh.f32 %v3589_v62  ;;  %v8110_v62 = vld [vmem:[#allocation34_spill] sm:$0xff] }
 0x825   :  { %v5832_v10 = vpop.eup %5831 }
 0x826   :  { %3593 = vrot.lane.b32.xlu2 %v5832_v10, %s5888_s16  ;;  %v8111_v10 = vld [vmem:[#allocation4_spill] sm:$0xff] }
 0x880   :  { %v3594_v57 = vpop.permute.xlu2 %3593 }
 0x881   :  { %v3596_v9 = vmul.f32 %v3594_v57, %v3591_v24  ;;  %v8112_v24 = vld [vmem:[#allocation35_spill] sm:$0xff] }
 0x882   :  { %v8113_v57 = vld [vmem:[#allocation7_spill] sm:$0xff] }
 0x883   :  { %v7378_v47 = vadd.f32 %v3597_v49, %v3596_v9  ;;  %v8114_v49 = vld [vmem:[#allocation36_spill] sm:$0xff]  ;;  %v8115_v9 = vld [vmem:[#allocation11_spill] sm:$0xff] }
 0x885   :  { %3600 = vrot.lane.b32.xlu0 %v7378_v47, %s5888_s16 }
 0x8f7   :  { %v3601_v20 = vpop.permute.xlu0 %3600 }
 0x8f8   :  { %3603 = vst.msk [vmem:[#allocation3 + $0x20] sm:$0xff] %vm59_vm0, %v3601_v20  ;;  %v3606_v8 = vsel %vm59_vm0, %v3601_v20, 0  ;;  %v8116_v20 = vld [vmem:[#allocation37_spill] sm:$0xff] }
 0x8f9   :  { %v3632_v17 = vand.u32 4294901760, %v3606_v8 }
 0x8fb   :  { %v3633_v33 = vsub.f32 %v3606_v8, %v3632_v17  ;;  %3698 = vmatmul.f32.vlgmr.msra.gmra.mxu1 %v3632_v17  ;;  %v8117_v8 = vld [vmem:[#allocation14_spill] sm:$0xff] }
 0x8fc   :  { %3986 = vmatpush.msra.mxu1 %v6592_v7 }
 0x8fd   :  { %v3634_v44 = vand.u32 4294901760, %v3633_v33  ;;  %3736 = vmatmul.f32.vlgmr.msrb.gmra.mxu2 %v3633_v33 }
 0x8fe   :  { %3988 = vmatpush.msra.mxu1 %v6606_v13  ;;  %4019 = vmatpush.msrb.mxu2 %v6636_v48 }
 0x8ff   :  { %v3635_v27 = vsub.f32 %v3633_v33, %v3634_v44  ;;  %3767 = vmatmul.f32.vlgmr.msrb.gmra.mxu3 %v3634_v44 }
 0x900   :  { %3990 = vmatpush.msra.mxu1 %v6617_v54  ;;  %4023 = vmatpush.msrb.mxu2 %v6658_v36 }
 0x901   :  { %v3636_v2 = vand.u32 4294901760, %v3635_v27  ;;  %4062 = vmatpush.msrb.mxu3 %v6592_v7  ;;  %v8121_v27 = vld [vmem:[#allocation23_spill] sm:$0xff] }
 0x902   :  { %3992 = vmatpush.msra.mxu1 %v6633_v59  ;;  %4027 = vmatpush.msrb.mxu2 %v6683_v56 }
 0x903   :  { %4064 = vmatpush.msrb.mxu3 %v6606_v13  ;;  %3637 = vmatmul.f32.vlgmr.msra.gmra.mxu0 %v3636_v2 }
 0x904   :  { %3841 = vmatmul.f32.vlgmr.msrb.gmra.mxu1 %v3632_v17  ;;  %3949 = vmatpush.msra.mxu0 %v6626_v63 }
 0x905   :  { %3994 = vmatpush.msra.mxu1 %v6649_v22  ;;  %4031 = vmatpush.msrb.mxu2 %v6688_v52 }
 0x906   :  { %4066 = vmatpush.msrb.mxu3 %v6617_v54  ;;  %3874 = vmatmul.f32.vlgmr.msra.gmra.mxu2 %v3636_v2  ;;  %v8122_v2 = vld [vmem:[#allocation40_spill] sm:$0xff] }
 0x907   :  { %3952 = vmatpush.msra.mxu0 %v6640_v55  ;;  %3996 = vmatpush.msra.mxu1 %v6666_v25 }
 0x908   :  { %4035 = vmatpush.msrb.mxu2 %v6708_v23  ;;  %4068 = vmatpush.msrb.mxu3 %v6633_v59 }
 0x909   :  { %3935 = vmatmul.f32.vlgmr.msra.gmra.mxu3 %v3632_v17  ;;  %3955 = vmatpush.msra.mxu0 %v6661_v39 }
 0x90a   :  { %3998 = vmatpush.msra.mxu1 %v6693_v61  ;;  %4039 = vmatpush.msrb.mxu2 %v6728_v6 }
 0x90b   :  { %4070 = vmatpush.msrb.mxu3 %v6649_v22  ;;  %3958 = vmatpush.msra.mxu0 %v6673_v35 }
 0x90c   :  { %4000 = vmatpush.msra.mxu1 %v6701_v0  ;;  %4043 = vmatpush.msrb.mxu2 %v6745_v19 }
 0x90d   :  { %4072 = vmatpush.msrb.mxu3 %v6666_v25  ;;  %3812 = vmatmul.f32.vlgmr.msrb.gmra.mxu0 %v3632_v17 }
 0x90e   :  { %4004 = vmatmul.f32.vlgmr.msra.gmra.mxu1 %v3634_v44  ;;  %3961 = vmatpush.msra.mxu0 %v6691_v30  ;;  %v8120_v44 = vld [vmem:[#allocation39_spill] sm:$0xff] }
 0x90f   :  { %4047 = vmatpush.msrb.mxu2 %v6751_v18  ;;  %4074 = vmatpush.msrb.mxu3 %v6693_v61 }
 0x910   :  { %4049 = vmatmul.f32.vlgmr.msrb.gmra.mxu2 %v3632_v17  ;;  %3964 = vmatpush.msra.mxu0 %v6711_v46 }
 0x911   :  { %4076 = vmatpush.msrb.mxu3 %v6701_v0  ;;  %4169 = vmatpush.msrb.mxu1 %v6413_v41 }
 0x912   :  { %4078 = vmatmul.f32.vlgmr.msrb.gmra.mxu3 %v3632_v17  ;;  %3967 = vmatpush.msra.mxu0 %v6731_v16  ;;  %v8118_v17 = vld [vmem:[#allocation38_spill] sm:$0xff] }
 0x913   :  { %4175 = vmatpush.msrb.mxu1 %v6444_v43  ;;  %4227 = vmatpush.msra.mxu2 %v6392_v51 }
 0x914   :  { %3970 = vmatpush.msra.mxu0 %v6738_v5  ;;  %4264 = vmatpush.msra.mxu3 %v6385_v40 }
 0x915   :  { %3973 = vmatmul.f32.vlgmr.msra.gmra.mxu0 %v3633_v33  ;;  %4181 = vmatpush.msrb.mxu1 %v6483_v58  ;;  %v8119_v33 = vld [vmem:[#allocation18_spill] sm:$0xff] }
 0x916   :  { %4230 = vmatpush.msra.mxu2 %v7999_v3  ;;  %4266 = vmatpush.msra.mxu3 %v8000_v21 }
 0x917   :  { %4187 = vmatpush.msrb.mxu1 %v8001_v45  ;;  %4132 = vmatpush.msrb.mxu0 %v6385_v40 }
 0x918   :  { %4233 = vmatpush.msra.mxu2 %v8002_v28  ;;  %4268 = vmatpush.msra.mxu3 %v8003_v38 }
 0x919   :  { %4193 = vmatpush.msrb.mxu1 %v8004_v50  ;;  %4134 = vmatpush.msrb.mxu0 %v8000_v21 }
 0x91a   :  { %4236 = vmatpush.msra.mxu2 %v8005_v60  ;;  %4270 = vmatpush.msra.mxu3 %v8006_v29 }
 0x91b   :  { %4199 = vmatpush.msrb.mxu1 %v8007_v11  ;;  %4136 = vmatpush.msrb.mxu0 %v8003_v38 }
 0x91c   :  { %4239 = vmatpush.msra.mxu2 %v8008_v32  ;;  %4272 = vmatpush.msra.mxu3 %v8009_v15 }
 0x91d   :  { %4205 = vmatpush.msrb.mxu1 %v8010_v26  ;;  %4138 = vmatpush.msrb.mxu0 %v8006_v29 }
 0x91e   :  { %4242 = vmatpush.msra.mxu2 %v8102_v53  ;;  %4274 = vmatpush.msra.mxu3 %v8103_v14 }
 0x91f   :  { %4211 = vmatpush.msrb.mxu1 %v8104_v37  ;;  %4140 = vmatpush.msrb.mxu0 %v8009_v15 }
 0x920   :  { %4245 = vmatpush.msra.mxu2 %v8105_v4  ;;  %4276 = vmatpush.msra.mxu3 %v8106_v1 }
 0x921   :  { %4340 = vmatpush.msra.mxu1 %v6385_v40  ;;  %4142 = vmatpush.msrb.mxu0 %v8103_v14 }
 0x922   :  { %4248 = vmatpush.msra.mxu2 %v8107_v34  ;;  %4278 = vmatpush.msra.mxu3 %v8108_v42 }
 0x923   :  { %4342 = vmatpush.msra.mxu1 %v8000_v21  ;;  %4144 = vmatpush.msrb.mxu0 %v8106_v1 }
 0x924   :  { %4369 = vmatpush.msrb.mxu2 %v6592_v7  ;;  %4406 = vmatpush.msrb.mxu3 %v8109_v31 }
 0x925   :  { %4344 = vmatpush.msra.mxu1 %v8003_v38  ;;  %4146 = vmatpush.msrb.mxu0 %v8108_v42 }
 0x926   :  { %4371 = vmatpush.msrb.mxu2 %v6606_v13  ;;  %4412 = vmatpush.msrb.mxu3 %v8110_v62 }
 0x927   :  { %4346 = vmatpush.msra.mxu1 %v8006_v29  ;;  %4297 = vmatpush.msra.mxu0 %v8111_v10 }
 0x928   :  { %4373 = vmatpush.msrb.mxu2 %v6617_v54  ;;  %4418 = vmatpush.msrb.mxu3 %v8112_v24 }
 0x929   :  { %4348 = vmatpush.msra.mxu1 %v8009_v15  ;;  %4301 = vmatpush.msra.mxu0 %v8113_v57 }
 0x92a   :  { %4375 = vmatpush.msrb.mxu2 %v6633_v59  ;;  %4424 = vmatpush.msrb.mxu3 %v8114_v49 }
 0x92b   :  { %4350 = vmatpush.msra.mxu1 %v8103_v14  ;;  %4305 = vmatpush.msra.mxu0 %v8115_v9  ;;  %v8123_v9 = vld [vmem:[#allocation28_spill] sm:$0xff] }
 0x92c   :  { %4377 = vmatpush.msrb.mxu2 %v6649_v22  ;;  %4430 = vmatpush.msrb.mxu3 %v8116_v20  ;;  %v8124_v20 = vld [vmem:[#allocation30_spill] sm:$0xff] }
 0x92d   :  { %4352 = vmatpush.msra.mxu1 %v8106_v1  ;;  %4309 = vmatpush.msra.mxu0 %v8117_v8 }
 0x92e   :  { %4379 = vmatpush.msrb.mxu2 %v6666_v25  ;;  %4436 = vmatpush.msrb.mxu3 %v8118_v17 }
 0x92f   :  { %4354 = vmatpush.msra.mxu1 %v8108_v42  ;;  %4313 = vmatpush.msra.mxu0 %v8119_v33 }
 0x930   :  { %4381 = vmatpush.msrb.mxu2 %v6693_v61  ;;  %4442 = vmatpush.msrb.mxu3 %v8120_v44  ;;  %v3604_v44 = vld [vmem:[#allocation2 + $0x50] sm:$0xff] }
 0x931   :  { %4317 = vmatpush.msra.mxu0 %v8121_v27 }
 0x932   :  { %4383 = vmatpush.msrb.mxu2 %v6701_v0  ;;  %4448 = vmatpush.msrb.mxu3 %v8122_v2 }
 0x933   :  { %4321 = vmatpush.msra.mxu0 %v8123_v9 }
 0x935   :  { %4325 = vmatpush.msra.mxu0 %v8124_v20 }
 0x978   :  { %v3699_v8 = vpop.f32.mrf.mxu1 }
 0x980   :  { %v3638_v49 = vpop.f32.mrf.mxu0  ;;  %v3737_v24 = vpop.f32.mrf.mxu2 }
 0x981   :  { %v3700_v57 = vadd.f32 %v3699_v8, %v3638_v49  ;;  %v3842_v42 = vpop.f32.mrf.mxu1 }
 0x982   :  { %v3768_v17 = vpop.f32.mrf.mxu3 }
 0x983   :  { %v3738_v10 = vadd.f32 %v3737_v24, %v3700_v57 }
 0x985   :  { %v3769_v62 = vadd.f32 %v3768_v17, %v3738_v10 }
 0x989   :  { %v3875_v4 = vpop.f32.mrf.mxu2 }
 0x98a   :  { %v3813_v33 = vpop.f32.mrf.mxu0 }
 0x98b   :  { %v3814_v31 = vadd.f32 %v3813_v33, %v3769_v62  ;;  %v4005_v49 = vpop.f32.mrf.mxu1 }
 0x98c   :  { %v3936_v2 = vpop.f32.mrf.mxu3 }
 0x98d   :  { %v3843_v34 = vadd.f32 %v3842_v42, %v3814_v31  ;;  %v3937_v20 = vadd.f32 %v3936_v2, %v3875_v4 }
 0x98f   :  { %v4082_v1 = vadd.f32 %v3843_v34, %v3604_v44 }
 0x991   :  { %v5779_v27 = vmul.f32 -1.442695, %v4082_v1 }
 0x992   :  { %v3974_v9 = vpop.f32.mrf.mxu0 }
 0x993   :  { %5833 = vpow2.f32 %v5779_v27  ;;  %v3975_v53 = vadd.f32 %v3974_v9, %v3937_v20  ;;  %v4050_v10 = vpop.f32.mrf.mxu2  ;;  %v3605_v27 = vld [vmem:[#allocation2 + $0x58] sm:$0xff] }
 0x995   :  { %v4006_v24 = vadd.f32 %v4005_v49, %v3975_v53  ;;  %v4079_v42 = vpop.f32.mrf.mxu3 }
 0x997   :  { %v4051_v8 = vadd.f32 %v4050_v10, %v4006_v24 }
 0x999   :  { %v5834_v37 = vpop.eup %5833  ;;  %v4080_v34 = vadd.f32 %v4079_v42, %v4051_v8 }
 0x99a   :  { %v4086_v14 = vadd.f32 1.0, %v5834_v37 }
 0x99b   :  { %v4102_v9 = vadd.f32 %v7268_v12, %v4080_v34 }
 0x99c   :  { %5835 = vrcp.f32 %v4086_v14  ;;  %v4098_v31 = vand.u32 2147483648, %v4086_v14  ;;  %v4096_v33 = vand.u32 2147483647, %v4086_v14  ;;  %vm4092_vm7 = vweird.f32 %v4086_v14 }
 0x99e   :  { %v4099_v4 = vor.u32 1.1754944e-38, %v4098_v31  ;;  %vm4097_vm9 = vcmp.eq.f32.partialorder %v4096_v33, 8.507059e+37  ;;  %v8143_v33 = vld [vmem:[#allocation39_spill] sm:$0xff] }
 0x9a2   :  { %v5836_v57 = vpop.eup %5835 }
 0x9a3   :  { %v4088_v62 = vmul.f32 %v5836_v57, %v4086_v14  ;;  %vm4093_vm6 = vweird.f32 %v5836_v57 }
 0x9a4   :  { %vm4094_vm8 = vmor %vm4092_vm7, %vm4093_vm6 }
 0x9a5   :  { %v4089_v17 = vsub.f32 1.0, %v4088_v62 }
 0x9a7   :  { %v4090_v1 = vmul.f32 %v5836_v57, %v4089_v17 }
 0x9a9   :  { %v4091_v44 = vadd.f32 %v5836_v57, %v4090_v1  ;;  %v8142_v1 = vld [vmem:[#allocation18_spill] sm:$0xff] }
 0x9ab   :  { %v4095_v37 = vsel %vm4094_vm8, %v5836_v57, %v4091_v44  ;;  %v8144_v44 = vld [vmem:[#allocation23_spill] sm:$0xff] }
 0x9ac   :  { %v4100_v53 = vsel %vm4097_vm9, %v4099_v4, %v4095_v37  ;;  %v8145_v4 = vld [vmem:[#allocation40_spill] sm:$0xff] }
 0x9ad   :  { %v4103_v20 = vmul.f32 %v4102_v9, %v4100_v53  ;;  %v4106_v24 = vsub.f32 1.0, %v4100_v53  ;;  %v4112_v8 = vmul.f32 %v4100_v53, %v7378_v47  ;;  %v8146_v37 = vld [vmem:[#allocation28_spill] sm:$0xff]  ;;  %v8147_v9 = vld [vmem:[#allocation30_spill] sm:$0xff] }
 0x9af   :  { %v4104_v2 = vadd.f32 %v4103_v20, %v3605_v27 }
 0x9b1   :  { %5837 = vtanh.f32 %v4104_v2 }
 0x9b7   :  { %v5838_v49 = vpop.eup %5837 }
 0x9b8   :  { %4108 = vrot.lane.b32.xlu1 %v5838_v49, %s5888_s16 }
 0xa2a   :  { %v4109_v10 = vpop.permute.xlu1 %4108 }
 0xa2b   :  { %v4111_v62 = vmul.f32 %v4109_v10, %v4106_v24 }
 0xa2d   :  { %v7483_v14 = vadd.f32 %v4112_v8, %v4111_v62 }
 0xa2f   :  { %4115 = vrot.lane.b32.xlu2 %v7483_v14, %s5888_s16 }
 0xa89   :  { %v4116_v57 = vpop.permute.xlu2 %4115 }
 0xa8a   :  { %4118 = vst.msk [vmem:[#allocation3 + $0x28] sm:$0xff] %vm59_vm0, %v4116_v57  ;;  %v4121_v12 = vsel %vm59_vm0, %v4116_v57, 0 }
 0xa8b   :  { %v4147_v17 = vand.u32 4294901760, %v4121_v12 }
 0xa8d   :  { %v4148_v42 = vsub.f32 %v4121_v12, %v4147_v17  ;;  %4213 = vmatmul.f32.vlgmr.msrb.gmra.mxu1 %v4147_v17 }
 0xa8e   :  { %4501 = vmatpush.msrb.mxu1 %v6592_v7 }
 0xa8f   :  { %v4149_v31 = vand.u32 4294901760, %v4148_v42  ;;  %4251 = vmatmul.f32.vlgmr.msra.gmra.mxu2 %v4148_v42 }
 0xa90   :  { %4503 = vmatpush.msrb.mxu1 %v6606_v13  ;;  %4534 = vmatpush.msra.mxu2 %v6636_v48 }
 0xa91   :  { %v4150_v47 = vsub.f32 %v4148_v42, %v4149_v31  ;;  %4282 = vmatmul.f32.vlgmr.msra.gmra.mxu3 %v4149_v31 }
 0xa92   :  { %4505 = vmatpush.msrb.mxu1 %v6617_v54  ;;  %4538 = vmatpush.msra.mxu2 %v6658_v36 }
 0xa93   :  { %v4151_v34 = vand.u32 4294901760, %v4150_v47  ;;  %4577 = vmatpush.msra.mxu3 %v6592_v7 }
 0xa94   :  { %4507 = vmatpush.msrb.mxu1 %v6633_v59  ;;  %4542 = vmatpush.msra.mxu2 %v6683_v56 }
 0xa95   :  { %4579 = vmatpush.msra.mxu3 %v6606_v13  ;;  %4152 = vmatmul.f32.vlgmr.msrb.gmra.mxu0 %v4151_v34 }
 0xa96   :  { %4356 = vmatmul.f32.vlgmr.msra.gmra.mxu1 %v4147_v17  ;;  %4464 = vmatpush.msrb.mxu0 %v6626_v63 }
 0xa97   :  { %4509 = vmatpush.msrb.mxu1 %v6649_v22  ;;  %4546 = vmatpush.msra.mxu2 %v6688_v52 }
 0xa98   :  { %4581 = vmatpush.msra.mxu3 %v6617_v54  ;;  %4389 = vmatmul.f32.vlgmr.msrb.gmra.mxu2 %v4151_v34 }
 0xa99   :  { %4467 = vmatpush.msrb.mxu0 %v6640_v55  ;;  %4511 = vmatpush.msrb.mxu1 %v6666_v25 }
 0xa9a   :  { %4550 = vmatpush.msra.mxu2 %v6708_v23  ;;  %4583 = vmatpush.msra.mxu3 %v6633_v59 }
 0xa9b   :  { %4450 = vmatmul.f32.vlgmr.msrb.gmra.mxu3 %v4147_v17  ;;  %4470 = vmatpush.msrb.mxu0 %v6661_v39 }
 0xa9c   :  { %4513 = vmatpush.msrb.mxu1 %v6693_v61  ;;  %4554 = vmatpush.msra.mxu2 %v6728_v6 }
 0xa9d   :  { %4585 = vmatpush.msra.mxu3 %v6649_v22  ;;  %4473 = vmatpush.msrb.mxu0 %v6673_v35 }
 0xa9e   :  { %4515 = vmatpush.msrb.mxu1 %v6701_v0  ;;  %4558 = vmatpush.msra.mxu2 %v6745_v19 }
 0xa9f   :  { %4587 = vmatpush.msra.mxu3 %v6666_v25  ;;  %4327 = vmatmul.f32.vlgmr.msra.gmra.mxu0 %v4147_v17 }
 0xaa0   :  { %4519 = vmatmul.f32.vlgmr.msrb.gmra.mxu1 %v4149_v31  ;;  %4476 = vmatpush.msrb.mxu0 %v6691_v30 }
 0xaa1   :  { %4562 = vmatpush.msra.mxu2 %v6751_v18  ;;  %4589 = vmatpush.msra.mxu3 %v6693_v61 }
 0xaa2   :  { %4564 = vmatmul.f32.vlgmr.msra.gmra.mxu2 %v4147_v17  ;;  %4479 = vmatpush.msrb.mxu0 %v6711_v46 }
 0xaa3   :  { %4591 = vmatpush.msra.mxu3 %v6701_v0  ;;  %4684 = vmatpush.msra.mxu1 %v6413_v41  ;;  %v8126_v41 = vld [vmem:[#allocation20_spill] sm:$0xff] }
 0xaa4   :  { %4593 = vmatmul.f32.vlgmr.msra.gmra.mxu3 %v4147_v17  ;;  %4482 = vmatpush.msrb.mxu0 %v6731_v16  ;;  %v4119_v17 = vld [vmem:[#allocation2 + $0x60] sm:$0xff] }
 0xaa5   :  { %4690 = vmatpush.msra.mxu1 %v6444_v43  ;;  %4742 = vmatpush.msrb.mxu2 %v6392_v51  ;;  %v8125_v51 = vld [vmem:[#allocation22_spill] sm:$0xff]  ;;  %v8127_v43 = vld [vmem:[#allocation32_spill] sm:$0xff] }
 0xaa6   :  { %4485 = vmatpush.msrb.mxu0 %v6738_v5  ;;  %4779 = vmatpush.msrb.mxu3 %v6385_v40 }
 0xaa7   :  { %4488 = vmatmul.f32.vlgmr.msrb.gmra.mxu0 %v4148_v42  ;;  %4696 = vmatpush.msra.mxu1 %v6483_v58  ;;  %v8128_v58 = vld [vmem:[#allocation26_spill] sm:$0xff] }
 0xaa8   :  { %4745 = vmatpush.msrb.mxu2 %v7999_v3  ;;  %4781 = vmatpush.msrb.mxu3 %v8000_v21  ;;  %v8129_v3 = vld [vmem:[#allocation24_spill] sm:$0xff] }
 0xaa9   :  { %4702 = vmatpush.msra.mxu1 %v8001_v45  ;;  %4647 = vmatpush.msra.mxu0 %v6385_v40  ;;  %v8130_v45 = vld [vmem:[#allocation29_spill] sm:$0xff] }
 0xaaa   :  { %4748 = vmatpush.msrb.mxu2 %v8002_v28  ;;  %4783 = vmatpush.msrb.mxu3 %v8003_v38  ;;  %v8131_v28 = vld [vmem:[#allocation27_spill] sm:$0xff] }
 0xaab   :  { %4708 = vmatpush.msra.mxu1 %v8004_v50  ;;  %4649 = vmatpush.msra.mxu0 %v8000_v21  ;;  %v8132_v50 = vld [vmem:[#allocation33_spill] sm:$0xff] }
 0xaac   :  { %4751 = vmatpush.msrb.mxu2 %v8005_v60  ;;  %4785 = vmatpush.msrb.mxu3 %v8006_v29  ;;  %v8136_v60 = vld [vmem:[#allocation7_spill] sm:$0xff] }
 0xaad   :  { %4714 = vmatpush.msra.mxu1 %v8007_v11  ;;  %4651 = vmatpush.msra.mxu0 %v8003_v38  ;;  %v8138_v11 = vld [vmem:[#allocation11_spill] sm:$0xff] }
 0xaae   :  { %4754 = vmatpush.msrb.mxu2 %v8008_v32  ;;  %4787 = vmatpush.msrb.mxu3 %v8009_v15  ;;  %v8139_v32 = vld [vmem:[#allocation37_spill] sm:$0xff] }
 0xaaf   :  { %4720 = vmatpush.msra.mxu1 %v8010_v26  ;;  %4653 = vmatpush.msra.mxu0 %v8006_v29  ;;  %v8141_v26 = vld [vmem:[#allocation38_spill] sm:$0xff] }
 0xab0   :  { %4757 = vmatpush.msrb.mxu2 %v8125_v51  ;;  %4789 = vmatpush.msrb.mxu3 %v8126_v41 }
 0xab1   :  { %4726 = vmatpush.msra.mxu1 %v8127_v43  ;;  %4655 = vmatpush.msra.mxu0 %v8009_v15 }
 0xab2   :  { %4760 = vmatpush.msrb.mxu2 %v8128_v58  ;;  %4791 = vmatpush.msrb.mxu3 %v8129_v3 }
 0xab3   :  { %4855 = vmatpush.msrb.mxu1 %v6385_v40  ;;  %4657 = vmatpush.msra.mxu0 %v8126_v41  ;;  %v8133_v40 = vld [vmem:[#allocation34_spill] sm:$0xff] }
 0xab4   :  { %4763 = vmatpush.msrb.mxu2 %v8130_v45  ;;  %4793 = vmatpush.msrb.mxu3 %v8131_v28 }
 0xab5   :  { %4857 = vmatpush.msrb.mxu1 %v8000_v21  ;;  %4659 = vmatpush.msra.mxu0 %v8129_v3  ;;  %v8134_v21 = vld [vmem:[#allocation4_spill] sm:$0xff] }
 0xab6   :  { %4884 = vmatpush.msra.mxu2 %v6592_v7  ;;  %4921 = vmatpush.msra.mxu3 %v8132_v50 }
 0xab7   :  { %4859 = vmatpush.msrb.mxu1 %v8003_v38  ;;  %4661 = vmatpush.msra.mxu0 %v8131_v28  ;;  %v8135_v38 = vld [vmem:[#allocation35_spill] sm:$0xff] }
 0xab8   :  { %4886 = vmatpush.msra.mxu2 %v6606_v13  ;;  %4927 = vmatpush.msra.mxu3 %v8133_v40 }
 0xab9   :  { %4861 = vmatpush.msrb.mxu1 %v8006_v29  ;;  %4812 = vmatpush.msrb.mxu0 %v8134_v21  ;;  %v8137_v29 = vld [vmem:[#allocation36_spill] sm:$0xff] }
 0xaba   :  { %4888 = vmatpush.msra.mxu2 %v6617_v54  ;;  %4933 = vmatpush.msra.mxu3 %v8135_v38 }
 0xabb   :  { %4863 = vmatpush.msrb.mxu1 %v8009_v15  ;;  %4816 = vmatpush.msrb.mxu0 %v8136_v60  ;;  %v8140_v15 = vld [vmem:[#allocation14_spill] sm:$0xff] }
 0xabc   :  { %4890 = vmatpush.msra.mxu2 %v6633_v59  ;;  %4939 = vmatpush.msra.mxu3 %v8137_v29 }
 0xabd   :  { %4865 = vmatpush.msrb.mxu1 %v8126_v41  ;;  %4820 = vmatpush.msrb.mxu0 %v8138_v11 }
 0xabe   :  { %4892 = vmatpush.msra.mxu2 %v6649_v22  ;;  %4945 = vmatpush.msra.mxu3 %v8139_v32 }
 0xabf   :  { %4867 = vmatpush.msrb.mxu1 %v8129_v3  ;;  %4824 = vmatpush.msrb.mxu0 %v8140_v15 }
 0xac0   :  { %4894 = vmatpush.msra.mxu2 %v6666_v25  ;;  %4951 = vmatpush.msra.mxu3 %v8141_v26 }
 0xac1   :  { %4869 = vmatpush.msrb.mxu1 %v8131_v28  ;;  %4828 = vmatpush.msrb.mxu0 %v8142_v1 }
 0xac2   :  { %4896 = vmatpush.msra.mxu2 %v6693_v61  ;;  %4957 = vmatpush.msra.mxu3 %v8143_v33 }
 0xac3   :  { %4832 = vmatpush.msrb.mxu0 %v8144_v44 }
 0xac4   :  { %4898 = vmatpush.msra.mxu2 %v6701_v0  ;;  %4963 = vmatpush.msra.mxu3 %v8145_v4  ;;  %v7588_v4 = vld [vmem:[%s7846_s4] ss:$0 sm:$0xff] }
 0xac5   :  { %4836 = vmatpush.msrb.mxu0 %v8146_v37 }
 0xac7   :  { %4840 = vmatpush.msrb.mxu0 %v8147_v9 }
 0xb0a   :  { %v4214_v53 = vpop.f32.mrf.mxu1 }
 0xb12   :  { %v4153_v20 = vpop.f32.mrf.mxu0  ;;  %v4252_v2 = vpop.f32.mrf.mxu2 }
 0xb13   :  { %v4215_v27 = vadd.f32 %v4214_v53, %v4153_v20  ;;  %v4357_v57 = vpop.f32.mrf.mxu1  ;;  %v4120_v20 = vld [vmem:[#allocation2 + $0x68] sm:$0xff] }
 0xb14   :  { %v4283_v24 = vpop.f32.mrf.mxu3 }
 0xb15   :  { %v4253_v49 = vadd.f32 %v4252_v2, %v4215_v27 }
 0xb17   :  { %v4284_v10 = vadd.f32 %v4283_v24, %v4253_v49 }
 0xb1b   :  { %v4390_v34 = vpop.f32.mrf.mxu2 }
 0xb1c   :  { %v4328_v8 = vpop.f32.mrf.mxu0 }
 0xb1d   :  { %v4329_v62 = vadd.f32 %v4328_v8, %v4284_v10  ;;  %v4520_v45 = vpop.f32.mrf.mxu1 }
 0xb1e   :  { %v4451_v47 = vpop.f32.mrf.mxu3 }
 0xb1f   :  { %v4358_v12 = vadd.f32 %v4357_v57, %v4329_v62  ;;  %v4452_v43 = vadd.f32 %v4451_v47, %v4390_v34 }
 0xb21   :  { %v4597_v42 = vadd.f32 %v4358_v12, %v4119_v17 }
 0xb23   :  { %v5780_v31 = vmul.f32 -1.442695, %v4597_v42 }
 0xb24   :  { %v4489_v51 = vpop.f32.mrf.mxu0 }
 0xb25   :  { %5839 = vpow2.f32 %v5780_v31  ;;  %v4490_v3 = vadd.f32 %v4489_v51, %v4452_v43  ;;  %v4565_v40 = vpop.f32.mrf.mxu2 }
 0xb27   :  { %v4521_v28 = vadd.f32 %v4520_v45, %v4490_v3  ;;  %v4594_v29 = vpop.f32.mrf.mxu3 }
 0xb29   :  { %v4566_v21 = vadd.f32 %v4565_v40, %v4521_v28 }
 0xb2b   :  { %v5840_v41 = vpop.eup %5839  ;;  %v4595_v32 = vadd.f32 %v4594_v29, %v4566_v21 }
 0xb2c   :  { %v4601_v58 = vadd.f32 1.0, %v5840_v41 }
 0xb2d   :  { %v4617_v37 = vadd.f32 %v7588_v4, %v4595_v32  ;;  %v4635_v32 = vld [vmem:[#allocation2 + $0x78] sm:$0xff] }
 0xb2e   :  { %5841 = vrcp.f32 %v4601_v58  ;;  %v4613_v11 = vand.u32 2147483648, %v4601_v58  ;;  %v4611_v26 = vand.u32 2147483647, %v4601_v58  ;;  %vm4607_vm11 = vweird.f32 %v4601_v58 }
 0xb30   :  { %v4614_v33 = vor.u32 1.1754944e-38, %v4613_v11  ;;  %vm4612_vm13 = vcmp.eq.f32.partialorder %v4611_v26, 8.507059e+37 }
 0xb34   :  { %v5842_v50 = vpop.eup %5841 }
 0xb35   :  { %v4603_v38 = vmul.f32 %v5842_v50, %v4601_v58  ;;  %vm4608_vm10 = vweird.f32 %v5842_v50 }
 0xb36   :  { %vm4609_vm12 = vmor %vm4607_vm11, %vm4608_vm10 }
 0xb37   :  { %v4604_v60 = vsub.f32 1.0, %v4603_v38 }
 0xb39   :  { %v4605_v15 = vmul.f32 %v5842_v50, %v4604_v60 }
 0xb3b   :  { %v4606_v1 = vadd.f32 %v5842_v50, %v4605_v15 }
 0xb3d   :  { %v4610_v44 = vsel %vm4609_vm12, %v5842_v50, %v4606_v1  ;;  %v5173_v1 = vld [vmem:[%s7847_s5 + $0x38] sm:$0xff] }
 0xb3e   :  { %v4615_v9 = vsel %vm4612_vm13, %v4614_v33, %v4610_v44  ;;  %v5172_v33 = vld [vmem:[%s7847_s5 + $0x30] sm:$0xff]  ;;  %v7639_v44 = vand.u32 4294901760, %v5173_v1 }
 0xb3f   :  { %v4618_v53 = vmul.f32 %v4617_v37, %v4615_v9  ;;  %v4621_v49 = vsub.f32 1.0, %v4615_v9  ;;  %v4627_v10 = vmul.f32 %v4615_v9, %v7483_v14  ;;  %v7641_v37 = vand.u32 4294901760, %v5172_v33 }
 0xb41   :  { %v4619_v27 = vadd.f32 %v4618_v53, %v4120_v20  ;;  %v7647_v9 = vsub.f32 %v5172_v33, %v7641_v37  ;;  %v5151_v33 = vld [vmem:[#allocation3 + $0x10] sm:$0xff] }
 0xb43   :  { %5843 = vtanh.f32 %v4619_v27  ;;  %v5307_v20 = vand.u32 4294901760, %v7647_v9 }
 0xb49   :  { %v5844_v2 = vpop.eup %5843 }
 0xb4a   :  { %4623 = vrot.lane.b32.xlu0 %v5844_v2, %s5888_s16  ;;  %v5308_v2 = vsub.f32 %v7647_v9, %v5307_v20 }
 0xbbc   :  { %v4624_v24 = vpop.permute.xlu0 %4623 }
 0xbbd   :  { %v4626_v8 = vmul.f32 %v4624_v24, %v4621_v49  ;;  %v5309_v24 = vand.u32 4294901760, %v5308_v2 }
 0xbbf   :  { %v7593_v62 = vadd.f32 %v4627_v10, %v4626_v8 }
 0xbc1   :  { %4630 = vrot.lane.b32.xlu1 %v7593_v62, %s5888_s16 }
 0xc33   :  { %v4631_v57 = vpop.permute.xlu1 %4630 }
 0xc34   :  { %4633 = vst.msk [vmem:[#allocation3 + $0x30] sm:$0xff] %vm59_vm0, %v4631_v57  ;;  %v4636_v12 = vsel %vm59_vm0, %v4631_v57, 0 }
 0xc35   :  { %v4662_v17 = vand.u32 4294901760, %v4636_v12 }
 0xc37   :  { %v4663_v42 = vsub.f32 %v4636_v12, %v4662_v17  ;;  %4728 = vmatmul.f32.vlgmr.msra.gmra.mxu1 %v4662_v17 }
 0xc38   :  { %5016 = vmatpush.msra.mxu1 %v6592_v7 }
 0xc39   :  { %v4664_v31 = vand.u32 4294901760, %v4663_v42  ;;  %4766 = vmatmul.f32.vlgmr.msrb.gmra.mxu2 %v4663_v42 }
 0xc3a   :  { %5018 = vmatpush.msra.mxu1 %v6606_v13  ;;  %5049 = vmatpush.msrb.mxu2 %v6636_v48 }
 0xc3b   :  { %v4665_v14 = vsub.f32 %v4663_v42, %v4664_v31  ;;  %4797 = vmatmul.f32.vlgmr.msrb.gmra.mxu3 %v4664_v31 }
 0xc3c   :  { %5020 = vmatpush.msra.mxu1 %v6617_v54  ;;  %5053 = vmatpush.msrb.mxu2 %v6658_v36 }
 0xc3d   :  { %v4666_v47 = vand.u32 4294901760, %v4665_v14  ;;  %5092 = vmatpush.msrb.mxu3 %v6592_v7  ;;  %v5170_v14 = vld [vmem:[%s7847_s5 + $0x20] sm:$0xff] }
 0xc3e   :  { %5022 = vmatpush.msra.mxu1 %v6633_v59  ;;  %5057 = vmatpush.msrb.mxu2 %v6683_v56 }
 0xc3f   :  { %5094 = vmatpush.msrb.mxu3 %v6606_v13  ;;  %4667 = vmatmul.f32.vlgmr.msra.gmra.mxu0 %v4666_v47 }
 0xc40   :  { %4871 = vmatmul.f32.vlgmr.msrb.gmra.mxu1 %v4662_v17  ;;  %4979 = vmatpush.msra.mxu0 %v6626_v63 }
 0xc41   :  { %5024 = vmatpush.msra.mxu1 %v6649_v22  ;;  %5061 = vmatpush.msrb.mxu2 %v6688_v52 }
 0xc42   :  { %5096 = vmatpush.msrb.mxu3 %v6617_v54  ;;  %4904 = vmatmul.f32.vlgmr.msra.gmra.mxu2 %v4666_v47 }
 0xc43   :  { %4982 = vmatpush.msra.mxu0 %v6640_v55  ;;  %5026 = vmatpush.msra.mxu1 %v6666_v25 }
 0xc44   :  { %5065 = vmatpush.msrb.mxu2 %v6708_v23  ;;  %5098 = vmatpush.msrb.mxu3 %v6633_v59 }
 0xc45   :  { %4965 = vmatmul.f32.vlgmr.msra.gmra.mxu3 %v4662_v17  ;;  %4985 = vmatpush.msra.mxu0 %v6661_v39 }
 0xc46   :  { %5028 = vmatpush.msra.mxu1 %v6693_v61  ;;  %5069 = vmatpush.msrb.mxu2 %v6728_v6 }
 0xc47   :  { %5100 = vmatpush.msrb.mxu3 %v6649_v22  ;;  %4988 = vmatpush.msra.mxu0 %v6673_v35 }
 0xc48   :  { %5030 = vmatpush.msra.mxu1 %v6701_v0  ;;  %5073 = vmatpush.msrb.mxu2 %v6745_v19 }
 0xc49   :  { %5102 = vmatpush.msrb.mxu3 %v6666_v25  ;;  %4842 = vmatmul.f32.vlgmr.msrb.gmra.mxu0 %v4662_v17  ;;  %v4634_v25 = vld [vmem:[#allocation2 + $0x70] sm:$0xff] }
 0xc4a   :  { %5034 = vmatmul.f32.vlgmr.msra.gmra.mxu1 %v4664_v31  ;;  %4991 = vmatpush.msra.mxu0 %v6691_v30 }
 0xc4b   :  { %5077 = vmatpush.msrb.mxu2 %v6751_v18  ;;  %5104 = vmatpush.msrb.mxu3 %v6693_v61 }
 0xc4c   :  { %5079 = vmatmul.f32.vlgmr.msrb.gmra.mxu2 %v4662_v17  ;;  %4994 = vmatpush.msra.mxu0 %v6711_v46 }
 0xc4d   :  { %5106 = vmatpush.msrb.mxu3 %v6701_v0 }
 0xc4e   :  { %5108 = vmatmul.f32.vlgmr.msrb.gmra.mxu3 %v4662_v17  ;;  %4997 = vmatpush.msra.mxu0 %v6731_v16 }
 0xc4f   :  { %5462 = vmatpush.msra.mxu3 %v7639_v44 }
 0xc50   :  { %5000 = vmatpush.msra.mxu0 %v6738_v5 }
 0xc51   :  { %5003 = vmatmul.f32.vlgmr.msra.gmra.mxu0 %v4663_v42  ;;  %5464 = vmatpush.msra.mxu3 %v7641_v37  ;;  %v5171_v42 = vld [vmem:[%s7847_s5 + $0x28] sm:$0xff] }
 0xc52   :  { %5211 = vmatpush.msrb.mxu0 %v7639_v44  ;;  %v7668_v31 = vand.u32 4294901760, %v5171_v42 }
 0xc54   :  { %5213 = vmatpush.msrb.mxu0 %v7641_v37  ;;  %v5312_v47 = vsub.f32 %v5171_v42, %v7668_v31  ;;  %5466 = vmatpush.msra.mxu3 %v7668_v31 }
 0xc56   :  { %5215 = vmatpush.msrb.mxu0 %v7668_v31 }
 0xcb4   :  { %v4729_v39 = vpop.f32.mrf.mxu1 }
 0xcbc   :  { %v4668_v36 = vpop.f32.mrf.mxu0  ;;  %v4767_v7 = vpop.f32.mrf.mxu2 }
 0xcbd   :  { %v4730_v59 = vadd.f32 %v4729_v39, %v4668_v36  ;;  %v4872_v22 = vpop.f32.mrf.mxu1  ;;  %v7674_v39 = vand.u32 4294901760, %v5170_v14  ;;  %v5313_v36 = vand.u32 4294901760, %v5312_v47 }
 0xcbe   :  { %v4798_v54 = vpop.f32.mrf.mxu3 }
 0xcbf   :  { %v4768_v13 = vadd.f32 %v4767_v7, %v4730_v59  ;;  %v5318_v59 = vsub.f32 %v5170_v14, %v7674_v39  ;;  %5468 = vmatpush.msra.mxu3 %v7674_v39  ;;  %5217 = vmatpush.msrb.mxu0 %v7674_v39 }
 0xcc1   :  { %v4799_v63 = vadd.f32 %v4798_v54, %v4768_v13  ;;  %v5168_v13 = vld [vmem:[%s7847_s5 + $0x10] sm:$0xff]  ;;  %v5314_v54 = vsub.f32 %v5312_v47, %v5313_v36 }
 0xcc5   :  { %v4905_v16 = vpop.f32.mrf.mxu2 }
 0xcc6   :  { %v4843_v48 = vpop.f32.mrf.mxu0 }
 0xcc7   :  { %v4844_v55 = vadd.f32 %v4843_v48, %v4799_v63  ;;  %v5035_v6 = vpop.f32.mrf.mxu1  ;;  %v5319_v63 = vand.u32 4294901760, %v5318_v59 }
 0xcc8   :  { %v4966_v30 = vpop.f32.mrf.mxu3 }
 0xcc9   :  { %v4873_v35 = vadd.f32 %v4872_v22, %v4844_v55  ;;  %v4967_v0 = vadd.f32 %v4966_v30, %v4905_v16  ;;  %v5220_v55 = vand.u32 4294901760, %v5168_v13  ;;  %v5167_v22 = vld [vmem:[%s7847_s5 + $0x8] sm:$0xff]  ;;  %v5166_v30 = vld [vmem:[%s7847_s5] sm:$0xff] }
 0xcca   :  { %v5222_v16 = vand.u32 4294901760, %v5167_v22 }
 0xccb   :  { %v5112_v56 = vadd.f32 %v4873_v35, %v4634_v25  ;;  %v5315_v35 = vand.u32 4294901760, %v5314_v54  ;;  %v5320_v25 = vsub.f32 %v5318_v59, %v5319_v63 }
 0xccd   :  { %v5781_v52 = vmul.f32 -1.442695, %v5112_v56 }
 0xcce   :  { %v5004_v61 = vpop.f32.mrf.mxu0 }
 0xccf   :  { %5845 = vpow2.f32 %v5781_v52  ;;  %v5005_v46 = vadd.f32 %v5004_v61, %v4967_v0  ;;  %v5080_v34 = vpop.f32.mrf.mxu2  ;;  %v5330_v52 = vsub.f32 %v5168_v13, %v5220_v55  ;;  %v5224_v61 = vand.u32 4294901760, %v5166_v30 }
 0xcd1   :  { %v5036_v19 = vadd.f32 %v5035_v6, %v5005_v46  ;;  %v5109_v58 = vpop.f32.mrf.mxu3  ;;  %v5336_v46 = vsub.f32 %v5167_v22, %v5222_v16  ;;  %v5342_v6 = vsub.f32 %v5166_v30, %v5224_v61 }
 0xcd3   :  { %v5081_v51 = vadd.f32 %v5080_v34, %v5036_v19  ;;  %v5337_v34 = vand.u32 4294901760, %v5336_v46 }
 0xcd5   :  { %v5846_v5 = vpop.eup %5845  ;;  %v5110_v45 = vadd.f32 %v5109_v58, %v5081_v51  ;;  %v5343_v51 = vand.u32 4294901760, %v5342_v6 }
 0xcd6   :  { %v5116_v23 = vadd.f32 1.0, %v5846_v5  ;;  %v5321_v5 = vand.u32 4294901760, %v5320_v25 }
 0xcd7   :  { %v5132_v60 = vadd.f32 %v7588_v4, %v5110_v45  ;;  %v7644_v4 = vsub.f32 %v5173_v1, %v7639_v44  ;;  %v5344_v58 = vsub.f32 %v5342_v6, %v5343_v51 }
 0xcd8   :  { %5847 = vrcp.f32 %v5116_v23  ;;  %v5128_v3 = vand.u32 2147483648, %v5116_v23  ;;  %v5126_v50 = vand.u32 2147483647, %v5116_v23  ;;  %vm5122_vm15 = vweird.f32 %v5116_v23 }
 0xcd9   :  { %v5301_v53 = vand.u32 4294901760, %v7644_v4  ;;  %5390 = vmatpush.msra.mxu2 %v7644_v4  ;;  %v5345_v45 = vand.u32 4294901760, %v5344_v58 }
 0xcda   :  { %v5129_v21 = vor.u32 1.1754944e-38, %v5128_v3  ;;  %vm5127_vm2 = vcmp.eq.f32.partialorder %v5126_v50, 8.507059e+37  ;;  %v7702_v50 = vld [vmem:[#allocation3 + $0x30] sm:$0xff] }
 0xcdb   :  { %v5302_v27 = vsub.f32 %v7644_v4, %v5301_v53  ;;  %5393 = vmatpush.msra.mxu2 %v7647_v9 }
 0xcdd   :  { %v5303_v49 = vand.u32 4294901760, %v5302_v27  ;;  %5396 = vmatpush.msra.mxu2 %v5312_v47  ;;  %v5153_v27 = vld [vmem:[#allocation3 + $0x20] sm:$0xff] }
 0xcde   :  { %v5848_v18 = vpop.eup %5847 }
 0xcdf   :  { %v5118_v41 = vmul.f32 %v5848_v18, %v5116_v23  ;;  %vm5123_vm14 = vweird.f32 %v5848_v18  ;;  %5304 = vmatpush.msrb.mxu1 %v5303_v49  ;;  %5399 = vmatpush.msra.mxu2 %v5318_v59  ;;  %v5331_v23 = vand.u32 4294901760, %v5330_v52 }
 0xce0   :  { %vm5124_vm1 = vmor %vm5122_vm15, %vm5123_vm14 }
 0xce1   :  { %v5119_v43 = vsub.f32 1.0, %v5118_v41  ;;  %5310 = vmatpush.msrb.mxu1 %v5309_v24 }
 0xce3   :  { %v5120_v28 = vmul.f32 %v5848_v18, %v5119_v43  ;;  %5316 = vmatpush.msrb.mxu1 %v5315_v35  ;;  %v5338_v43 = vsub.f32 %v5336_v46, %v5337_v34 }
 0xce5   :  { %v5121_v40 = vadd.f32 %v5848_v18, %v5120_v28  ;;  %5322 = vmatpush.msrb.mxu1 %v5321_v5  ;;  %v5339_v3 = vand.u32 4294901760, %v5338_v43 }
 0xce7   :  { %v5125_v38 = vsel %vm5124_vm1, %v5848_v18, %v5121_v40  ;;  %v5332_v18 = vsub.f32 %v5330_v52, %v5331_v23  ;;  %v5150_v40 = vld [vmem:[#allocation3 + $0x8] sm:$0xff] }
 0xce8   :  { %v5130_v29 = vsel %vm5127_vm2, %v5129_v21, %v5125_v38  ;;  %v7706_v21 = vsel %vm5157_vm3, %v5150_v40, %v7702_v50  ;;  %v7708_v38 = vld [vmem:[#allocation3] sm:$0xff] }
 0xce9   :  { %v5133_v11 = vmul.f32 %v5132_v60, %v5130_v29  ;;  %v5136_v10 = vsub.f32 1.0, %v5130_v29  ;;  %v5142_v57 = vmul.f32 %v5130_v29, %v7593_v62  ;;  %v5169_v62 = vld [vmem:[%s7847_s5 + $0x18] sm:$0xff]  ;;  %v5333_v41 = vand.u32 4294901760, %v5332_v18 }
 0xcea   :  { %v5218_v7 = vand.u32 4294901760, %v5169_v62  ;;  %v5182_v29 = vsel %vm59_vm0, %v7706_v21, 0 }
 0xceb   :  { %v5134_v15 = vadd.f32 %v5133_v11, %v4635_v32  ;;  %v7723_v1 = vand.u32 4294901760, %v5182_v29 }
 0xcec   :  { %v5324_v48 = vsub.f32 %v5169_v62, %v5218_v7  ;;  %5470 = vmatpush.msra.mxu3 %v5218_v7  ;;  %5219 = vmatpush.msrb.mxu0 %v5218_v7 }
 0xced   :  { %5849 = vtanh.f32 %v5134_v15  ;;  %v5154_v15 = vld [vmem:[#allocation3 + $0x28] sm:$0xff]  ;;  %v5235_v9 = vsub.f32 %v5182_v29, %v7723_v1 }
 0xcee   :  { %v5325_v56 = vand.u32 4294901760, %v5324_v48  ;;  %5402 = vmatpush.msra.mxu2 %v5324_v48  ;;  %5472 = vmatpush.msra.mxu3 %v5220_v55  ;;  %v7753_v54 = vsel %vm5157_vm3, %v5154_v15, %v5151_v33 }
 0xcef   :  { %5221 = vmatpush.msrb.mxu0 %v5220_v55  ;;  %v5236_v49 = vand.u32 4294901760, %v5235_v9 }
 0xcf0   :  { %v5326_v0 = vsub.f32 %v5324_v48, %v5325_v56  ;;  %5405 = vmatpush.msra.mxu2 %v5330_v52  ;;  %5474 = vmatpush.msra.mxu3 %v5222_v16 }
 0xcf1   :  { %5223 = vmatpush.msrb.mxu0 %v5222_v16 }
 0xcf2   :  { %v5327_v19 = vand.u32 4294901760, %v5326_v0  ;;  %5408 = vmatpush.msra.mxu2 %v5336_v46  ;;  %5476 = vmatpush.msra.mxu3 %v5224_v61 }
 0xcf3   :  { %v5850_v26 = vpop.eup %5849  ;;  %5225 = vmatpush.msrb.mxu0 %v5224_v61 }
 0xcf4   :  { %5138 = vrot.lane.b32.xlu2 %v5850_v26, %s5888_s16  ;;  %5328 = vmatpush.msrb.mxu1 %v5327_v19 }
 0xcf5   :  { %5411 = vmatpush.msra.mxu2 %v5342_v6  ;;  %5537 = vmatpush.msra.mxu0 %v5301_v53 }
 0xcf6   :  { %5334 = vmatpush.msrb.mxu1 %v5333_v41 }
 0xcf7   :  { %5541 = vmatpush.msra.mxu0 %v5307_v20 }
 0xcf8   :  { %5340 = vmatpush.msrb.mxu1 %v5339_v3 }
 0xcf9   :  { %5545 = vmatpush.msra.mxu0 %v5313_v36 }
 0xcfa   :  { %5346 = vmatpush.msrb.mxu1 %v5345_v45 }
 0xcfb   :  { %5549 = vmatpush.msra.mxu0 %v5319_v63 }
 0xcfc   :  { %5608 = vmatpush.msra.mxu1 %v7639_v44 }
 0xcfd   :  { %5553 = vmatpush.msra.mxu0 %v5325_v56  ;;  %v7759_v56 = vsel %vm5157_vm3, %v7702_v50, %v5150_v40 }
 0xcfe   :  { %5610 = vmatpush.msra.mxu1 %v7641_v37  ;;  %v7728_v37 = vsel %vm5157_vm3, %v5151_v33, %v5154_v15 }
 0xcff   :  { %5557 = vmatpush.msra.mxu0 %v5331_v23  ;;  %v5185_v53 = vsel %vm59_vm0, %v7728_v37, 0 }
 0xd00   :  { %5612 = vmatpush.msra.mxu1 %v7668_v31  ;;  %v7733_v24 = vand.u32 4294901760, %v5185_v53 }
 0xd01   :  { %5561 = vmatpush.msra.mxu0 %v5337_v34 }
 0xd02   :  { %5614 = vmatpush.msra.mxu1 %v7674_v39 }
 0xd03   :  { %5565 = vmatpush.msra.mxu0 %v5343_v51 }
 0xd04   :  { %5616 = vmatpush.msra.mxu1 %v5218_v7 }
 0xd06   :  { %5618 = vmatpush.msra.mxu1 %v5220_v55  ;;  %v5194_v55 = vsel %vm59_vm0, %v7753_v54, 0 }
 0xd07   :  { %v5266_v25 = vand.u32 4294901760, %v5194_v55 }
 0xd08   :  { %5620 = vmatpush.msra.mxu1 %v5222_v16  ;;  %v5197_v16 = vsel %vm59_vm0, %v7759_v56, 0 }
 0xd09   :  { %v5267_v30 = vsub.f32 %v5194_v55, %v5266_v25  ;;  %v5274_v0 = vand.u32 4294901760, %v5197_v16 }
 0xd0a   :  { %5622 = vmatpush.msra.mxu1 %v5224_v61 }
 0xd0b   :  { %v5268_v5 = vand.u32 4294901760, %v5267_v30  ;;  %v5275_v6 = vsub.f32 %v5197_v16, %v5274_v0  ;;  %v7801_v16 = vld [vmem:[%s7849_s7] ss:$0 sm:$0xff] }
 0xd0d   :  { %v5269_v46 = vsub.f32 %v5267_v30, %v5268_v5  ;;  %v5276_v34 = vand.u32 4294901760, %v5275_v6 }
 0xd0f   :  { %v5270_v18 = vand.u32 4294901760, %v5269_v46  ;;  %v5277_v41 = vsub.f32 %v5275_v6, %v5276_v34 }
 0xd11   :  { %v5278_v58 = vand.u32 4294901760, %v5277_v41 }
 0xd4e   :  { %v5139_v8 = vpop.permute.xlu2 %5138 }
 0xd4f   :  { %v5141_v12 = vmul.f32 %v5139_v8, %v5136_v10  ;;  %v5152_v10 = vld [vmem:[#allocation3 + $0x18] sm:$0xff] }
 0xd50   :  { %v7737_v8 = vsel %vm5157_vm3, %v5152_v10, %v5153_v27  ;;  %v7746_v47 = vsel %vm5157_vm3, %v5153_v27, %v5152_v10 }
 0xd51   :  { %v5143_v17 = vadd.f32 %v5142_v57, %v5141_v12  ;;  %v5237_v57 = vsub.f32 %v5235_v9, %v5236_v49  ;;  %v5243_v12 = vsub.f32 %v5185_v53, %v7733_v24  ;;  %v5191_v36 = vsel %vm59_vm0, %v7746_v47, 0 }
 0xd52   :  { %v5258_v13 = vand.u32 4294901760, %v5191_v36 }
 0xd53   :  { %5145 = vrot.lane.b32.xlu0 %v5143_v17, %s5888_s16  ;;  %v5188_v17 = vsel %vm59_vm0, %v7737_v8, 0  ;;  %v5238_v42 = vand.u32 4294901760, %v5237_v57  ;;  %v5244_v31 = vand.u32 4294901760, %v5243_v12 }
 0xd54   :  { %v7742_v14 = vand.u32 4294901760, %v5188_v17  ;;  %v5259_v48 = vsub.f32 %v5191_v36, %v5258_v13 }
 0xd55   :  { %v5245_v39 = vsub.f32 %v5243_v12, %v5244_v31 }
 0xd56   :  { %v5251_v62 = vsub.f32 %v5188_v17, %v7742_v14  ;;  %v5260_v35 = vand.u32 4294901760, %v5259_v48 }
 0xd57   :  { %v5246_v59 = vand.u32 4294901760, %v5245_v39 }
 0xd58   :  { %v5252_v7 = vand.u32 4294901760, %v5251_v62  ;;  %v5261_v52 = vsub.f32 %v5259_v48, %v5260_v35 }
 0xd5a   :  { %v5253_v63 = vsub.f32 %v5251_v62, %v5252_v7  ;;  %v5262_v61 = vand.u32 4294901760, %v5261_v52 }
 0xd5c   :  { %v5254_v22 = vand.u32 4294901760, %v5253_v63 }
 0xdc5   :  { %v5146_v28 = vpop.permute.xlu0 %5145 }
 0xdc6   :  { %5148 = vst.msk [vmem:[#allocation3 + $0x38] sm:$0xff] %vm59_vm0, %v5146_v28 }
 0xdcd   :  { %v7710_v60 = vld [vmem:[#allocation3 + $0x38] sm:$0xff] }
 0xdce   :  { %v7717_v11 = vsel %vm5157_vm3, %v7708_v38, %v7710_v60  ;;  %v7766_v23 = vsel %vm5157_vm3, %v7710_v60, %v7708_v38 }
 0xdcf   :  { %v5179_v32 = vsel %vm59_vm0, %v7717_v11, 0  ;;  %v5200_v19 = vsel %vm59_vm0, %v7766_v23, 0 }
 0xdd0   :  { %v7721_v26 = vand.u32 4294901760, %v5179_v32  ;;  %v5282_v51 = vand.u32 4294901760, %v5200_v19 }
 0xdd2   :  { %5348 = vmatmul.f32.vlgmr.msrb.gmra.mxu1 %v7721_v26  ;;  %v5227_v44 = vsub.f32 %v5179_v32, %v7721_v26  ;;  %v5283_v43 = vsub.f32 %v5200_v19, %v5282_v51 }
 0xdd4   :  { %5414 = vmatmul.f32.vlgmr.msra.gmra.mxu2 %v5227_v44  ;;  %v5228_v4 = vand.u32 4294901760, %v5227_v44  ;;  %v5284_v3 = vand.u32 4294901760, %v5283_v43 }
 0xdd6   :  { %5480 = vmatmul.f32.vlgmr.msra.gmra.mxu3 %v5228_v4  ;;  %v5229_v20 = vsub.f32 %v5227_v44, %v5228_v4  ;;  %v5285_v45 = vsub.f32 %v5283_v43, %v5284_v3 }
 0xdd8   :  { %v5230_v2 = vand.u32 4294901760, %v5229_v20  ;;  %v5286_v28 = vand.u32 4294901760, %v5285_v45  ;;  %v7787_v20 = vld [vmem:[%s7848_s6] ss:$0 sm:$0xff] }
 0xdda   :  { %5231 = vmatmul.f32.vlgmr.msrb.gmra.mxu0 %v5230_v2  ;;  %5352 = vmatmul.f32.gmra.mxu1 %v7723_v1 }
 0xddc   :  { %5419 = vmatmul.f32.gmra.mxu2 %v5235_v9 }
 0xdde   :  { %5486 = vmatmul.f32.gmra.mxu3 %v5236_v49 }
 0xde2   :  { %5239 = vmatmul.f32.gmra.mxu0 %v5238_v42  ;;  %5356 = vmatmul.f32.gmra.mxu1 %v7733_v24 }
 0xde4   :  { %5424 = vmatmul.f32.gmra.mxu2 %v5243_v12 }
 0xde6   :  { %5492 = vmatmul.f32.gmra.mxu3 %v5244_v31 }
 0xdea   :  { %5247 = vmatmul.f32.gmra.mxu0 %v5246_v59  ;;  %5360 = vmatmul.f32.gmra.mxu1 %v7742_v14 }
 0xdec   :  { %5429 = vmatmul.f32.gmra.mxu2 %v5251_v62 }
 0xdee   :  { %5498 = vmatmul.f32.gmra.mxu3 %v5252_v7 }
 0xdf2   :  { %5255 = vmatmul.f32.gmra.mxu0 %v5254_v22  ;;  %5364 = vmatmul.f32.gmra.mxu1 %v5258_v13 }
 0xdf4   :  { %5434 = vmatmul.f32.gmra.mxu2 %v5259_v48 }
 0xdf6   :  { %5504 = vmatmul.f32.gmra.mxu3 %v5260_v35 }
 0xdfa   :  { %5263 = vmatmul.f32.gmra.mxu0 %v5262_v61  ;;  %5368 = vmatmul.f32.gmra.mxu1 %v5266_v25 }
 0xdfc   :  { %5439 = vmatmul.f32.gmra.mxu2 %v5267_v30 }
 0xdfe   :  { %5510 = vmatmul.f32.gmra.mxu3 %v5268_v5 }
 0xe02   :  { %5271 = vmatmul.f32.gmra.mxu0 %v5270_v18  ;;  %5372 = vmatmul.f32.gmra.mxu1 %v5274_v0 }
 0xe04   :  { %5444 = vmatmul.f32.gmra.mxu2 %v5275_v6 }
 0xe06   :  { %5516 = vmatmul.f32.gmra.mxu3 %v5276_v34 }
 0xe0a   :  { %5279 = vmatmul.f32.gmra.mxu0 %v5278_v58  ;;  %5376 = vmatmul.f32.gmra.mxu1 %v5282_v51 }
 0xe0c   :  { %5449 = vmatmul.f32.gmra.mxu2 %v5283_v43 }
 0xe0e   :  { %5522 = vmatmul.f32.gmra.mxu3 %v5284_v3 }
 0xe12   :  { %5287 = vmatmul.f32.gmra.mxu0 %v5286_v28  ;;  %5624 = vmatmul.f32.vlgmr.msra.gmra.mxu1 %v7721_v26 }
 0xe1a   :  { %5567 = vmatmul.f32.vlgmr.msra.gmra.mxu0 %v7721_v26  ;;  %5628 = vmatmul.f32.gmra.mxu1 %v7723_v1 }
 0xe22   :  { %5571 = vmatmul.f32.gmra.mxu0 %v7723_v1  ;;  %5632 = vmatmul.f32.gmra.mxu1 %v7733_v24 }
 0xe2a   :  { %5575 = vmatmul.f32.gmra.mxu0 %v7733_v24  ;;  %5636 = vmatmul.f32.gmra.mxu1 %v7742_v14 }
 0xe32   :  { %5579 = vmatmul.f32.gmra.mxu0 %v7742_v14  ;;  %5640 = vmatmul.f32.gmra.mxu1 %v5258_v13 }
 0xe3a   :  { %5583 = vmatmul.f32.gmra.mxu0 %v5258_v13  ;;  %5644 = vmatmul.f32.gmra.mxu1 %v5266_v25 }
 0xe42   :  { %5587 = vmatmul.f32.gmra.mxu0 %v5266_v25  ;;  %5648 = vmatmul.f32.gmra.mxu1 %v5274_v0 }
 0xe4a   :  { %5591 = vmatmul.f32.gmra.mxu0 %v5274_v0  ;;  %5652 = vmatmul.f32.gmra.mxu1 %v5282_v51 }
 0xe4f   :  { %v5349_v50 = vpop.f32.mrf.mxu1 }
 0xe52   :  { %5595 = vmatmul.f32.gmra.mxu0 %v5282_v51 }
 0xe57   :  { %v5232_v40 = vpop.f32.mrf.mxu0  ;;  %v5353_v38 = vpop.f32.mrf.mxu1 }
 0xe58   :  { %v5415_v53 = vpop.f32.mrf.mxu2  ;;  %v5233_v24 = vadd.f32 %v7787_v20, %v5232_v40 }
 0xe59   :  { %v5481_v27 = vpop.f32.mrf.mxu3 }
 0xe5a   :  { %v5350_v57 = vadd.f32 %v5349_v50, %v5233_v24 }
 0xe5c   :  { %v5416_v31 = vadd.f32 %v5415_v53, %v5350_v57 }
 0xe5e   :  { %v5482_v39 = vadd.f32 %v5481_v27, %v5416_v31 }
 0xe5f   :  { %v5240_v60 = vpop.f32.mrf.mxu0  ;;  %v5357_v29 = vpop.f32.mrf.mxu1 }
 0xe60   :  { %v5420_v10 = vpop.f32.mrf.mxu2  ;;  %v5241_v14 = vadd.f32 %v7787_v20, %v5240_v60 }
 0xe61   :  { %v5487_v42 = vpop.f32.mrf.mxu3 }
 0xe62   :  { %v5354_v62 = vadd.f32 %v5353_v38, %v5241_v14 }
 0xe64   :  { %v5421_v63 = vadd.f32 %v5420_v10, %v5354_v62 }
 0xe66   :  { %v5488_v35 = vadd.f32 %v5487_v42, %v5421_v63 }
 0xe67   :  { %v5248_v32 = vpop.f32.mrf.mxu0  ;;  %v5361_v15 = vpop.f32.mrf.mxu1 }
 0xe68   :  { %v5425_v36 = vpop.f32.mrf.mxu2  ;;  %v5249_v48 = vadd.f32 %v7787_v20, %v5248_v32 }
 0xe69   :  { %v5493_v22 = vpop.f32.mrf.mxu3 }
 0xe6a   :  { %v5358_v25 = vadd.f32 %v5357_v29, %v5249_v48 }
 0xe6c   :  { %v5426_v46 = vadd.f32 %v5425_v36, %v5358_v25 }
 0xe6e   :  { %v5494_v41 = vadd.f32 %v5493_v22, %v5426_v46 }
 0xe6f   :  { %v5256_v26 = vpop.f32.mrf.mxu0  ;;  %v5365_v1 = vpop.f32.mrf.mxu1 }
 0xe70   :  { %v5430_v5 = vpop.f32.mrf.mxu2  ;;  %v5257_v6 = vadd.f32 %v7787_v20, %v5256_v26 }
 0xe71   :  { %v5499_v34 = vpop.f32.mrf.mxu3 }
 0xe72   :  { %v5362_v43 = vadd.f32 %v5361_v15, %v5257_v6 }
 0xe74   :  { %v5431_v50 = vadd.f32 %v5430_v5, %v5362_v43 }
 0xe76   :  { %v5500_v26 = vadd.f32 %v5499_v34, %v5431_v50 }
 0xe77   :  { %v5264_v33 = vpop.f32.mrf.mxu0  ;;  %v7778_v44 = vpop.f32.mrf.mxu1 }
 0xe78   :  { %v5265_v40 = vadd.f32 %v7787_v20, %v5264_v33  ;;  %v5435_v60 = vpop.f32.mrf.mxu2 }
 0xe79   :  { %v5505_v27 = vpop.f32.mrf.mxu3 }
 0xe7a   :  { %v5366_v53 = vadd.f32 %v5365_v1, %v5265_v40 }
 0xe7c   :  { %v5436_v57 = vadd.f32 %v5435_v60, %v5366_v53 }
 0xe7e   :  { %v5506_v62 = vadd.f32 %v5505_v27, %v5436_v57 }
 0xe7f   :  { %v7780_v4 = vpop.f32.mrf.mxu0  ;;  %v7782_v9 = vpop.f32.mrf.mxu1 }
 0xe80   :  { %v5440_v14 = vpop.f32.mrf.mxu2 }
 0xe87   :  { %v7789_v2 = vpop.f32.mrf.mxu0  ;;  %v7791_v49 = vpop.f32.mrf.mxu1 }
 0xe8f   :  { %v7794_v12 = vpop.f32.mrf.mxu0  ;;  %v5625_v17 = vpop.f32.mrf.mxu1 }
 0xe90   :  { %v5289_v46 = vadd.f32 %v7787_v20, %v7794_v12 }
 0xe97   :  { %v5568_v59 = vpop.f32.mrf.mxu0  ;;  %v5629_v7 = vpop.f32.mrf.mxu1 }
 0xe98   :  { %v5569_v13 = vadd.f32 %v5568_v59, %v5482_v39 }
 0xe9a   :  { %v5626_v55 = vadd.f32 %v5625_v17, %v5569_v13  ;;  %v5273_v17 = vadd.f32 %v7787_v20, %v7780_v4  ;;  %v5281_v4 = vadd.f32 %v7787_v20, %v7789_v2 }
 0xe9c   :  { %5851 = vtanh.f32 %v5626_v55  ;;  %v5370_v1 = vadd.f32 %v7778_v44, %v5273_v17  ;;  %v5445_v44 = vpop.f32.mrf.mxu2 }
 0xe9e   :  { %v5441_v63 = vadd.f32 %v5440_v14, %v5370_v1 }
 0xe9f   :  { %v5572_v52 = vpop.f32.mrf.mxu0  ;;  %v5633_v30 = vpop.f32.mrf.mxu1 }
 0xea0   :  { %v5573_v61 = vadd.f32 %v5572_v52, %v5488_v35  ;;  %v5374_v52 = vadd.f32 %v7782_v9, %v5281_v4 }
 0xea2   :  { %v5852_v0 = vpop.eup %5851  ;;  %v5630_v19 = vadd.f32 %v5629_v7, %v5573_v61  ;;  %v5511_v7 = vpop.f32.mrf.mxu3 }
 0xea3   :  { %v5668_v18 = vmul.f32 %v5852_v0, %v7801_v16  ;;  %v5512_v25 = vadd.f32 %v5511_v7, %v5441_v63  ;;  %v5446_v0 = vadd.f32 %v5445_v44, %v5374_v52 }
 0xea4   :  { %5853 = vtanh.f32 %v5630_v19 }
 0xea5   :  { %v5676_v51 = vsel %vm59_vm0, %v5668_v18, 0.0 }
 0xea6   :  { %5677 = vadd.xlane.f32.xlu1 %v5676_v51  ;;  %v5378_v51 = vadd.f32 %v7791_v49, %v5289_v46 }
 0xea7   :  { %v5576_v58 = vpop.f32.mrf.mxu0  ;;  %v5637_v45 = vpop.f32.mrf.mxu1 }
 0xea8   :  { %v5577_v3 = vadd.f32 %v5576_v58, %v5494_v41  ;;  %v5450_v58 = vpop.f32.mrf.mxu2 }
 0xeaa   :  { %v5854_v28 = vpop.eup %5853  ;;  %v5634_v38 = vadd.f32 %v5633_v30, %v5577_v3  ;;  %v5517_v6 = vpop.f32.mrf.mxu3 }
 0xeab   :  { %v5669_v29 = vmul.f32 %v5854_v28, %v7801_v16  ;;  %v5518_v34 = vadd.f32 %v5517_v6, %v5446_v0 }
 0xeac   :  { %5855 = vtanh.f32 %v5634_v38 }
 0xead   :  { %v5679_v32 = vsel %vm59_vm0, %v5669_v29, 0.0 }
 0xeae   :  { %5680 = vadd.xlane.f32.xlu2 %v5679_v32 }
 0xeaf   :  { %v5580_v15 = vpop.f32.mrf.mxu0  ;;  %v5641_v33 = vpop.f32.mrf.mxu1 }
 0xeb0   :  { %v5581_v24 = vadd.f32 %v5580_v15, %v5500_v26 }
 0xeb2   :  { %v5856_v10 = vpop.eup %5855  ;;  %v5638_v42 = vadd.f32 %v5637_v45, %v5581_v24  ;;  %v5451_v45 = vadd.f32 %v5450_v58, %v5378_v51  ;;  %v5523_v12 = vpop.f32.mrf.mxu3 }
 0xeb3   :  { %v5670_v31 = vmul.f32 %v5856_v10, %v7801_v16 }
 0xeb4   :  { %5857 = vtanh.f32 %v5638_v42  ;;  %v5524_v40 = vadd.f32 %v5523_v12, %v5451_v45 }
 0xeb5   :  { %v5682_v39 = vsel %vm59_vm0, %v5670_v31, 0.0 }
 0xeb6   :  { %5683 = vadd.xlane.f32.xlu0 %v5682_v39 }
 0xeb7   :  { %v5584_v36 = vpop.f32.mrf.mxu0  ;;  %v5645_v22 = vpop.f32.mrf.mxu1 }
 0xeb8   :  { %v5585_v59 = vadd.f32 %v5584_v36, %v5506_v62 }
 0xeba   :  { %v5858_v13 = vpop.eup %5857  ;;  %v5642_v48 = vadd.f32 %v5641_v33, %v5585_v59 }
 0xebb   :  { %v5671_v55 = vmul.f32 %v5858_v13, %v7801_v16 }
 0xebc   :  { %5859 = vtanh.f32 %v5642_v48 }
 0xebd   :  { %v5685_v35 = vsel %vm59_vm0, %v5671_v55, 0.0 }
 0xebe   :  { %5686 = vadd.xlane.f32.xlu2 %v5685_v35 }
 0xebf   :  { %v5588_v30 = vpop.f32.mrf.mxu0  ;;  %v5649_v9 = vpop.f32.mrf.mxu1 }
 0xec0   :  { %v5589_v61 = vadd.f32 %v5588_v30, %v5512_v25 }
 0xec2   :  { %v5860_v5 = vpop.eup %5859  ;;  %v5646_v2 = vadd.f32 %v5645_v22, %v5589_v61 }
 0xec3   :  { %v5672_v19 = vmul.f32 %v5860_v5, %v7801_v16 }
 0xec4   :  { %5861 = vtanh.f32 %v5646_v2 }
 0xec5   :  { %v5688_v18 = vsel %vm59_vm0, %v5672_v19, 0.0 }
 0xec6   :  { %5689 = vadd.xlane.f32.xlu1 %v5688_v18 }
 0xec7   :  { %v5592_v41 = vpop.f32.mrf.mxu0  ;;  %v5653_v29 = vpop.f32.mrf.mxu1 }
 0xec8   :  { %v5593_v43 = vadd.f32 %v5592_v41, %v5518_v34 }
 0xeca   :  { %v5862_v3 = vpop.eup %5861  ;;  %v5650_v28 = vadd.f32 %v5649_v9, %v5593_v43 }
 0xecb   :  { %v5673_v20 = vmul.f32 %v5862_v3, %v7801_v16 }
 0xecc   :  { %5863 = vtanh.f32 %v5650_v28 }
 0xecd   :  { %v5691_v50 = vsel %vm59_vm0, %v5673_v20, 0.0 }
 0xece   :  { %5692 = vadd.xlane.f32.xlu2 %v5691_v50 }
 0xecf   :  { %v5596_v38 = vpop.f32.mrf.mxu0 }
 0xed0   :  { %v5597_v60 = vadd.f32 %v5596_v38, %v5524_v40 }
 0xed2   :  { %v5864_v49 = vpop.eup %5863  ;;  %v5654_v32 = vadd.f32 %v5653_v29, %v5597_v60 }
 0xed3   :  { %v5674_v26 = vmul.f32 %v5864_v49, %v7801_v16 }
 0xed4   :  { %5865 = vtanh.f32 %v5654_v32 }
 0xed5   :  { %v5694_v53 = vsel %vm59_vm0, %v5674_v26, 0.0 }
 0xed6   :  { %5695 = vadd.xlane.f32.xlu0 %v5694_v53 }
 0xeda   :  { %v5866_v27 = vpop.eup %5865 }
 0xedb   :  { %v5675_v15 = vmul.f32 %v5866_v27, %v7801_v16 }
 0xedd   :  { %v5697_v24 = vsel %vm59_vm0, %v5675_v15, 0.0 }
 0xede   :  { %5698 = vadd.xlane.f32.xlu1 %v5697_v24 }
 0xf19   :  { %v5678_v57 = vpop.xlane.xlu1 %5677 }
 0xf21   :  { %v5681_v10 = vpop.xlane.xlu2 %5680 }
 0xf22   :  { %v5700_v33 = vmax.f32 %v5678_v57, %v5681_v10 }
 0xf29   :  { %v5684_v42 = vpop.xlane.xlu0 %5683 }
 0xf2a   :  { %v5701_v31 = vmax.f32 %v5700_v33, %v5684_v42 }
 0xf31   :  { %v5687_v17 = vpop.xlane.xlu2 %5686 }
 0xf32   :  { %v5702_v39 = vmax.f32 %v5701_v31, %v5687_v17 }
 0xf39   :  { %v5690_v14 = vpop.xlane.xlu1 %5689 }
 0xf3a   :  { %v5703_v1 = vmax.f32 %v5702_v39, %v5690_v14 }
 0xf41   :  { %v5693_v62 = vpop.xlane.xlu2 %5692 }
 0xf42   :  { %v5704_v59 = vmax.f32 %v5703_v1, %v5693_v62 }
 0xf49   :  { %v5696_v36 = vpop.xlane.xlu0 %5695 }
 0xf4a   :  { %v5705_v7 = vmax.f32 %v5704_v59, %v5696_v36 }
 0xf51   :  { %v5699_v13 = vpop.xlane.xlu1 %5698 }
 0xf52   :  { %v5706_v63 = vmax.f32 %v5705_v7, %v5699_v13 }
 0xf54   :  { %v5707_v4 = vsub.f32 %v5678_v57, %v5706_v63  ;;  %v5710_v16 = vsub.f32 %v5681_v10, %v5706_v63  ;;  %v5713_v48 = vsub.f32 %v5684_v42, %v5706_v63  ;;  %v5716_v55 = vsub.f32 %v5687_v17, %v5706_v63 }
 0xf55   :  { %v5719_v52 = vsub.f32 %v5690_v14, %v5706_v63  ;;  %v5722_v30 = vsub.f32 %v5693_v62, %v5706_v63  ;;  %v5725_v5 = vsub.f32 %v5696_v36, %v5706_v63  ;;  %v5728_v46 = vsub.f32 %v5699_v13, %v5706_v63 }
 0xf56   :  { %v5708_v22 = vmul.f32 1.442695, %v5707_v4  ;;  %v5711_v35 = vmul.f32 1.442695, %v5710_v16  ;;  %v5714_v25 = vmul.f32 1.442695, %v5713_v48 }
 0xf57   :  { %v5717_v44 = vmul.f32 1.442695, %v5716_v55  ;;  %v5720_v61 = vmul.f32 1.442695, %v5719_v52  ;;  %v5723_v0 = vmul.f32 1.442695, %v5722_v30 }
 0xf58   :  { %5867 = vpow2.f32 %v5708_v22  ;;  %v5726_v19 = vmul.f32 1.442695, %v5725_v5  ;;  %v5729_v51 = vmul.f32 1.442695, %v5728_v46 }
 0xf59   :  { %5869 = vpow2.f32 %v5711_v35 }
 0xf5a   :  { %5871 = vpow2.f32 %v5714_v25 }
 0xf5b   :  { %5873 = vpow2.f32 %v5717_v44 }
 0xf5c   :  { %5875 = vpow2.f32 %v5720_v61 }
 0xf5d   :  { %5877 = vpow2.f32 %v5723_v0 }
 0xf5e   :  { %v5868_v2 = vpop.eup %5867  ;;  %5879 = vpow2.f32 %v5726_v19 }
 0xf5f   :  { %v5870_v6 = vpop.eup %5869  ;;  %v5738_v9 = vmul.f32 %v5868_v2, %v7717_v11  ;;  %5881 = vpow2.f32 %v5729_v51 }
 0xf60   :  { %v5731_v18 = vadd.f32 %v5870_v6, %v5868_v2  ;;  %v5872_v34 = vpop.eup %5871  ;;  %v5740_v41 = vmul.f32 %v5870_v6, %v7706_v21 }
 0xf61   :  { %v5874_v58 = vpop.eup %5873  ;;  %v5742_v50 = vmul.f32 %v5872_v34, %v7728_v37 }
 0xf62   :  { %v5732_v43 = vadd.f32 %v5872_v34, %v5731_v18  ;;  %v5876_v45 = vpop.eup %5875  ;;  %v5741_v28 = vadd.f32 %v5740_v41, %v5738_v9  ;;  %v5744_v11 = vmul.f32 %v5874_v58, %v7737_v8 }
 0xf63   :  { %v5878_v12 = vpop.eup %5877  ;;  %v5746_v26 = vmul.f32 %v5876_v45, %v7746_v47 }
 0xf64   :  { %v5733_v3 = vadd.f32 %v5874_v58, %v5732_v43  ;;  %v5880_v38 = vpop.eup %5879  ;;  %v5743_v60 = vadd.f32 %v5742_v50, %v5741_v28  ;;  %v5748_v27 = vmul.f32 %v5878_v12, %v7753_v54 }
 0xf65   :  { %v5882_v49 = vpop.eup %5881  ;;  %v5750_v37 = vmul.f32 %v5880_v38, %v7759_v56 }
 0xf66   :  { %v5734_v20 = vadd.f32 %v5876_v45, %v5733_v3  ;;  %v5745_v21 = vadd.f32 %v5744_v11, %v5743_v60  ;;  %v5752_v8 = vmul.f32 %v5882_v49, %v7766_v23 }
 0xf68   :  { %v5735_v40 = vadd.f32 %v5878_v12, %v5734_v20  ;;  %v5747_v53 = vadd.f32 %v5746_v26, %v5745_v21 }
 0xf6a   :  { %v5736_v29 = vadd.f32 %v5880_v38, %v5735_v40  ;;  %v5749_v24 = vadd.f32 %v5748_v27, %v5747_v53 }
 0xf6c   :  { %v5737_v32 = vadd.f32 %v5882_v49, %v5736_v29  ;;  %v5751_v42 = vadd.f32 %v5750_v37, %v5749_v24 }
 0xf6e   :  { %5883 = vrcp.f32 %v5737_v32  ;;  %v5765_v17 = vand.u32 2147483648, %v5737_v32  ;;  %v5763_v31 = vand.u32 2147483647, %v5737_v32  ;;  %vm5759_vm5 = vweird.f32 %v5737_v32 }
 0xf6f   :  { %v5753_v39 = vadd.f32 %v5752_v8, %v5751_v42 }
 0xf70   :  { %v5766_v47 = vor.u32 1.1754944e-38, %v5765_v17  ;;  %vm5764_vm7 = vcmp.eq.f32.partialorder %v5763_v31, 8.507059e+37 }
 0xf74   :  { %v5884_v15 = vpop.eup %5883 }
 0xf75   :  { %v5755_v10 = vmul.f32 %v5884_v15, %v5737_v32  ;;  %vm5760_vm4 = vweird.f32 %v5884_v15 }
 0xf76   :  { %vm5761_vm6 = vmor %vm5759_vm5, %vm5760_vm4 }
 0xf77   :  { %v5756_v57 = vsub.f32 1.0, %v5755_v10 }
 0xf79   :  { %v5757_v33 = vmul.f32 %v5884_v15, %v5756_v57 }
 0xf7b   :  { %v5758_v14 = vadd.f32 %v5884_v15, %v5757_v33 }
 0xf7d   :  { %v5762_v62 = vsel %vm5761_vm6, %v5884_v15, %v5758_v14 }
 0xf7e   :  { %v5767_v54 = vsel %vm5764_vm7, %v5766_v47, %v5762_v62 }
 0xf7f   :  { %v5768_v1 = vmul.f32 %v5767_v54, %v5753_v39 }
 0xf81   :  { %5769 = vst.msk [vmem:[%s7850_s8] sm:$0xff] %vm59_vm0, %v5768_v1 }

</bundles_post_ra>
